<compile_context>
chip_gen: v7x
topology: tpu7x:2x2x1
jax: 0.10.0
libtpu: 0.0.40
codegen_flags: <defaults>
</compile_context>

<pallas_src>
import math
import functools
import jax
import jax.numpy as jnp
from jax.experimental import pallas as pl
from jax.experimental.pallas import tpu as pltpu  # noqa: F401  (TPU backend)

# ----------------------------- model config (small) -------------------------
VOCAB_SIZE = 20
D_MODEL = 32
N_LAYERS = 2
N_HEADS = 4
D_FF = 64
MAX_SEQ_LEN = 64
EPS = 1e-6

BATCH = 2
SEQ = 8


# ----------------------------- in-kernel helpers ----------------------------
def _layernorm(x, w, b):
    # x: (R, D) f32, w/b: (1, D); torch.nn.LayerNorm(eps=1e-6) semantics.
    mu = jnp.mean(x, axis=-1, keepdims=True)
    var = jnp.mean((x - mu) ** 2, axis=-1, keepdims=True)
    return (x - mu) * jax.lax.rsqrt(var + EPS) * w + b


def _erf(x):
    # Abramowitz & Stegun 7.1.26 (max abs err 1.5e-7 ~ f32 eps).
    a1, a2, a3, a4, a5 = (0.254829592, -0.284496736, 1.421413741,
                          -1.453152027, 1.061405429)
    p = 0.3275911
    sign = jnp.where(x >= 0.0, 1.0, -1.0)
    ax = jnp.abs(x)
    t = 1.0 / (1.0 + p * ax)
    poly = ((((a5 * t + a4) * t + a3) * t + a2) * t + a1) * t
    return sign * (1.0 - poly * jnp.exp(-ax * ax))


def _gelu_exact(x):
    # nn.GELU() default: 0.5 * x * (1 + erf(x / sqrt(2)))
    return 0.5 * x * (1.0 + _erf(x * (1.0 / math.sqrt(2.0))))


# ----------------------------- fused Pallas kernel ---------------------------
def encoder_stack_kernel(x_ref,
                         ln1w_ref, ln1b_ref,
                         wq_ref, bq_ref, wk_ref, bk_ref, wv_ref, bv_ref,
                         wo_ref, bo_ref,
                         ln2w_ref, ln2b_ref,
                         w1_ref, b1_ref, w2_ref, b2_ref,
                         fnw_ref, fnb_ref,
                         o_ref, *, seq_len):
    BS, D = x_ref.shape
    S = seq_len
    B = BS // S
    H = N_HEADS
    Dh = D // H

    x = x_ref[...]                         # (B*S, D) f32, VMEM-resident throughout

    for l in range(N_LAYERS):              # static unroll over layers
        # ---- self-attention block: x + MHA'(LN1(x))  (gamma1 pre-folded) ----
        n = _layernorm(x, ln1w_ref[l], ln1b_ref[l])
        n16 = n.astype(jnp.bfloat16)
        # 1/sqrt(Dh) pre-folded into wq/bq; weights already bf16.
        q = jnp.dot(n16, wq_ref[l], preferred_element_type=jnp.float32) + bq_ref[l]
        k = jnp.dot(n16, wk_ref[l], preferred_element_type=jnp.float32) + bk_ref[l]
        v = jnp.dot(n16, wv_ref[l], preferred_element_type=jnp.float32) + bv_ref[l]

        attn = jnp.zeros((BS, D), jnp.float32)
        for h in range(H):                 # static head loop; batch dim stays batched
            sl = slice(h * Dh, (h + 1) * Dh)
            qh = q[:, sl].reshape(B, S, Dh).astype(jnp.bfloat16)
            kh = k[:, sl].reshape(B, S, Dh).astype(jnp.bfloat16)
            vh = v[:, sl].reshape(B, S, Dh).astype(jnp.bfloat16)
            s = jnp.einsum('bqd,bkd->bqk', qh, kh,
                           preferred_element_type=jnp.float32)       # (B, S, S)
            s = s - jnp.max(s, axis=-1, keepdims=True)
            p = jnp.exp(s)
            p = p * pl.reciprocal(jnp.sum(p, axis=-1, keepdims=True), approx=True)
            ctx = jnp.einsum('bqk,bkd->bqd', p.astype(jnp.bfloat16), vh,
                             preferred_element_type=jnp.float32)     # (B, S, Dh)
            ctx = ctx.reshape(BS, Dh).astype(jnp.bfloat16)
            # fold this head's slice of the (gamma1-scaled) output projection in
            attn = attn + jnp.dot(ctx, wo_ref[l, h],
                                  preferred_element_type=jnp.float32)
        x = x + attn + bo_ref[l]           # dropout = identity (eval mode)

        # ---- feed-forward block: x + FFN'(LN2(x))  (gamma2 pre-folded) ----
        n2 = _layernorm(x, ln2w_ref[l], ln2b_ref[l])
        h1 = jnp.dot(n2.astype(jnp.bfloat16), w1_ref[l],
                     preferred_element_type=jnp.float32) + b1_ref[l]
        h1 = _gelu_exact(h1)
        ff = jnp.dot(h1.astype(jnp.bfloat16), w2_ref[l],
                     preferred_element_type=jnp.float32)
        x = x + ff + b2_ref[l]

    # final LayerNorm fused into the same kernel
    o_ref[...] = _layernorm(x, fnw_ref[...], fnb_ref[...]).astype(o_ref.dtype)
    # TODO(synk): output last dim is D=32 (<128 lanes) -> masked stores; a
    # lane-dense (B, S*D) output would need an in-kernel sublane->lane reshape.


# ----------------------------- parameters -----------------------------------
def _xavier(key, shape):
    limit = math.sqrt(6.0 / (shape[0] + shape[1]))
    return jax.random.uniform(key, shape, jnp.float32, -limit, limit)


def _pos_encoding(max_len, d_model):
    pos = jnp.arange(max_len, dtype=jnp.float32)[:, None]
    div = jnp.exp(jnp.arange(0, d_model, 2, dtype=jnp.float32) *
                  (-math.log(10000.0) / d_model))
    pe = jnp.zeros((1, max_len, d_model), jnp.float32)
    pe = pe.at[0, :, 0::2].set(jnp.sin(pos * div))
    pe = pe.at[0, :, 1::2].set(jnp.cos(pos * div))
    return pe


def init_params(key):
    keys = iter(jax.random.split(key, 8 + 8 * N_LAYERS))
    params = {
        "embedding": _xavier(next(keys), (VOCAB_SIZE, D_MODEL)),
        "pos_encoding": _pos_encoding(MAX_SEQ_LEN, D_MODEL),
        # Present for parameter fidelity; unused by the reference forward.
        "rel_pos_bias": 0.02 * jax.random.normal(next(keys),
                                                 (2 * MAX_SEQ_LEN - 1,), jnp.float32),
        "norm_w": jnp.ones((1, D_MODEL), jnp.float32),
        "norm_b": jnp.zeros((1, D_MODEL), jnp.float32),
        "layers": [],
    }
    for _ in range(N_LAYERS):
        lp = {
            "ln1_w": jnp.ones((1, D_MODEL), jnp.float32),
            "ln1_b": jnp.zeros((1, D_MODEL), jnp.float32),
            "w_qkv": _xavier(next(keys), (D_MODEL, 3 * D_MODEL)),   # right-multiply layout
            "b_qkv": jnp.zeros((1, 3 * D_MODEL), jnp.float32),
            "w_o": _xavier(next(keys), (D_MODEL, D_MODEL)),
            "b_o": jnp.zeros((1, D_MODEL), jnp.float32),
            "gamma1": 1e-4 * jnp.ones((1, D_MODEL), jnp.float32),
            "ln2_w": jnp.ones((1, D_MODEL), jnp.float32),
            "ln2_b": jnp.zeros((1, D_MODEL), jnp.float32),
            "w1": _xavier(next(keys), (D_MODEL, D_FF)),
            "b1": jnp.zeros((1, D_FF), jnp.float32),
            "w2": _xavier(next(keys), (D_FF, D_MODEL)),
            "b2": jnp.zeros((1, D_MODEL), jnp.float32),
            "gamma2": 1e-4 * jnp.ones((1, D_MODEL), jnp.float32),
        }
        params["layers"].append(lp)
    return params


def fold_and_stack(params):
    """One-time prep: stack per-layer weights on a leading layer axis, fold
    1/sqrt(Dh) into W_q/b_q, gamma1 into W_o/b_o, gamma2 into W2/b2, split W_o
    per head, and pre-cast matmul weights to bfloat16 (biases / LN stay f32)."""
    D = D_MODEL
    Dh = D // N_HEADS
    scale = 1.0 / math.sqrt(Dh)
    layers = params["layers"]

    def stk(fn, dtype=jnp.float32):
        return jnp.stack([fn(lp) for lp in layers], axis=0).astype(dtype)

    ln1w = stk(lambda lp: lp["ln1_w"])
    ln1b = stk(lambda lp: lp["ln1_b"])
    wq = stk(lambda lp: lp["w_qkv"][:, :D] * scale, jnp.bfloat16)          # (L, D, D)
    bq = stk(lambda lp: lp["b_qkv"][:, :D] * scale)                         # (L, 1, D)
    wk = stk(lambda lp: lp["w_qkv"][:, D:2 * D], jnp.bfloat16)
    bk = stk(lambda lp: lp["b_qkv"][:, D:2 * D])
    wv = stk(lambda lp: lp["w_qkv"][:, 2 * D:], jnp.bfloat16)
    bv = stk(lambda lp: lp["b_qkv"][:, 2 * D:])
    wo = stk(lambda lp: (lp["w_o"] * lp["gamma1"]).reshape(N_HEADS, Dh, D),
             jnp.bfloat16)                                                  # (L, H, Dh, D)
    bo = stk(lambda lp: lp["b_o"] * lp["gamma1"])
    ln2w = stk(lambda lp: lp["ln2_w"])
    ln2b = stk(lambda lp: lp["ln2_b"])
    w1 = stk(lambda lp: lp["w1"], jnp.bfloat16)                             # (L, D, D_FF)
    b1 = stk(lambda lp: lp["b1"])
    w2 = stk(lambda lp: lp["w2"] * lp["gamma2"], jnp.bfloat16)              # (L, D_FF, D)
    b2 = stk(lambda lp: lp["b2"] * lp["gamma2"])
    return (ln1w, ln1b, wq, bq, wk, bk, wv, bv, wo, bo,
            ln2w, ln2b, w1, b1, w2, b2,
            params["norm_w"], params["norm_b"])


# ----------------------------- forward ---------------------------------------
def polymer_encoder_forward(src, params, folded):
    # src: (B, S) int32 token ids.
    B, S = src.shape
    # Embedding gather + sqrt(d) scale + sinusoidal positional encoding (JAX glue).
    x = params["embedding"][src] * math.sqrt(D_MODEL)
    x = x + params["pos_encoding"][:, :S, :]
    # dropout: identity in eval mode
    # TODO(synk): key_padding_mask path not implemented (forward called with mask=None).
    x_flat = x.reshape(B * S, D_MODEL).astype(jnp.float32)

    kernel = functools.partial(encoder_stack_kernel, seq_len=S)
    out_flat = pl.pallas_call(
        kernel,
        out_shape=jax.ShapeDtypeStruct((B * S, D_MODEL), jnp.float32),
        # no grid: single invocation, all operands/outputs as full VMEM blocks
    )(x_flat, *folded)
    return out_flat.reshape(B, S, D_MODEL)


if __name__ == "__main__":
    key = jax.random.PRNGKey(0)
    pkey, skey = jax.random.split(key)
    params = init_params(pkey)
    folded = fold_and_stack(params)
    src = jax.random.randint(skey, (BATCH, SEQ), 0, VOCAB_SIZE, dtype=jnp.int32)

    out = polymer_encoder_forward(src, params, folded)
    out = jax.block_until_ready(out)
    assert out.shape == (BATCH, SEQ, D_MODEL)
    assert jnp.all(jnp.isfinite(out))
    print("KERNEL_OK")
</pallas_src>

<mosaic_0001>
module attributes {stable_mosaic.version = 11 : i64} {
  func.func @encoder_stack_kernel(%arg0: memref<16x32xf32, #tpu.memory_space<vmem>>, %arg1: memref<2x1x32xf32, #tpu.memory_space<vmem>>, %arg2: memref<2x1x32xf32, #tpu.memory_space<vmem>>, %arg3: memref<2x32x32xbf16, #tpu.memory_space<vmem>>, %arg4: memref<2x1x32xf32, #tpu.memory_space<vmem>>, %arg5: memref<2x32x32xbf16, #tpu.memory_space<vmem>>, %arg6: memref<2x1x32xf32, #tpu.memory_space<vmem>>, %arg7: memref<2x32x32xbf16, #tpu.memory_space<vmem>>, %arg8: memref<2x1x32xf32, #tpu.memory_space<vmem>>, %arg9: memref<2x4x8x32xbf16, #tpu.memory_space<vmem>>, %arg10: memref<2x1x32xf32, #tpu.memory_space<vmem>>, %arg11: memref<2x1x32xf32, #tpu.memory_space<vmem>>, %arg12: memref<2x1x32xf32, #tpu.memory_space<vmem>>, %arg13: memref<2x32x64xbf16, #tpu.memory_space<vmem>>, %arg14: memref<2x1x64xf32, #tpu.memory_space<vmem>>, %arg15: memref<2x64x32xbf16, #tpu.memory_space<vmem>>, %arg16: memref<2x1x32xf32, #tpu.memory_space<vmem>>, %arg17: memref<1x32xf32, #tpu.memory_space<vmem>>, %arg18: memref<1x32xf32, #tpu.memory_space<vmem>>, %arg19: memref<16x32xf32, #tpu.memory_space<vmem>>) attributes {dimension_semantics = [], scalar_prefetch = 0 : i64, scratch_operands = 0 : i64, tpu.core_type = #tpu.core_type<tc>} {
    %c0 = arith.constant 0 : index
    %c0_0 = arith.constant 0 : index
    %0 = vector.load %arg0[%c0, %c0_0] : memref<16x32xf32, #tpu.memory_space<vmem>>, vector<16x32xf32>
    %c0_1 = arith.constant 0 : index
    %c0_2 = arith.constant 0 : index
    %c0_3 = arith.constant 0 : index
    %1 = vector.load %arg1[%c0_1, %c0_2, %c0_3] : memref<2x1x32xf32, #tpu.memory_space<vmem>>, vector<1x1x32xf32>
    %2 = vector.shape_cast %1 : vector<1x1x32xf32> to vector<1x32xf32>
    %c0_4 = arith.constant 0 : index
    %c0_5 = arith.constant 0 : index
    %c0_6 = arith.constant 0 : index
    %3 = vector.load %arg2[%c0_4, %c0_5, %c0_6] : memref<2x1x32xf32, #tpu.memory_space<vmem>>, vector<1x1x32xf32>
    %4 = vector.shape_cast %3 : vector<1x1x32xf32> to vector<1x32xf32>
    %cst = arith.constant dense<0.000000e+00> : vector<16xf32>
    %5 = vector.multi_reduction <add>, %0, %cst [1] : vector<16x32xf32> to vector<16xf32>
    %6 = vector.shape_cast %5 : vector<16xf32> to vector<16x1xf32>
    %cst_7 = arith.constant 3.200000e+01 : f32
    %7 = vector.broadcast %cst_7 : f32 to vector<16x1xf32>
    %8 = arith.divf %6, %7 : vector<16x1xf32>
    %9 = vector.broadcast %8 : vector<16x1xf32> to vector<16x32xf32>
    %10 = arith.subf %0, %9 : vector<16x32xf32>
    %11 = arith.mulf %10, %10 : vector<16x32xf32>
    %cst_8 = arith.constant dense<0.000000e+00> : vector<16xf32>
    %12 = vector.multi_reduction <add>, %11, %cst_8 [1] : vector<16x32xf32> to vector<16xf32>
    %13 = vector.shape_cast %12 : vector<16xf32> to vector<16x1xf32>
    %cst_9 = arith.constant 3.200000e+01 : f32
    %14 = vector.broadcast %cst_9 : f32 to vector<16x1xf32>
    %15 = arith.divf %13, %14 : vector<16x1xf32>
    %16 = vector.broadcast %8 : vector<16x1xf32> to vector<16x32xf32>
    %17 = arith.subf %0, %16 : vector<16x32xf32>
    %cst_10 = arith.constant 9.99999997E-7 : f32
    %18 = vector.broadcast %cst_10 : f32 to vector<16x1xf32>
    %19 = arith.addf %15, %18 : vector<16x1xf32>
    %20 = math.rsqrt %19 : vector<16x1xf32>
    %21 = vector.broadcast %20 : vector<16x1xf32> to vector<16x32xf32>
    %22 = arith.mulf %17, %21 : vector<16x32xf32>
    %23 = vector.broadcast %2 : vector<1x32xf32> to vector<16x32xf32>
    %24 = arith.mulf %22, %23 : vector<16x32xf32>
    %25 = vector.broadcast %4 : vector<1x32xf32> to vector<16x32xf32>
    %26 = arith.addf %24, %25 : vector<16x32xf32>
    %27 = arith.truncf %26 : vector<16x32xf32> to vector<16x32xbf16>
    %c0_11 = arith.constant 0 : index
    %c0_12 = arith.constant 0 : index
    %c0_13 = arith.constant 0 : index
    %28 = vector.load %arg3[%c0_11, %c0_12, %c0_13] : memref<2x32x32xbf16, #tpu.memory_space<vmem>>, vector<1x32x32xbf16>
    %29 = vector.shape_cast %28 : vector<1x32x32xbf16> to vector<32x32xbf16>
    %cst_14 = arith.constant dense<0.000000e+00> : vector<16x32xf32>
    %30 = tpu.matmul %27, %29, %cst_14 {dimension_numbers = #tpu.dot_dimension_numbers<[1], [0], [0], [1], [0, 0, 1, 1], [], []>} : vector<16x32xbf16>, vector<32x32xbf16>, vector<16x32xf32> -> vector<16x32xf32>
    %c0_15 = arith.constant 0 : index
    %c0_16 = arith.constant 0 : index
    %c0_17 = arith.constant 0 : index
    %31 = vector.load %arg4[%c0_15, %c0_16, %c0_17] : memref<2x1x32xf32, #tpu.memory_space<vmem>>, vector<1x1x32xf32>
    %32 = vector.shape_cast %31 : vector<1x1x32xf32> to vector<1x32xf32>
    %33 = vector.broadcast %32 : vector<1x32xf32> to vector<16x32xf32>
    %34 = arith.addf %30, %33 : vector<16x32xf32>
    %c0_18 = arith.constant 0 : index
    %c0_19 = arith.constant 0 : index
    %c0_20 = arith.constant 0 : index
    %35 = vector.load %arg5[%c0_18, %c0_19, %c0_20] : memref<2x32x32xbf16, #tpu.memory_space<vmem>>, vector<1x32x32xbf16>
    %36 = vector.shape_cast %35 : vector<1x32x32xbf16> to vector<32x32xbf16>
    %cst_21 = arith.constant dense<0.000000e+00> : vector<16x32xf32>
    %37 = tpu.matmul %27, %36, %cst_21 {dimension_numbers = #tpu.dot_dimension_numbers<[1], [0], [0], [1], [0, 0, 1, 1], [], []>} : vector<16x32xbf16>, vector<32x32xbf16>, vector<16x32xf32> -> vector<16x32xf32>
    %c0_22 = arith.constant 0 : index
    %c0_23 = arith.constant 0 : index
    %c0_24 = arith.constant 0 : index
    %38 = vector.load %arg6[%c0_22, %c0_23, %c0_24] : memref<2x1x32xf32, #tpu.memory_space<vmem>>, vector<1x1x32xf32>
    %39 = vector.shape_cast %38 : vector<1x1x32xf32> to vector<1x32xf32>
    %40 = vector.broadcast %39 : vector<1x32xf32> to vector<16x32xf32>
    %41 = arith.addf %37, %40 : vector<16x32xf32>
    %c0_25 = arith.constant 0 : index
    %c0_26 = arith.constant 0 : index
    %c0_27 = arith.constant 0 : index
    %42 = vector.load %arg7[%c0_25, %c0_26, %c0_27] : memref<2x32x32xbf16, #tpu.memory_space<vmem>>, vector<1x32x32xbf16>
    %43 = vector.shape_cast %42 : vector<1x32x32xbf16> to vector<32x32xbf16>
    %cst_28 = arith.constant dense<0.000000e+00> : vector<16x32xf32>
    %44 = tpu.matmul %27, %43, %cst_28 {dimension_numbers = #tpu.dot_dimension_numbers<[1], [0], [0], [1], [0, 0, 1, 1], [], []>} : vector<16x32xbf16>, vector<32x32xbf16>, vector<16x32xf32> -> vector<16x32xf32>
    %c0_29 = arith.constant 0 : index
    %c0_30 = arith.constant 0 : index
    %c0_31 = arith.constant 0 : index
    %45 = vector.load %arg8[%c0_29, %c0_30, %c0_31] : memref<2x1x32xf32, #tpu.memory_space<vmem>>, vector<1x1x32xf32>
    %46 = vector.shape_cast %45 : vector<1x1x32xf32> to vector<1x32xf32>
    %47 = vector.broadcast %46 : vector<1x32xf32> to vector<16x32xf32>
    %48 = arith.addf %44, %47 : vector<16x32xf32>
    %cst_32 = arith.constant 0.000000e+00 : f32
    %49 = vector.broadcast %cst_32 : f32 to vector<16x32xf32>
    %50 = vector.extract_strided_slice %34 {offsets = [0, 0], sizes = [16, 8], strides = [1, 1]} : vector<16x32xf32> to vector<16x8xf32>
    %51 = vector.shape_cast %50 : vector<16x8xf32> to vector<2x8x8xf32>
    %52 = arith.truncf %51 : vector<2x8x8xf32> to vector<2x8x8xbf16>
    %53 = vector.extract_strided_slice %41 {offsets = [0, 0], sizes = [16, 8], strides = [1, 1]} : vector<16x32xf32> to vector<16x8xf32>
    %54 = vector.shape_cast %53 : vector<16x8xf32> to vector<2x8x8xf32>
    %55 = arith.truncf %54 : vector<2x8x8xf32> to vector<2x8x8xbf16>
    %56 = vector.extract_strided_slice %48 {offsets = [0, 0], sizes = [16, 8], strides = [1, 1]} : vector<16x32xf32> to vector<16x8xf32>
    %57 = vector.shape_cast %56 : vector<16x8xf32> to vector<2x8x8xf32>
    %58 = arith.truncf %57 : vector<2x8x8xf32> to vector<2x8x8xbf16>
    "tpu.trace_start"() <{level = 10 : i32, message = "bqd,bkd->bqk"}> : () -> ()
    %cst_33 = arith.constant dense<0.000000e+00> : vector<2x8x8xf32>
    %59 = tpu.matmul %52, %55, %cst_33 {dimension_numbers = #tpu.dot_dimension_numbers<[2], [2], [1], [1], [0, 0, 0, 1, 1, 1], [0], [0]>} : vector<2x8x8xbf16>, vector<2x8x8xbf16>, vector<2x8x8xf32> -> vector<2x8x8xf32>
    "tpu.trace_stop"() : () -> ()
    %cst_34 = arith.constant dense<0xFF800000> : vector<2x8xf32>
    %60 = vector.multi_reduction <maximumf>, %59, %cst_34 [2] : vector<2x8x8xf32> to vector<2x8xf32>
    %61 = vector.shape_cast %60 : vector<2x8xf32> to vector<2x8x1xf32>
    %62 = vector.broadcast %61 : vector<2x8x1xf32> to vector<2x8x8xf32>
    %63 = arith.subf %59, %62 : vector<2x8x8xf32>
    %64 = math.exp %63 : vector<2x8x8xf32>
    %cst_35 = arith.constant dense<0.000000e+00> : vector<2x8xf32>
    %65 = vector.multi_reduction <add>, %64, %cst_35 [2] : vector<2x8x8xf32> to vector<2x8xf32>
    %66 = vector.shape_cast %65 : vector<2x8xf32> to vector<2x8x1xf32>
    %67 = tpu.reciprocal %66 {approx = true} : vector<2x8x1xf32> -> vector<2x8x1xf32>
    %68 = vector.broadcast %67 : vector<2x8x1xf32> to vector<2x8x8xf32>
    %69 = arith.mulf %64, %68 : vector<2x8x8xf32>
    %70 = arith.truncf %69 : vector<2x8x8xf32> to vector<2x8x8xbf16>
    "tpu.trace_start"() <{level = 10 : i32, message = "bqk,bkd->bqd"}> : () -> ()
    %cst_36 = arith.constant dense<0.000000e+00> : vector<2x8x8xf32>
    %71 = tpu.matmul %70, %58, %cst_36 {dimension_numbers = #tpu.dot_dimension_numbers<[2], [1], [1], [2], [0, 0, 0, 1, 1, 2], [0], [0]>} : vector<2x8x8xbf16>, vector<2x8x8xbf16>, vector<2x8x8xf32> -> vector<2x8x8xf32>
    "tpu.trace_stop"() : () -> ()
    %72 = vector.shape_cast %71 : vector<2x8x8xf32> to vector<16x8xf32>
    %73 = arith.truncf %72 : vector<16x8xf32> to vector<16x8xbf16>
    %c0_37 = arith.constant 0 : index
    %c0_38 = arith.constant 0 : index
    %c0_39 = arith.constant 0 : index
    %c0_40 = arith.constant 0 : index
    %74 = vector.load %arg9[%c0_37, %c0_38, %c0_39, %c0_40] : memref<2x4x8x32xbf16, #tpu.memory_space<vmem>>, vector<1x1x8x32xbf16>
    %75 = vector.shape_cast %74 : vector<1x1x8x32xbf16> to vector<8x32xbf16>
    %cst_41 = arith.constant dense<0.000000e+00> : vector<16x32xf32>
    %76 = tpu.matmul %73, %75, %cst_41 {dimension_numbers = #tpu.dot_dimension_numbers<[1], [0], [0], [1], [0, 0, 1, 1], [], []>} : vector<16x8xbf16>, vector<8x32xbf16>, vector<16x32xf32> -> vector<16x32xf32>
    %77 = arith.addf %49, %76 : vector<16x32xf32>
    %78 = vector.extract_strided_slice %34 {offsets = [0, 8], sizes = [16, 8], strides = [1, 1]} : vector<16x32xf32> to vector<16x8xf32>
    %79 = vector.shape_cast %78 : vector<16x8xf32> to vector<2x8x8xf32>
    %80 = arith.truncf %79 : vector<2x8x8xf32> to vector<2x8x8xbf16>
    %81 = vector.extract_strided_slice %41 {offsets = [0, 8], sizes = [16, 8], strides = [1, 1]} : vector<16x32xf32> to vector<16x8xf32>
    %82 = vector.shape_cast %81 : vector<16x8xf32> to vector<2x8x8xf32>
    %83 = arith.truncf %82 : vector<2x8x8xf32> to vector<2x8x8xbf16>
    %84 = vector.extract_strided_slice %48 {offsets = [0, 8], sizes = [16, 8], strides = [1, 1]} : vector<16x32xf32> to vector<16x8xf32>
    %85 = vector.shape_cast %84 : vector<16x8xf32> to vector<2x8x8xf32>
    %86 = arith.truncf %85 : vector<2x8x8xf32> to vector<2x8x8xbf16>
    "tpu.trace_start"() <{level = 10 : i32, message = "bqd,bkd->bqk"}> : () -> ()
    %cst_42 = arith.constant dense<0.000000e+00> : vector<2x8x8xf32>
    %87 = tpu.matmul %80, %83, %cst_42 {dimension_numbers = #tpu.dot_dimension_numbers<[2], [2], [1], [1], [0, 0, 0, 1, 1, 1], [0], [0]>} : vector<2x8x8xbf16>, vector<2x8x8xbf16>, vector<2x8x8xf32> -> vector<2x8x8xf32>
    "tpu.trace_stop"() : () -> ()
    %cst_43 = arith.constant dense<0xFF800000> : vector<2x8xf32>
    %88 = vector.multi_reduction <maximumf>, %87, %cst_43 [2] : vector<2x8x8xf32> to vector<2x8xf32>
    %89 = vector.shape_cast %88 : vector<2x8xf32> to vector<2x8x1xf32>
    %90 = vector.broadcast %89 : vector<2x8x1xf32> to vector<2x8x8xf32>
    %91 = arith.subf %87, %90 : vector<2x8x8xf32>
    %92 = math.exp %91 : vector<2x8x8xf32>
    %cst_44 = arith.constant dense<0.000000e+00> : vector<2x8xf32>
    %93 = vector.multi_reduction <add>, %92, %cst_44 [2] : vector<2x8x8xf32> to vector<2x8xf32>
    %94 = vector.shape_cast %93 : vector<2x8xf32> to vector<2x8x1xf32>
    %95 = tpu.reciprocal %94 {approx = true} : vector<2x8x1xf32> -> vector<2x8x1xf32>
    %96 = vector.broadcast %95 : vector<2x8x1xf32> to vector<2x8x8xf32>
    %97 = arith.mulf %92, %96 : vector<2x8x8xf32>
    %98 = arith.truncf %97 : vector<2x8x8xf32> to vector<2x8x8xbf16>
    "tpu.trace_start"() <{level = 10 : i32, message = "bqk,bkd->bqd"}> : () -> ()
    %cst_45 = arith.constant dense<0.000000e+00> : vector<2x8x8xf32>
    %99 = tpu.matmul %98, %86, %cst_45 {dimension_numbers = #tpu.dot_dimension_numbers<[2], [1], [1], [2], [0, 0, 0, 1, 1, 2], [0], [0]>} : vector<2x8x8xbf16>, vector<2x8x8xbf16>, vector<2x8x8xf32> -> vector<2x8x8xf32>
    "tpu.trace_stop"() : () -> ()
    %100 = vector.shape_cast %99 : vector<2x8x8xf32> to vector<16x8xf32>
    %101 = arith.truncf %100 : vector<16x8xf32> to vector<16x8xbf16>
    %c0_46 = arith.constant 0 : index
    %c1 = arith.constant 1 : index
    %c0_47 = arith.constant 0 : index
    %c0_48 = arith.constant 0 : index
    %102 = vector.load %arg9[%c0_46, %c1, %c0_47, %c0_48] : memref<2x4x8x32xbf16, #tpu.memory_space<vmem>>, vector<1x1x8x32xbf16>
    %103 = vector.shape_cast %102 : vector<1x1x8x32xbf16> to vector<8x32xbf16>
    %cst_49 = arith.constant dense<0.000000e+00> : vector<16x32xf32>
    %104 = tpu.matmul %101, %103, %cst_49 {dimension_numbers = #tpu.dot_dimension_numbers<[1], [0], [0], [1], [0, 0, 1, 1], [], []>} : vector<16x8xbf16>, vector<8x32xbf16>, vector<16x32xf32> -> vector<16x32xf32>
    %105 = arith.addf %77, %104 : vector<16x32xf32>
    %106 = vector.extract_strided_slice %34 {offsets = [0, 16], sizes = [16, 8], strides = [1, 1]} : vector<16x32xf32> to vector<16x8xf32>
    %107 = vector.shape_cast %106 : vector<16x8xf32> to vector<2x8x8xf32>
    %108 = arith.truncf %107 : vector<2x8x8xf32> to vector<2x8x8xbf16>
    %109 = vector.extract_strided_slice %41 {offsets = [0, 16], sizes = [16, 8], strides = [1, 1]} : vector<16x32xf32> to vector<16x8xf32>
    %110 = vector.shape_cast %109 : vector<16x8xf32> to vector<2x8x8xf32>
    %111 = arith.truncf %110 : vector<2x8x8xf32> to vector<2x8x8xbf16>
    %112 = vector.extract_strided_slice %48 {offsets = [0, 16], sizes = [16, 8], strides = [1, 1]} : vector<16x32xf32> to vector<16x8xf32>
    %113 = vector.shape_cast %112 : vector<16x8xf32> to vector<2x8x8xf32>
    %114 = arith.truncf %113 : vector<2x8x8xf32> to vector<2x8x8xbf16>
    "tpu.trace_start"() <{level = 10 : i32, message = "bqd,bkd->bqk"}> : () -> ()
    %cst_50 = arith.constant dense<0.000000e+00> : vector<2x8x8xf32>
    %115 = tpu.matmul %108, %111, %cst_50 {dimension_numbers = #tpu.dot_dimension_numbers<[2], [2], [1], [1], [0, 0, 0, 1, 1, 1], [0], [0]>} : vector<2x8x8xbf16>, vector<2x8x8xbf16>, vector<2x8x8xf32> -> vector<2x8x8xf32>
    "tpu.trace_stop"() : () -> ()
    %cst_51 = arith.constant dense<0xFF800000> : vector<2x8xf32>
    %116 = vector.multi_reduction <maximumf>, %115, %cst_51 [2] : vector<2x8x8xf32> to vector<2x8xf32>
    %117 = vector.shape_cast %116 : vector<2x8xf32> to vector<2x8x1xf32>
    %118 = vector.broadcast %117 : vector<2x8x1xf32> to vector<2x8x8xf32>
    %119 = arith.subf %115, %118 : vector<2x8x8xf32>
    %120 = math.exp %119 : vector<2x8x8xf32>
    %cst_52 = arith.constant dense<0.000000e+00> : vector<2x8xf32>
    %121 = vector.multi_reduction <add>, %120, %cst_52 [2] : vector<2x8x8xf32> to vector<2x8xf32>
    %122 = vector.shape_cast %121 : vector<2x8xf32> to vector<2x8x1xf32>
    %123 = tpu.reciprocal %122 {approx = true} : vector<2x8x1xf32> -> vector<2x8x1xf32>
    %124 = vector.broadcast %123 : vector<2x8x1xf32> to vector<2x8x8xf32>
    %125 = arith.mulf %120, %124 : vector<2x8x8xf32>
    %126 = arith.truncf %125 : vector<2x8x8xf32> to vector<2x8x8xbf16>
    "tpu.trace_start"() <{level = 10 : i32, message = "bqk,bkd->bqd"}> : () -> ()
    %cst_53 = arith.constant dense<0.000000e+00> : vector<2x8x8xf32>
    %127 = tpu.matmul %126, %114, %cst_53 {dimension_numbers = #tpu.dot_dimension_numbers<[2], [1], [1], [2], [0, 0, 0, 1, 1, 2], [0], [0]>} : vector<2x8x8xbf16>, vector<2x8x8xbf16>, vector<2x8x8xf32> -> vector<2x8x8xf32>
    "tpu.trace_stop"() : () -> ()
    %128 = vector.shape_cast %127 : vector<2x8x8xf32> to vector<16x8xf32>
    %129 = arith.truncf %128 : vector<16x8xf32> to vector<16x8xbf16>
    %c0_54 = arith.constant 0 : index
    %c2 = arith.constant 2 : index
    %c0_55 = arith.constant 0 : index
    %c0_56 = arith.constant 0 : index
    %130 = vector.load %arg9[%c0_54, %c2, %c0_55, %c0_56] : memref<2x4x8x32xbf16, #tpu.memory_space<vmem>>, vector<1x1x8x32xbf16>
    %131 = vector.shape_cast %130 : vector<1x1x8x32xbf16> to vector<8x32xbf16>
    %cst_57 = arith.constant dense<0.000000e+00> : vector<16x32xf32>
    %132 = tpu.matmul %129, %131, %cst_57 {dimension_numbers = #tpu.dot_dimension_numbers<[1], [0], [0], [1], [0, 0, 1, 1], [], []>} : vector<16x8xbf16>, vector<8x32xbf16>, vector<16x32xf32> -> vector<16x32xf32>
    %133 = arith.addf %105, %132 : vector<16x32xf32>
    %134 = vector.extract_strided_slice %34 {offsets = [0, 24], sizes = [16, 8], strides = [1, 1]} : vector<16x32xf32> to vector<16x8xf32>
    %135 = vector.shape_cast %134 : vector<16x8xf32> to vector<2x8x8xf32>
    %136 = arith.truncf %135 : vector<2x8x8xf32> to vector<2x8x8xbf16>
    %137 = vector.extract_strided_slice %41 {offsets = [0, 24], sizes = [16, 8], strides = [1, 1]} : vector<16x32xf32> to vector<16x8xf32>
    %138 = vector.shape_cast %137 : vector<16x8xf32> to vector<2x8x8xf32>
    %139 = arith.truncf %138 : vector<2x8x8xf32> to vector<2x8x8xbf16>
    %140 = vector.extract_strided_slice %48 {offsets = [0, 24], sizes = [16, 8], strides = [1, 1]} : vector<16x32xf32> to vector<16x8xf32>
    %141 = vector.shape_cast %140 : vector<16x8xf32> to vector<2x8x8xf32>
    %142 = arith.truncf %141 : vector<2x8x8xf32> to vector<2x8x8xbf16>
    "tpu.trace_start"() <{level = 10 : i32, message = "bqd,bkd->bqk"}> : () -> ()
    %cst_58 = arith.constant dense<0.000000e+00> : vector<2x8x8xf32>
    %143 = tpu.matmul %136, %139, %cst_58 {dimension_numbers = #tpu.dot_dimension_numbers<[2], [2], [1], [1], [0, 0, 0, 1, 1, 1], [0], [0]>} : vector<2x8x8xbf16>, vector<2x8x8xbf16>, vector<2x8x8xf32> -> vector<2x8x8xf32>
    "tpu.trace_stop"() : () -> ()
    %cst_59 = arith.constant dense<0xFF800000> : vector<2x8xf32>
    %144 = vector.multi_reduction <maximumf>, %143, %cst_59 [2] : vector<2x8x8xf32> to vector<2x8xf32>
    %145 = vector.shape_cast %144 : vector<2x8xf32> to vector<2x8x1xf32>
    %146 = vector.broadcast %145 : vector<2x8x1xf32> to vector<2x8x8xf32>
    %147 = arith.subf %143, %146 : vector<2x8x8xf32>
    %148 = math.exp %147 : vector<2x8x8xf32>
    %cst_60 = arith.constant dense<0.000000e+00> : vector<2x8xf32>
    %149 = vector.multi_reduction <add>, %148, %cst_60 [2] : vector<2x8x8xf32> to vector<2x8xf32>
    %150 = vector.shape_cast %149 : vector<2x8xf32> to vector<2x8x1xf32>
    %151 = tpu.reciprocal %150 {approx = true} : vector<2x8x1xf32> -> vector<2x8x1xf32>
    %152 = vector.broadcast %151 : vector<2x8x1xf32> to vector<2x8x8xf32>
    %153 = arith.mulf %148, %152 : vector<2x8x8xf32>
    %154 = arith.truncf %153 : vector<2x8x8xf32> to vector<2x8x8xbf16>
    "tpu.trace_start"() <{level = 10 : i32, message = "bqk,bkd->bqd"}> : () -> ()
    %cst_61 = arith.constant dense<0.000000e+00> : vector<2x8x8xf32>
    %155 = tpu.matmul %154, %142, %cst_61 {dimension_numbers = #tpu.dot_dimension_numbers<[2], [1], [1], [2], [0, 0, 0, 1, 1, 2], [0], [0]>} : vector<2x8x8xbf16>, vector<2x8x8xbf16>, vector<2x8x8xf32> -> vector<2x8x8xf32>
    "tpu.trace_stop"() : () -> ()
    %156 = vector.shape_cast %155 : vector<2x8x8xf32> to vector<16x8xf32>
    %157 = arith.truncf %156 : vector<16x8xf32> to vector<16x8xbf16>
    %c0_62 = arith.constant 0 : index
    %c3 = arith.constant 3 : index
    %c0_63 = arith.constant 0 : index
    %c0_64 = arith.constant 0 : index
    %158 = vector.load %arg9[%c0_62, %c3, %c0_63, %c0_64] : memref<2x4x8x32xbf16, #tpu.memory_space<vmem>>, vector<1x1x8x32xbf16>
    %159 = vector.shape_cast %158 : vector<1x1x8x32xbf16> to vector<8x32xbf16>
    %cst_65 = arith.constant dense<0.000000e+00> : vector<16x32xf32>
    %160 = tpu.matmul %157, %159, %cst_65 {dimension_numbers = #tpu.dot_dimension_numbers<[1], [0], [0], [1], [0, 0, 1, 1], [], []>} : vector<16x8xbf16>, vector<8x32xbf16>, vector<16x32xf32> -> vector<16x32xf32>
    %161 = arith.addf %133, %160 : vector<16x32xf32>
    %162 = arith.addf %0, %161 : vector<16x32xf32>
    %c0_66 = arith.constant 0 : index
    %c0_67 = arith.constant 0 : index
    %c0_68 = arith.constant 0 : index
    %163 = vector.load %arg10[%c0_66, %c0_67, %c0_68] : memref<2x1x32xf32, #tpu.memory_space<vmem>>, vector<1x1x32xf32>
    %164 = vector.shape_cast %163 : vector<1x1x32xf32> to vector<1x32xf32>
    %165 = vector.broadcast %164 : vector<1x32xf32> to vector<16x32xf32>
    %166 = arith.addf %162, %165 : vector<16x32xf32>
    %c0_69 = arith.constant 0 : index
    %c0_70 = arith.constant 0 : index
    %c0_71 = arith.constant 0 : index
    %167 = vector.load %arg11[%c0_69, %c0_70, %c0_71] : memref<2x1x32xf32, #tpu.memory_space<vmem>>, vector<1x1x32xf32>
    %168 = vector.shape_cast %167 : vector<1x1x32xf32> to vector<1x32xf32>
    %c0_72 = arith.constant 0 : index
    %c0_73 = arith.constant 0 : index
    %c0_74 = arith.constant 0 : index
    %169 = vector.load %arg12[%c0_72, %c0_73, %c0_74] : memref<2x1x32xf32, #tpu.memory_space<vmem>>, vector<1x1x32xf32>
    %170 = vector.shape_cast %169 : vector<1x1x32xf32> to vector<1x32xf32>
    %cst_75 = arith.constant dense<0.000000e+00> : vector<16xf32>
    %171 = vector.multi_reduction <add>, %166, %cst_75 [1] : vector<16x32xf32> to vector<16xf32>
    %172 = vector.shape_cast %171 : vector<16xf32> to vector<16x1xf32>
    %cst_76 = arith.constant 3.200000e+01 : f32
    %173 = vector.broadcast %cst_76 : f32 to vector<16x1xf32>
    %174 = arith.divf %172, %173 : vector<16x1xf32>
    %175 = vector.broadcast %174 : vector<16x1xf32> to vector<16x32xf32>
    %176 = arith.subf %166, %175 : vector<16x32xf32>
    %177 = arith.mulf %176, %176 : vector<16x32xf32>
    %cst_77 = arith.constant dense<0.000000e+00> : vector<16xf32>
    %178 = vector.multi_reduction <add>, %177, %cst_77 [1] : vector<16x32xf32> to vector<16xf32>
    %179 = vector.shape_cast %178 : vector<16xf32> to vector<16x1xf32>
    %cst_78 = arith.constant 3.200000e+01 : f32
    %180 = vector.broadcast %cst_78 : f32 to vector<16x1xf32>
    %181 = arith.divf %179, %180 : vector<16x1xf32>
    %182 = vector.broadcast %174 : vector<16x1xf32> to vector<16x32xf32>
    %183 = arith.subf %166, %182 : vector<16x32xf32>
    %cst_79 = arith.constant 9.99999997E-7 : f32
    %184 = vector.broadcast %cst_79 : f32 to vector<16x1xf32>
    %185 = arith.addf %181, %184 : vector<16x1xf32>
    %186 = math.rsqrt %185 : vector<16x1xf32>
    %187 = vector.broadcast %186 : vector<16x1xf32> to vector<16x32xf32>
    %188 = arith.mulf %183, %187 : vector<16x32xf32>
    %189 = vector.broadcast %168 : vector<1x32xf32> to vector<16x32xf32>
    %190 = arith.mulf %188, %189 : vector<16x32xf32>
    %191 = vector.broadcast %170 : vector<1x32xf32> to vector<16x32xf32>
    %192 = arith.addf %190, %191 : vector<16x32xf32>
    %193 = arith.truncf %192 : vector<16x32xf32> to vector<16x32xbf16>
    %c0_80 = arith.constant 0 : index
    %c0_81 = arith.constant 0 : index
    %c0_82 = arith.constant 0 : index
    %194 = vector.load %arg13[%c0_80, %c0_81, %c0_82] : memref<2x32x64xbf16, #tpu.memory_space<vmem>>, vector<1x32x64xbf16>
    %195 = vector.shape_cast %194 : vector<1x32x64xbf16> to vector<32x64xbf16>
    %cst_83 = arith.constant dense<0.000000e+00> : vector<16x64xf32>
    %196 = tpu.matmul %193, %195, %cst_83 {dimension_numbers = #tpu.dot_dimension_numbers<[1], [0], [0], [1], [0, 0, 1, 1], [], []>} : vector<16x32xbf16>, vector<32x64xbf16>, vector<16x64xf32> -> vector<16x64xf32>
    %c0_84 = arith.constant 0 : index
    %c0_85 = arith.constant 0 : index
    %c0_86 = arith.constant 0 : index
    %197 = vector.load %arg14[%c0_84, %c0_85, %c0_86] : memref<2x1x64xf32, #tpu.memory_space<vmem>>, vector<1x1x64xf32>
    %198 = vector.shape_cast %197 : vector<1x1x64xf32> to vector<1x64xf32>
    %199 = vector.broadcast %198 : vector<1x64xf32> to vector<16x64xf32>
    %200 = arith.addf %196, %199 : vector<16x64xf32>
    %cst_87 = arith.constant 5.000000e-01 : f32
    %201 = vector.broadcast %cst_87 : f32 to vector<16x64xf32>
    %202 = arith.mulf %201, %200 : vector<16x64xf32>
    %cst_88 = arith.constant 0.707106769 : f32
    %203 = vector.broadcast %cst_88 : f32 to vector<16x64xf32>
    %204 = arith.mulf %200, %203 : vector<16x64xf32>
    %cst_89 = arith.constant 0.000000e+00 : f32
    %205 = vector.broadcast %cst_89 : f32 to vector<16x64xf32>
    %206 = arith.cmpf oge, %204, %205 : vector<16x64xf32>
    %cst_90 = arith.constant 1.000000e+00 : f32
    %cst_91 = arith.constant -1.000000e+00 : f32
    %207 = vector.broadcast %cst_90 : f32 to vector<16x64xf32>
    %208 = vector.broadcast %cst_91 : f32 to vector<16x64xf32>
    %209 = arith.select %206, %207, %208 : vector<16x64xi1>, vector<16x64xf32>
    %210 = math.absf %204 : vector<16x64xf32>
    %cst_92 = arith.constant 0.327591091 : f32
    %211 = vector.broadcast %cst_92 : f32 to vector<16x64xf32>
    %212 = arith.mulf %211, %210 : vector<16x64xf32>
    %cst_93 = arith.constant 1.000000e+00 : f32
    %213 = vector.broadcast %cst_93 : f32 to vector<16x64xf32>
    %214 = arith.addf %213, %212 : vector<16x64xf32>
    %cst_94 = arith.constant 1.000000e+00 : f32
    %215 = vector.broadcast %cst_94 : f32 to vector<16x64xf32>
    %216 = arith.divf %215, %214 : vector<16x64xf32>
    %cst_95 = arith.constant 1.06140542 : f32
    %217 = vector.broadcast %cst_95 : f32 to vector<16x64xf32>
    %218 = arith.mulf %217, %216 : vector<16x64xf32>
    %cst_96 = arith.constant -1.45315206 : f32
    %219 = vector.broadcast %cst_96 : f32 to vector<16x64xf32>
    %220 = arith.addf %218, %219 : vector<16x64xf32>
    %221 = arith.mulf %220, %216 : vector<16x64xf32>
    %cst_97 = arith.constant 1.42141378 : f32
    %222 = vector.broadcast %cst_97 : f32 to vector<16x64xf32>
    %223 = arith.addf %221, %222 : vector<16x64xf32>
    %224 = arith.mulf %223, %216 : vector<16x64xf32>
    %cst_98 = arith.constant -0.284496725 : f32
    %225 = vector.broadcast %cst_98 : f32 to vector<16x64xf32>
    %226 = arith.addf %224, %225 : vector<16x64xf32>
    %227 = arith.mulf %226, %216 : vector<16x64xf32>
    %cst_99 = arith.constant 0.254829586 : f32
    %228 = vector.broadcast %cst_99 : f32 to vector<16x64xf32>
    %229 = arith.addf %227, %228 : vector<16x64xf32>
    %230 = arith.mulf %229, %216 : vector<16x64xf32>
    %cst_100 = arith.constant 0.000000e+00 : f32
    %231 = vector.broadcast %cst_100 : f32 to vector<16x64xf32>
    %232 = arith.subf %231, %210 : vector<16x64xf32>
    %233 = arith.mulf %232, %210 : vector<16x64xf32>
    %234 = math.exp %233 : vector<16x64xf32>
    %235 = arith.mulf %230, %234 : vector<16x64xf32>
    %cst_101 = arith.constant 1.000000e+00 : f32
    %236 = vector.broadcast %cst_101 : f32 to vector<16x64xf32>
    %237 = arith.subf %236, %235 : vector<16x64xf32>
    %238 = arith.mulf %209, %237 : vector<16x64xf32>
    %cst_102 = arith.constant 1.000000e+00 : f32
    %239 = vector.broadcast %cst_102 : f32 to vector<16x64xf32>
    %240 = arith.addf %239, %238 : vector<16x64xf32>
    %241 = arith.mulf %202, %240 : vector<16x64xf32>
    %242 = arith.truncf %241 : vector<16x64xf32> to vector<16x64xbf16>
    %c0_103 = arith.constant 0 : index
    %c0_104 = arith.constant 0 : index
    %c0_105 = arith.constant 0 : index
    %243 = vector.load %arg15[%c0_103, %c0_104, %c0_105] : memref<2x64x32xbf16, #tpu.memory_space<vmem>>, vector<1x64x32xbf16>
    %244 = vector.shape_cast %243 : vector<1x64x32xbf16> to vector<64x32xbf16>
    %cst_106 = arith.constant dense<0.000000e+00> : vector<16x32xf32>
    %245 = tpu.matmul %242, %244, %cst_106 {dimension_numbers = #tpu.dot_dimension_numbers<[1], [0], [0], [1], [0, 0, 1, 1], [], []>} : vector<16x64xbf16>, vector<64x32xbf16>, vector<16x32xf32> -> vector<16x32xf32>
    %246 = arith.addf %166, %245 : vector<16x32xf32>
    %c0_107 = arith.constant 0 : index
    %c0_108 = arith.constant 0 : index
    %c0_109 = arith.constant 0 : index
    %247 = vector.load %arg16[%c0_107, %c0_108, %c0_109] : memref<2x1x32xf32, #tpu.memory_space<vmem>>, vector<1x1x32xf32>
    %248 = vector.shape_cast %247 : vector<1x1x32xf32> to vector<1x32xf32>
    %249 = vector.broadcast %248 : vector<1x32xf32> to vector<16x32xf32>
    %250 = arith.addf %246, %249 : vector<16x32xf32>
    %c1_110 = arith.constant 1 : index
    %c0_111 = arith.constant 0 : index
    %c0_112 = arith.constant 0 : index
    %251 = vector.load %arg1[%c1_110, %c0_111, %c0_112] : memref<2x1x32xf32, #tpu.memory_space<vmem>>, vector<1x1x32xf32>
    %252 = vector.shape_cast %251 : vector<1x1x32xf32> to vector<1x32xf32>
    %c1_113 = arith.constant 1 : index
    %c0_114 = arith.constant 0 : index
    %c0_115 = arith.constant 0 : index
    %253 = vector.load %arg2[%c1_113, %c0_114, %c0_115] : memref<2x1x32xf32, #tpu.memory_space<vmem>>, vector<1x1x32xf32>
    %254 = vector.shape_cast %253 : vector<1x1x32xf32> to vector<1x32xf32>
    %cst_116 = arith.constant dense<0.000000e+00> : vector<16xf32>
    %255 = vector.multi_reduction <add>, %250, %cst_116 [1] : vector<16x32xf32> to vector<16xf32>
    %256 = vector.shape_cast %255 : vector<16xf32> to vector<16x1xf32>
    %cst_117 = arith.constant 3.200000e+01 : f32
    %257 = vector.broadcast %cst_117 : f32 to vector<16x1xf32>
    %258 = arith.divf %256, %257 : vector<16x1xf32>
    %259 = vector.broadcast %258 : vector<16x1xf32> to vector<16x32xf32>
    %260 = arith.subf %250, %259 : vector<16x32xf32>
    %261 = arith.mulf %260, %260 : vector<16x32xf32>
    %cst_118 = arith.constant dense<0.000000e+00> : vector<16xf32>
    %262 = vector.multi_reduction <add>, %261, %cst_118 [1] : vector<16x32xf32> to vector<16xf32>
    %263 = vector.shape_cast %262 : vector<16xf32> to vector<16x1xf32>
    %cst_119 = arith.constant 3.200000e+01 : f32
    %264 = vector.broadcast %cst_119 : f32 to vector<16x1xf32>
    %265 = arith.divf %263, %264 : vector<16x1xf32>
    %266 = vector.broadcast %258 : vector<16x1xf32> to vector<16x32xf32>
    %267 = arith.subf %250, %266 : vector<16x32xf32>
    %cst_120 = arith.constant 9.99999997E-7 : f32
    %268 = vector.broadcast %cst_120 : f32 to vector<16x1xf32>
    %269 = arith.addf %265, %268 : vector<16x1xf32>
    %270 = math.rsqrt %269 : vector<16x1xf32>
    %271 = vector.broadcast %270 : vector<16x1xf32> to vector<16x32xf32>
    %272 = arith.mulf %267, %271 : vector<16x32xf32>
    %273 = vector.broadcast %252 : vector<1x32xf32> to vector<16x32xf32>
    %274 = arith.mulf %272, %273 : vector<16x32xf32>
    %275 = vector.broadcast %254 : vector<1x32xf32> to vector<16x32xf32>
    %276 = arith.addf %274, %275 : vector<16x32xf32>
    %277 = arith.truncf %276 : vector<16x32xf32> to vector<16x32xbf16>
    %c1_121 = arith.constant 1 : index
    %c0_122 = arith.constant 0 : index
    %c0_123 = arith.constant 0 : index
    %278 = vector.load %arg3[%c1_121, %c0_122, %c0_123] : memref<2x32x32xbf16, #tpu.memory_space<vmem>>, vector<1x32x32xbf16>
    %279 = vector.shape_cast %278 : vector<1x32x32xbf16> to vector<32x32xbf16>
    %cst_124 = arith.constant dense<0.000000e+00> : vector<16x32xf32>
    %280 = tpu.matmul %277, %279, %cst_124 {dimension_numbers = #tpu.dot_dimension_numbers<[1], [0], [0], [1], [0, 0, 1, 1], [], []>} : vector<16x32xbf16>, vector<32x32xbf16>, vector<16x32xf32> -> vector<16x32xf32>
    %c1_125 = arith.constant 1 : index
    %c0_126 = arith.constant 0 : index
    %c0_127 = arith.constant 0 : index
    %281 = vector.load %arg4[%c1_125, %c0_126, %c0_127] : memref<2x1x32xf32, #tpu.memory_space<vmem>>, vector<1x1x32xf32>
    %282 = vector.shape_cast %281 : vector<1x1x32xf32> to vector<1x32xf32>
    %283 = vector.broadcast %282 : vector<1x32xf32> to vector<16x32xf32>
    %284 = arith.addf %280, %283 : vector<16x32xf32>
    %c1_128 = arith.constant 1 : index
    %c0_129 = arith.constant 0 : index
    %c0_130 = arith.constant 0 : index
    %285 = vector.load %arg5[%c1_128, %c0_129, %c0_130] : memref<2x32x32xbf16, #tpu.memory_space<vmem>>, vector<1x32x32xbf16>
    %286 = vector.shape_cast %285 : vector<1x32x32xbf16> to vector<32x32xbf16>
    %cst_131 = arith.constant dense<0.000000e+00> : vector<16x32xf32>
    %287 = tpu.matmul %277, %286, %cst_131 {dimension_numbers = #tpu.dot_dimension_numbers<[1], [0], [0], [1], [0, 0, 1, 1], [], []>} : vector<16x32xbf16>, vector<32x32xbf16>, vector<16x32xf32> -> vector<16x32xf32>
    %c1_132 = arith.constant 1 : index
    %c0_133 = arith.constant 0 : index
    %c0_134 = arith.constant 0 : index
    %288 = vector.load %arg6[%c1_132, %c0_133, %c0_134] : memref<2x1x32xf32, #tpu.memory_space<vmem>>, vector<1x1x32xf32>
    %289 = vector.shape_cast %288 : vector<1x1x32xf32> to vector<1x32xf32>
    %290 = vector.broadcast %289 : vector<1x32xf32> to vector<16x32xf32>
    %291 = arith.addf %287, %290 : vector<16x32xf32>
    %c1_135 = arith.constant 1 : index
    %c0_136 = arith.constant 0 : index
    %c0_137 = arith.constant 0 : index
    %292 = vector.load %arg7[%c1_135, %c0_136, %c0_137] : memref<2x32x32xbf16, #tpu.memory_space<vmem>>, vector<1x32x32xbf16>
    %293 = vector.shape_cast %292 : vector<1x32x32xbf16> to vector<32x32xbf16>
    %cst_138 = arith.constant dense<0.000000e+00> : vector<16x32xf32>
    %294 = tpu.matmul %277, %293, %cst_138 {dimension_numbers = #tpu.dot_dimension_numbers<[1], [0], [0], [1], [0, 0, 1, 1], [], []>} : vector<16x32xbf16>, vector<32x32xbf16>, vector<16x32xf32> -> vector<16x32xf32>
    %c1_139 = arith.constant 1 : index
    %c0_140 = arith.constant 0 : index
    %c0_141 = arith.constant 0 : index
    %295 = vector.load %arg8[%c1_139, %c0_140, %c0_141] : memref<2x1x32xf32, #tpu.memory_space<vmem>>, vector<1x1x32xf32>
    %296 = vector.shape_cast %295 : vector<1x1x32xf32> to vector<1x32xf32>
    %297 = vector.broadcast %296 : vector<1x32xf32> to vector<16x32xf32>
    %298 = arith.addf %294, %297 : vector<16x32xf32>
    %cst_142 = arith.constant 0.000000e+00 : f32
    %299 = vector.broadcast %cst_142 : f32 to vector<16x32xf32>
    %300 = vector.extract_strided_slice %284 {offsets = [0, 0], sizes = [16, 8], strides = [1, 1]} : vector<16x32xf32> to vector<16x8xf32>
    %301 = vector.shape_cast %300 : vector<16x8xf32> to vector<2x8x8xf32>
    %302 = arith.truncf %301 : vector<2x8x8xf32> to vector<2x8x8xbf16>
    %303 = vector.extract_strided_slice %291 {offsets = [0, 0], sizes = [16, 8], strides = [1, 1]} : vector<16x32xf32> to vector<16x8xf32>
    %304 = vector.shape_cast %303 : vector<16x8xf32> to vector<2x8x8xf32>
    %305 = arith.truncf %304 : vector<2x8x8xf32> to vector<2x8x8xbf16>
    %306 = vector.extract_strided_slice %298 {offsets = [0, 0], sizes = [16, 8], strides = [1, 1]} : vector<16x32xf32> to vector<16x8xf32>
    %307 = vector.shape_cast %306 : vector<16x8xf32> to vector<2x8x8xf32>
    %308 = arith.truncf %307 : vector<2x8x8xf32> to vector<2x8x8xbf16>
    "tpu.trace_start"() <{level = 10 : i32, message = "bqd,bkd->bqk"}> : () -> ()
    %cst_143 = arith.constant dense<0.000000e+00> : vector<2x8x8xf32>
    %309 = tpu.matmul %302, %305, %cst_143 {dimension_numbers = #tpu.dot_dimension_numbers<[2], [2], [1], [1], [0, 0, 0, 1, 1, 1], [0], [0]>} : vector<2x8x8xbf16>, vector<2x8x8xbf16>, vector<2x8x8xf32> -> vector<2x8x8xf32>
    "tpu.trace_stop"() : () -> ()
    %cst_144 = arith.constant dense<0xFF800000> : vector<2x8xf32>
    %310 = vector.multi_reduction <maximumf>, %309, %cst_144 [2] : vector<2x8x8xf32> to vector<2x8xf32>
    %311 = vector.shape_cast %310 : vector<2x8xf32> to vector<2x8x1xf32>
    %312 = vector.broadcast %311 : vector<2x8x1xf32> to vector<2x8x8xf32>
    %313 = arith.subf %309, %312 : vector<2x8x8xf32>
    %314 = math.exp %313 : vector<2x8x8xf32>
    %cst_145 = arith.constant dense<0.000000e+00> : vector<2x8xf32>
    %315 = vector.multi_reduction <add>, %314, %cst_145 [2] : vector<2x8x8xf32> to vector<2x8xf32>
    %316 = vector.shape_cast %315 : vector<2x8xf32> to vector<2x8x1xf32>
    %317 = tpu.reciprocal %316 {approx = true} : vector<2x8x1xf32> -> vector<2x8x1xf32>
    %318 = vector.broadcast %317 : vector<2x8x1xf32> to vector<2x8x8xf32>
    %319 = arith.mulf %314, %318 : vector<2x8x8xf32>
    %320 = arith.truncf %319 : vector<2x8x8xf32> to vector<2x8x8xbf16>
    "tpu.trace_start"() <{level = 10 : i32, message = "bqk,bkd->bqd"}> : () -> ()
    %cst_146 = arith.constant dense<0.000000e+00> : vector<2x8x8xf32>
    %321 = tpu.matmul %320, %308, %cst_146 {dimension_numbers = #tpu.dot_dimension_numbers<[2], [1], [1], [2], [0, 0, 0, 1, 1, 2], [0], [0]>} : vector<2x8x8xbf16>, vector<2x8x8xbf16>, vector<2x8x8xf32> -> vector<2x8x8xf32>
    "tpu.trace_stop"() : () -> ()
    %322 = vector.shape_cast %321 : vector<2x8x8xf32> to vector<16x8xf32>
    %323 = arith.truncf %322 : vector<16x8xf32> to vector<16x8xbf16>
    %c1_147 = arith.constant 1 : index
    %c0_148 = arith.constant 0 : index
    %c0_149 = arith.constant 0 : index
    %c0_150 = arith.constant 0 : index
    %324 = vector.load %arg9[%c1_147, %c0_148, %c0_149, %c0_150] : memref<2x4x8x32xbf16, #tpu.memory_space<vmem>>, vector<1x1x8x32xbf16>
    %325 = vector.shape_cast %324 : vector<1x1x8x32xbf16> to vector<8x32xbf16>
    %cst_151 = arith.constant dense<0.000000e+00> : vector<16x32xf32>
    %326 = tpu.matmul %323, %325, %cst_151 {dimension_numbers = #tpu.dot_dimension_numbers<[1], [0], [0], [1], [0, 0, 1, 1], [], []>} : vector<16x8xbf16>, vector<8x32xbf16>, vector<16x32xf32> -> vector<16x32xf32>
    %327 = arith.addf %299, %326 : vector<16x32xf32>
    %328 = vector.extract_strided_slice %284 {offsets = [0, 8], sizes = [16, 8], strides = [1, 1]} : vector<16x32xf32> to vector<16x8xf32>
    %329 = vector.shape_cast %328 : vector<16x8xf32> to vector<2x8x8xf32>
    %330 = arith.truncf %329 : vector<2x8x8xf32> to vector<2x8x8xbf16>
    %331 = vector.extract_strided_slice %291 {offsets = [0, 8], sizes = [16, 8], strides = [1, 1]} : vector<16x32xf32> to vector<16x8xf32>
    %332 = vector.shape_cast %331 : vector<16x8xf32> to vector<2x8x8xf32>
    %333 = arith.truncf %332 : vector<2x8x8xf32> to vector<2x8x8xbf16>
    %334 = vector.extract_strided_slice %298 {offsets = [0, 8], sizes = [16, 8], strides = [1, 1]} : vector<16x32xf32> to vector<16x8xf32>
    %335 = vector.shape_cast %334 : vector<16x8xf32> to vector<2x8x8xf32>
    %336 = arith.truncf %335 : vector<2x8x8xf32> to vector<2x8x8xbf16>
    "tpu.trace_start"() <{level = 10 : i32, message = "bqd,bkd->bqk"}> : () -> ()
    %cst_152 = arith.constant dense<0.000000e+00> : vector<2x8x8xf32>
    %337 = tpu.matmul %330, %333, %cst_152 {dimension_numbers = #tpu.dot_dimension_numbers<[2], [2], [1], [1], [0, 0, 0, 1, 1, 1], [0], [0]>} : vector<2x8x8xbf16>, vector<2x8x8xbf16>, vector<2x8x8xf32> -> vector<2x8x8xf32>
    "tpu.trace_stop"() : () -> ()
    %cst_153 = arith.constant dense<0xFF800000> : vector<2x8xf32>
    %338 = vector.multi_reduction <maximumf>, %337, %cst_153 [2] : vector<2x8x8xf32> to vector<2x8xf32>
    %339 = vector.shape_cast %338 : vector<2x8xf32> to vector<2x8x1xf32>
    %340 = vector.broadcast %339 : vector<2x8x1xf32> to vector<2x8x8xf32>
    %341 = arith.subf %337, %340 : vector<2x8x8xf32>
    %342 = math.exp %341 : vector<2x8x8xf32>
    %cst_154 = arith.constant dense<0.000000e+00> : vector<2x8xf32>
    %343 = vector.multi_reduction <add>, %342, %cst_154 [2] : vector<2x8x8xf32> to vector<2x8xf32>
    %344 = vector.shape_cast %343 : vector<2x8xf32> to vector<2x8x1xf32>
    %345 = tpu.reciprocal %344 {approx = true} : vector<2x8x1xf32> -> vector<2x8x1xf32>
    %346 = vector.broadcast %345 : vector<2x8x1xf32> to vector<2x8x8xf32>
    %347 = arith.mulf %342, %346 : vector<2x8x8xf32>
    %348 = arith.truncf %347 : vector<2x8x8xf32> to vector<2x8x8xbf16>
    "tpu.trace_start"() <{level = 10 : i32, message = "bqk,bkd->bqd"}> : () -> ()
    %cst_155 = arith.constant dense<0.000000e+00> : vector<2x8x8xf32>
    %349 = tpu.matmul %348, %336, %cst_155 {dimension_numbers = #tpu.dot_dimension_numbers<[2], [1], [1], [2], [0, 0, 0, 1, 1, 2], [0], [0]>} : vector<2x8x8xbf16>, vector<2x8x8xbf16>, vector<2x8x8xf32> -> vector<2x8x8xf32>
    "tpu.trace_stop"() : () -> ()
    %350 = vector.shape_cast %349 : vector<2x8x8xf32> to vector<16x8xf32>
    %351 = arith.truncf %350 : vector<16x8xf32> to vector<16x8xbf16>
    %c1_156 = arith.constant 1 : index
    %c1_157 = arith.constant 1 : index
    %c0_158 = arith.constant 0 : index
    %c0_159 = arith.constant 0 : index
    %352 = vector.load %arg9[%c1_156, %c1_157, %c0_158, %c0_159] : memref<2x4x8x32xbf16, #tpu.memory_space<vmem>>, vector<1x1x8x32xbf16>
    %353 = vector.shape_cast %352 : vector<1x1x8x32xbf16> to vector<8x32xbf16>
    %cst_160 = arith.constant dense<0.000000e+00> : vector<16x32xf32>
    %354 = tpu.matmul %351, %353, %cst_160 {dimension_numbers = #tpu.dot_dimension_numbers<[1], [0], [0], [1], [0, 0, 1, 1], [], []>} : vector<16x8xbf16>, vector<8x32xbf16>, vector<16x32xf32> -> vector<16x32xf32>
    %355 = arith.addf %327, %354 : vector<16x32xf32>
    %356 = vector.extract_strided_slice %284 {offsets = [0, 16], sizes = [16, 8], strides = [1, 1]} : vector<16x32xf32> to vector<16x8xf32>
    %357 = vector.shape_cast %356 : vector<16x8xf32> to vector<2x8x8xf32>
    %358 = arith.truncf %357 : vector<2x8x8xf32> to vector<2x8x8xbf16>
    %359 = vector.extract_strided_slice %291 {offsets = [0, 16], sizes = [16, 8], strides = [1, 1]} : vector<16x32xf32> to vector<16x8xf32>
    %360 = vector.shape_cast %359 : vector<16x8xf32> to vector<2x8x8xf32>
    %361 = arith.truncf %360 : vector<2x8x8xf32> to vector<2x8x8xbf16>
    %362 = vector.extract_strided_slice %298 {offsets = [0, 16], sizes = [16, 8], strides = [1, 1]} : vector<16x32xf32> to vector<16x8xf32>
    %363 = vector.shape_cast %362 : vector<16x8xf32> to vector<2x8x8xf32>
    %364 = arith.truncf %363 : vector<2x8x8xf32> to vector<2x8x8xbf16>
    "tpu.trace_start"() <{level = 10 : i32, message = "bqd,bkd->bqk"}> : () -> ()
    %cst_161 = arith.constant dense<0.000000e+00> : vector<2x8x8xf32>
    %365 = tpu.matmul %358, %361, %cst_161 {dimension_numbers = #tpu.dot_dimension_numbers<[2], [2], [1], [1], [0, 0, 0, 1, 1, 1], [0], [0]>} : vector<2x8x8xbf16>, vector<2x8x8xbf16>, vector<2x8x8xf32> -> vector<2x8x8xf32>
    "tpu.trace_stop"() : () -> ()
    %cst_162 = arith.constant dense<0xFF800000> : vector<2x8xf32>
    %366 = vector.multi_reduction <maximumf>, %365, %cst_162 [2] : vector<2x8x8xf32> to vector<2x8xf32>
    %367 = vector.shape_cast %366 : vector<2x8xf32> to vector<2x8x1xf32>
    %368 = vector.broadcast %367 : vector<2x8x1xf32> to vector<2x8x8xf32>
    %369 = arith.subf %365, %368 : vector<2x8x8xf32>
    %370 = math.exp %369 : vector<2x8x8xf32>
    %cst_163 = arith.constant dense<0.000000e+00> : vector<2x8xf32>
    %371 = vector.multi_reduction <add>, %370, %cst_163 [2] : vector<2x8x8xf32> to vector<2x8xf32>
    %372 = vector.shape_cast %371 : vector<2x8xf32> to vector<2x8x1xf32>
    %373 = tpu.reciprocal %372 {approx = true} : vector<2x8x1xf32> -> vector<2x8x1xf32>
    %374 = vector.broadcast %373 : vector<2x8x1xf32> to vector<2x8x8xf32>
    %375 = arith.mulf %370, %374 : vector<2x8x8xf32>
    %376 = arith.truncf %375 : vector<2x8x8xf32> to vector<2x8x8xbf16>
    "tpu.trace_start"() <{level = 10 : i32, message = "bqk,bkd->bqd"}> : () -> ()
    %cst_164 = arith.constant dense<0.000000e+00> : vector<2x8x8xf32>
    %377 = tpu.matmul %376, %364, %cst_164 {dimension_numbers = #tpu.dot_dimension_numbers<[2], [1], [1], [2], [0, 0, 0, 1, 1, 2], [0], [0]>} : vector<2x8x8xbf16>, vector<2x8x8xbf16>, vector<2x8x8xf32> -> vector<2x8x8xf32>
    "tpu.trace_stop"() : () -> ()
    %378 = vector.shape_cast %377 : vector<2x8x8xf32> to vector<16x8xf32>
    %379 = arith.truncf %378 : vector<16x8xf32> to vector<16x8xbf16>
    %c1_165 = arith.constant 1 : index
    %c2_166 = arith.constant 2 : index
    %c0_167 = arith.constant 0 : index
    %c0_168 = arith.constant 0 : index
    %380 = vector.load %arg9[%c1_165, %c2_166, %c0_167, %c0_168] : memref<2x4x8x32xbf16, #tpu.memory_space<vmem>>, vector<1x1x8x32xbf16>
    %381 = vector.shape_cast %380 : vector<1x1x8x32xbf16> to vector<8x32xbf16>
    %cst_169 = arith.constant dense<0.000000e+00> : vector<16x32xf32>
    %382 = tpu.matmul %379, %381, %cst_169 {dimension_numbers = #tpu.dot_dimension_numbers<[1], [0], [0], [1], [0, 0, 1, 1], [], []>} : vector<16x8xbf16>, vector<8x32xbf16>, vector<16x32xf32> -> vector<16x32xf32>
    %383 = arith.addf %355, %382 : vector<16x32xf32>
    %384 = vector.extract_strided_slice %284 {offsets = [0, 24], sizes = [16, 8], strides = [1, 1]} : vector<16x32xf32> to vector<16x8xf32>
    %385 = vector.shape_cast %384 : vector<16x8xf32> to vector<2x8x8xf32>
    %386 = arith.truncf %385 : vector<2x8x8xf32> to vector<2x8x8xbf16>
    %387 = vector.extract_strided_slice %291 {offsets = [0, 24], sizes = [16, 8], strides = [1, 1]} : vector<16x32xf32> to vector<16x8xf32>
    %388 = vector.shape_cast %387 : vector<16x8xf32> to vector<2x8x8xf32>
    %389 = arith.truncf %388 : vector<2x8x8xf32> to vector<2x8x8xbf16>
    %390 = vector.extract_strided_slice %298 {offsets = [0, 24], sizes = [16, 8], strides = [1, 1]} : vector<16x32xf32> to vector<16x8xf32>
    %391 = vector.shape_cast %390 : vector<16x8xf32> to vector<2x8x8xf32>
    %392 = arith.truncf %391 : vector<2x8x8xf32> to vector<2x8x8xbf16>
    "tpu.trace_start"() <{level = 10 : i32, message = "bqd,bkd->bqk"}> : () -> ()
    %cst_170 = arith.constant dense<0.000000e+00> : vector<2x8x8xf32>
    %393 = tpu.matmul %386, %389, %cst_170 {dimension_numbers = #tpu.dot_dimension_numbers<[2], [2], [1], [1], [0, 0, 0, 1, 1, 1], [0], [0]>} : vector<2x8x8xbf16>, vector<2x8x8xbf16>, vector<2x8x8xf32> -> vector<2x8x8xf32>
    "tpu.trace_stop"() : () -> ()
    %cst_171 = arith.constant dense<0xFF800000> : vector<2x8xf32>
    %394 = vector.multi_reduction <maximumf>, %393, %cst_171 [2] : vector<2x8x8xf32> to vector<2x8xf32>
    %395 = vector.shape_cast %394 : vector<2x8xf32> to vector<2x8x1xf32>
    %396 = vector.broadcast %395 : vector<2x8x1xf32> to vector<2x8x8xf32>
    %397 = arith.subf %393, %396 : vector<2x8x8xf32>
    %398 = math.exp %397 : vector<2x8x8xf32>
    %cst_172 = arith.constant dense<0.000000e+00> : vector<2x8xf32>
    %399 = vector.multi_reduction <add>, %398, %cst_172 [2] : vector<2x8x8xf32> to vector<2x8xf32>
    %400 = vector.shape_cast %399 : vector<2x8xf32> to vector<2x8x1xf32>
    %401 = tpu.reciprocal %400 {approx = true} : vector<2x8x1xf32> -> vector<2x8x1xf32>
    %402 = vector.broadcast %401 : vector<2x8x1xf32> to vector<2x8x8xf32>
    %403 = arith.mulf %398, %402 : vector<2x8x8xf32>
    %404 = arith.truncf %403 : vector<2x8x8xf32> to vector<2x8x8xbf16>
    "tpu.trace_start"() <{level = 10 : i32, message = "bqk,bkd->bqd"}> : () -> ()
    %cst_173 = arith.constant dense<0.000000e+00> : vector<2x8x8xf32>
    %405 = tpu.matmul %404, %392, %cst_173 {dimension_numbers = #tpu.dot_dimension_numbers<[2], [1], [1], [2], [0, 0, 0, 1, 1, 2], [0], [0]>} : vector<2x8x8xbf16>, vector<2x8x8xbf16>, vector<2x8x8xf32> -> vector<2x8x8xf32>
    "tpu.trace_stop"() : () -> ()
    %406 = vector.shape_cast %405 : vector<2x8x8xf32> to vector<16x8xf32>
    %407 = arith.truncf %406 : vector<16x8xf32> to vector<16x8xbf16>
    %c1_174 = arith.constant 1 : index
    %c3_175 = arith.constant 3 : index
    %c0_176 = arith.constant 0 : index
    %c0_177 = arith.constant 0 : index
    %408 = vector.load %arg9[%c1_174, %c3_175, %c0_176, %c0_177] : memref<2x4x8x32xbf16, #tpu.memory_space<vmem>>, vector<1x1x8x32xbf16>
    %409 = vector.shape_cast %408 : vector<1x1x8x32xbf16> to vector<8x32xbf16>
    %cst_178 = arith.constant dense<0.000000e+00> : vector<16x32xf32>
    %410 = tpu.matmul %407, %409, %cst_178 {dimension_numbers = #tpu.dot_dimension_numbers<[1], [0], [0], [1], [0, 0, 1, 1], [], []>} : vector<16x8xbf16>, vector<8x32xbf16>, vector<16x32xf32> -> vector<16x32xf32>
    %411 = arith.addf %383, %410 : vector<16x32xf32>
    %412 = arith.addf %250, %411 : vector<16x32xf32>
    %c1_179 = arith.constant 1 : index
    %c0_180 = arith.constant 0 : index
    %c0_181 = arith.constant 0 : index
    %413 = vector.load %arg10[%c1_179, %c0_180, %c0_181] : memref<2x1x32xf32, #tpu.memory_space<vmem>>, vector<1x1x32xf32>
    %414 = vector.shape_cast %413 : vector<1x1x32xf32> to vector<1x32xf32>
    %415 = vector.broadcast %414 : vector<1x32xf32> to vector<16x32xf32>
    %416 = arith.addf %412, %415 : vector<16x32xf32>
    %c1_182 = arith.constant 1 : index
    %c0_183 = arith.constant 0 : index
    %c0_184 = arith.constant 0 : index
    %417 = vector.load %arg11[%c1_182, %c0_183, %c0_184] : memref<2x1x32xf32, #tpu.memory_space<vmem>>, vector<1x1x32xf32>
    %418 = vector.shape_cast %417 : vector<1x1x32xf32> to vector<1x32xf32>
    %c1_185 = arith.constant 1 : index
    %c0_186 = arith.constant 0 : index
    %c0_187 = arith.constant 0 : index
    %419 = vector.load %arg12[%c1_185, %c0_186, %c0_187] : memref<2x1x32xf32, #tpu.memory_space<vmem>>, vector<1x1x32xf32>
    %420 = vector.shape_cast %419 : vector<1x1x32xf32> to vector<1x32xf32>
    %cst_188 = arith.constant dense<0.000000e+00> : vector<16xf32>
    %421 = vector.multi_reduction <add>, %416, %cst_188 [1] : vector<16x32xf32> to vector<16xf32>
    %422 = vector.shape_cast %421 : vector<16xf32> to vector<16x1xf32>
    %cst_189 = arith.constant 3.200000e+01 : f32
    %423 = vector.broadcast %cst_189 : f32 to vector<16x1xf32>
    %424 = arith.divf %422, %423 : vector<16x1xf32>
    %425 = vector.broadcast %424 : vector<16x1xf32> to vector<16x32xf32>
    %426 = arith.subf %416, %425 : vector<16x32xf32>
    %427 = arith.mulf %426, %426 : vector<16x32xf32>
    %cst_190 = arith.constant dense<0.000000e+00> : vector<16xf32>
    %428 = vector.multi_reduction <add>, %427, %cst_190 [1] : vector<16x32xf32> to vector<16xf32>
    %429 = vector.shape_cast %428 : vector<16xf32> to vector<16x1xf32>
    %cst_191 = arith.constant 3.200000e+01 : f32
    %430 = vector.broadcast %cst_191 : f32 to vector<16x1xf32>
    %431 = arith.divf %429, %430 : vector<16x1xf32>
    %432 = vector.broadcast %424 : vector<16x1xf32> to vector<16x32xf32>
    %433 = arith.subf %416, %432 : vector<16x32xf32>
    %cst_192 = arith.constant 9.99999997E-7 : f32
    %434 = vector.broadcast %cst_192 : f32 to vector<16x1xf32>
    %435 = arith.addf %431, %434 : vector<16x1xf32>
    %436 = math.rsqrt %435 : vector<16x1xf32>
    %437 = vector.broadcast %436 : vector<16x1xf32> to vector<16x32xf32>
    %438 = arith.mulf %433, %437 : vector<16x32xf32>
    %439 = vector.broadcast %418 : vector<1x32xf32> to vector<16x32xf32>
    %440 = arith.mulf %438, %439 : vector<16x32xf32>
    %441 = vector.broadcast %420 : vector<1x32xf32> to vector<16x32xf32>
    %442 = arith.addf %440, %441 : vector<16x32xf32>
    %443 = arith.truncf %442 : vector<16x32xf32> to vector<16x32xbf16>
    %c1_193 = arith.constant 1 : index
    %c0_194 = arith.constant 0 : index
    %c0_195 = arith.constant 0 : index
    %444 = vector.load %arg13[%c1_193, %c0_194, %c0_195] : memref<2x32x64xbf16, #tpu.memory_space<vmem>>, vector<1x32x64xbf16>
    %445 = vector.shape_cast %444 : vector<1x32x64xbf16> to vector<32x64xbf16>
    %cst_196 = arith.constant dense<0.000000e+00> : vector<16x64xf32>
    %446 = tpu.matmul %443, %445, %cst_196 {dimension_numbers = #tpu.dot_dimension_numbers<[1], [0], [0], [1], [0, 0, 1, 1], [], []>} : vector<16x32xbf16>, vector<32x64xbf16>, vector<16x64xf32> -> vector<16x64xf32>
    %c1_197 = arith.constant 1 : index
    %c0_198 = arith.constant 0 : index
    %c0_199 = arith.constant 0 : index
    %447 = vector.load %arg14[%c1_197, %c0_198, %c0_199] : memref<2x1x64xf32, #tpu.memory_space<vmem>>, vector<1x1x64xf32>
    %448 = vector.shape_cast %447 : vector<1x1x64xf32> to vector<1x64xf32>
    %449 = vector.broadcast %448 : vector<1x64xf32> to vector<16x64xf32>
    %450 = arith.addf %446, %449 : vector<16x64xf32>
    %cst_200 = arith.constant 5.000000e-01 : f32
    %451 = vector.broadcast %cst_200 : f32 to vector<16x64xf32>
    %452 = arith.mulf %451, %450 : vector<16x64xf32>
    %cst_201 = arith.constant 0.707106769 : f32
    %453 = vector.broadcast %cst_201 : f32 to vector<16x64xf32>
    %454 = arith.mulf %450, %453 : vector<16x64xf32>
    %cst_202 = arith.constant 0.000000e+00 : f32
    %455 = vector.broadcast %cst_202 : f32 to vector<16x64xf32>
    %456 = arith.cmpf oge, %454, %455 : vector<16x64xf32>
    %cst_203 = arith.constant 1.000000e+00 : f32
    %cst_204 = arith.constant -1.000000e+00 : f32
    %457 = vector.broadcast %cst_203 : f32 to vector<16x64xf32>
    %458 = vector.broadcast %cst_204 : f32 to vector<16x64xf32>
    %459 = arith.select %456, %457, %458 : vector<16x64xi1>, vector<16x64xf32>
    %460 = math.absf %454 : vector<16x64xf32>
    %cst_205 = arith.constant 0.327591091 : f32
    %461 = vector.broadcast %cst_205 : f32 to vector<16x64xf32>
    %462 = arith.mulf %461, %460 : vector<16x64xf32>
    %cst_206 = arith.constant 1.000000e+00 : f32
    %463 = vector.broadcast %cst_206 : f32 to vector<16x64xf32>
    %464 = arith.addf %463, %462 : vector<16x64xf32>
    %cst_207 = arith.constant 1.000000e+00 : f32
    %465 = vector.broadcast %cst_207 : f32 to vector<16x64xf32>
    %466 = arith.divf %465, %464 : vector<16x64xf32>
    %cst_208 = arith.constant 1.06140542 : f32
    %467 = vector.broadcast %cst_208 : f32 to vector<16x64xf32>
    %468 = arith.mulf %467, %466 : vector<16x64xf32>
    %cst_209 = arith.constant -1.45315206 : f32
    %469 = vector.broadcast %cst_209 : f32 to vector<16x64xf32>
    %470 = arith.addf %468, %469 : vector<16x64xf32>
    %471 = arith.mulf %470, %466 : vector<16x64xf32>
    %cst_210 = arith.constant 1.42141378 : f32
    %472 = vector.broadcast %cst_210 : f32 to vector<16x64xf32>
    %473 = arith.addf %471, %472 : vector<16x64xf32>
    %474 = arith.mulf %473, %466 : vector<16x64xf32>
    %cst_211 = arith.constant -0.284496725 : f32
    %475 = vector.broadcast %cst_211 : f32 to vector<16x64xf32>
    %476 = arith.addf %474, %475 : vector<16x64xf32>
    %477 = arith.mulf %476, %466 : vector<16x64xf32>
    %cst_212 = arith.constant 0.254829586 : f32
    %478 = vector.broadcast %cst_212 : f32 to vector<16x64xf32>
    %479 = arith.addf %477, %478 : vector<16x64xf32>
    %480 = arith.mulf %479, %466 : vector<16x64xf32>
    %cst_213 = arith.constant 0.000000e+00 : f32
    %481 = vector.broadcast %cst_213 : f32 to vector<16x64xf32>
    %482 = arith.subf %481, %460 : vector<16x64xf32>
    %483 = arith.mulf %482, %460 : vector<16x64xf32>
    %484 = math.exp %483 : vector<16x64xf32>
    %485 = arith.mulf %480, %484 : vector<16x64xf32>
    %cst_214 = arith.constant 1.000000e+00 : f32
    %486 = vector.broadcast %cst_214 : f32 to vector<16x64xf32>
    %487 = arith.subf %486, %485 : vector<16x64xf32>
    %488 = arith.mulf %459, %487 : vector<16x64xf32>
    %cst_215 = arith.constant 1.000000e+00 : f32
    %489 = vector.broadcast %cst_215 : f32 to vector<16x64xf32>
    %490 = arith.addf %489, %488 : vector<16x64xf32>
    %491 = arith.mulf %452, %490 : vector<16x64xf32>
    %492 = arith.truncf %491 : vector<16x64xf32> to vector<16x64xbf16>
    %c1_216 = arith.constant 1 : index
    %c0_217 = arith.constant 0 : index
    %c0_218 = arith.constant 0 : index
    %493 = vector.load %arg15[%c1_216, %c0_217, %c0_218] : memref<2x64x32xbf16, #tpu.memory_space<vmem>>, vector<1x64x32xbf16>
    %494 = vector.shape_cast %493 : vector<1x64x32xbf16> to vector<64x32xbf16>
    %cst_219 = arith.constant dense<0.000000e+00> : vector<16x32xf32>
    %495 = tpu.matmul %492, %494, %cst_219 {dimension_numbers = #tpu.dot_dimension_numbers<[1], [0], [0], [1], [0, 0, 1, 1], [], []>} : vector<16x64xbf16>, vector<64x32xbf16>, vector<16x32xf32> -> vector<16x32xf32>
    %496 = arith.addf %416, %495 : vector<16x32xf32>
    %c1_220 = arith.constant 1 : index
    %c0_221 = arith.constant 0 : index
    %c0_222 = arith.constant 0 : index
    %497 = vector.load %arg16[%c1_220, %c0_221, %c0_222] : memref<2x1x32xf32, #tpu.memory_space<vmem>>, vector<1x1x32xf32>
    %498 = vector.shape_cast %497 : vector<1x1x32xf32> to vector<1x32xf32>
    %499 = vector.broadcast %498 : vector<1x32xf32> to vector<16x32xf32>
    %500 = arith.addf %496, %499 : vector<16x32xf32>
    %c0_223 = arith.constant 0 : index
    %c0_224 = arith.constant 0 : index
    %501 = vector.load %arg17[%c0_223, %c0_224] : memref<1x32xf32, #tpu.memory_space<vmem>>, vector<1x32xf32>
    %c0_225 = arith.constant 0 : index
    %c0_226 = arith.constant 0 : index
    %502 = vector.load %arg18[%c0_225, %c0_226] : memref<1x32xf32, #tpu.memory_space<vmem>>, vector<1x32xf32>
    %cst_227 = arith.constant dense<0.000000e+00> : vector<16xf32>
    %503 = vector.multi_reduction <add>, %500, %cst_227 [1] : vector<16x32xf32> to vector<16xf32>
    %504 = vector.shape_cast %503 : vector<16xf32> to vector<16x1xf32>
    %cst_228 = arith.constant 3.200000e+01 : f32
    %505 = vector.broadcast %cst_228 : f32 to vector<16x1xf32>
    %506 = arith.divf %504, %505 : vector<16x1xf32>
    %507 = vector.broadcast %506 : vector<16x1xf32> to vector<16x32xf32>
    %508 = arith.subf %500, %507 : vector<16x32xf32>
    %509 = arith.mulf %508, %508 : vector<16x32xf32>
    %cst_229 = arith.constant dense<0.000000e+00> : vector<16xf32>
    %510 = vector.multi_reduction <add>, %509, %cst_229 [1] : vector<16x32xf32> to vector<16xf32>
    %511 = vector.shape_cast %510 : vector<16xf32> to vector<16x1xf32>
    %cst_230 = arith.constant 3.200000e+01 : f32
    %512 = vector.broadcast %cst_230 : f32 to vector<16x1xf32>
    %513 = arith.divf %511, %512 : vector<16x1xf32>
    %514 = vector.broadcast %506 : vector<16x1xf32> to vector<16x32xf32>
    %515 = arith.subf %500, %514 : vector<16x32xf32>
    %cst_231 = arith.constant 9.99999997E-7 : f32
    %516 = vector.broadcast %cst_231 : f32 to vector<16x1xf32>
    %517 = arith.addf %513, %516 : vector<16x1xf32>
    %518 = math.rsqrt %517 : vector<16x1xf32>
    %519 = vector.broadcast %518 : vector<16x1xf32> to vector<16x32xf32>
    %520 = arith.mulf %515, %519 : vector<16x32xf32>
    %521 = vector.broadcast %501 : vector<1x32xf32> to vector<16x32xf32>
    %522 = arith.mulf %520, %521 : vector<16x32xf32>
    %523 = vector.broadcast %502 : vector<1x32xf32> to vector<16x32xf32>
    %524 = arith.addf %522, %523 : vector<16x32xf32>
    %c0_232 = arith.constant 0 : index
    %c0_233 = arith.constant 0 : index
    %525 = vector.load %arg19[%c0_232, %c0_233] : memref<16x32xf32, #tpu.memory_space<vmem>>, vector<16x32xf32>
    tpu.vector_store %arg19[%c0_232, %c0_233], %524 {strides = array<i32>} : memref<16x32xf32, #tpu.memory_space<vmem>>, vector<16x32xf32>,
    return
  }
}

</mosaic_0001>

<bundles_post_ra>
// kernel: tpu_custom_call.1
= control target key start
LH: loop header
LB: loop body
LE: loop exit
PB: predicated region body
PF: predicated region fallthrough
CT: control target
= control target key end

     0   :  { %s4958_s0 = inlined_call_operand.hbm [shape: f32[16,32], index: 0, kind: input, shape index: {}]   ;;  %s4959_s1 = inlined_call_operand.vmem [shape: f32[2,1,32], index: 1, kind: input, shape index: {}]   ;;  %s4960_s2 = inlined_call_operand.vmem [shape: f32[2,1,32], index: 2, kind: input, shape index: {}]   ;;  %s4961_s3 = inlined_call_operand.vmem [shape: bf16[2,32,32], index: 3, kind: input, shape index: {}]   ;;  %s4962_s4 = inlined_call_operand.vmem [shape: f32[2,1,32], index: 4, kind: input, shape index: {}]   ;;  %s4963_s5 = inlined_call_operand.vmem [shape: bf16[2,32,32], index: 5, kind: input, shape index: {}]   ;;  %s4964_s6 = inlined_call_operand.vmem [shape: f32[2,1,32], index: 6, kind: input, shape index: {}]   ;;  %s4965_s7 = inlined_call_operand.vmem [shape: bf16[2,32,32], index: 7, kind: input, shape index: {}]   ;;  %s4966_s8 = inlined_call_operand.vmem [shape: f32[2,1,32], index: 8, kind: input, shape index: {}]   ;;  %s4967_s9 = inlined_call_operand.hbm [shape: bf16[2,4,8,32], index: 9, kind: input, shape index: {}]   ;;  %s4968_s10 = inlined_call_operand.vmem [shape: f32[2,1,32], index: 10, kind: input, shape index: {}]   ;;  %s4969_s11 = inlined_call_operand.vmem [shape: f32[2,1,32], index: 11, kind: input, shape index: {}]   ;;  %s4970_s12 = inlined_call_operand.vmem [shape: f32[2,1,32], index: 12, kind: input, shape index: {}]   ;;  %s4971_s13 = inlined_call_operand.hbm [shape: bf16[2,32,64], index: 13, kind: input, shape index: {}]   ;;  %s4972_s14 = inlined_call_operand.vmem [shape: f32[2,1,64], index: 14, kind: input, shape index: {}]   ;;  %s4973_s15 = inlined_call_operand.vmem [shape: bf16[2,64,32], index: 15, kind: input, shape index: {}]   ;;  %s4974_s16 = inlined_call_operand.vmem [shape: f32[2,1,32], index: 16, kind: input, shape index: {}]   ;;  %s4975_s17 = inlined_call_operand.vmem [shape: f32[1,32], index: 17, kind: input, shape index: {}]   ;;  %s4976_s18 = inlined_call_operand.vmem [shape: f32[1,32], index: 18, kind: input, shape index: {}]   ;;  %s4977_s19 = inlined_call_operand.hbm [shape: f32[16,32], index: 19, kind: output, shape index: {}]  }
   0x1   :  { %4984 = sst [smem:[#allocation12_spill]] %s4958_s0 }
   0x2   :  { %4985 = sst [smem:[#allocation13_spill]] %s4959_s1 }
   0x3   :  { %4986 = sst [smem:[#allocation14_spill]] %s4960_s2 }
   0x4   :  { %4987 = sst [smem:[#allocation15_spill]] %s4961_s3 }
   0x5   :  { %4988 = sst [smem:[#allocation16_spill]] %s4977_s19 }
   0x6   :  { %24 = vsyncpa [#allocation3], 0 }
   0x7   :  { %25 = vsyncpa [#allocation6], 0 }
   0x8   :  { %26 = vsyncpa [#allocation4], 0  ;;  %s4168_s0 = smov [#allocation5]   ;;  %s4074_s1 = scalar_lea.hbm %s4967_s9, 512 }
   0x9   :  { %s60_s30 = sshll.u32 %s4168_s0, 4  ;;  %p4075_p0 = scmp.ne.s32.totalorder %s4967_s9, %s4074_s1  ;;  %s61_s30 = int_to_ptr.vmem [resolvable:$true] %s60_s30 }
   0xa   :  { %p4078_p1 = scmp.lt.u32.totalorder %s4074_s1, %s4967_s9 }
   0xc   :  { %p4080_p2 = pnand %p4078_p1, %p4075_p0 }
   0xe   :  { %4083 = shalt.err (!%p4080_p2)
}
   0xf   :  { %s4084_s25 = scalar_lea.vmem %s61_s30, 512  ;;  %p4089_p4 = scmp.lt.s32.totalorder %s61_s30, %s61_s30 }
  0x10   :  { %p4085_p3 = scmp.ne.s32.totalorder %s61_s30, %s4084_s25  ;;  %p4090_p5 = scmp.lt.s32.totalorder %s4084_s25, %s4084_s25 }
  0x12   :  { %p4091_p6 = por %p4090_p5, %p4089_p4 }
  0x14   :  { %p4092_p7 = pnand %p4091_p6, %p4085_p3 }
  0x16   :  { %4095 = shalt.err (!%p4092_p7)
}
  0x17   :  { %s4983_s3 = smov 64   ;;  %s4170_s26 = smov 4  }
  0x18   :  { %66 = dma.hbm_to_vmem [thread:$0]  %s4967_s9, 512, %s61_s30, [#allocation6], %s4983_s3, %s4983_s3, %s4170_s26  }
  0x19   :  { %s4171_s29 = smov [#allocation2]   ;;  %s4989_s1 = sld [smem:[#allocation12_spill]] }
  0x1a   :  { %s32_s0 = sshll.u32 %s4171_s29, 4  ;;  %s33_s0 = int_to_ptr.vmem [resolvable:$true] %s32_s0 }
  0x1f   :  { %s4096_s22 = scalar_lea.hbm %s4989_s1, 256 }
  0x20   :  { %p4097_p8 = scmp.ne.s32.totalorder %s4989_s1, %s4096_s22  ;;  %p4100_p9 = scmp.lt.u32.totalorder %s4096_s22, %s4989_s1 }
  0x22   :  { %p4102_p10 = pnand %p4100_p9, %p4097_p8 }
  0x24   :  { %4105 = shalt.err (!%p4102_p10)
}
  0x25   :  { %s4106_s19 = scalar_lea.vmem %s33_s0, 256  ;;  %p4111_p12 = scmp.lt.s32.totalorder %s33_s0, %s33_s0 }
  0x26   :  { %p4107_p11 = scmp.ne.s32.totalorder %s33_s0, %s4106_s19  ;;  %p4112_p13 = scmp.lt.s32.totalorder %s4106_s19, %s4106_s19 }
  0x28   :  { %p4113_p0 = por %p4112_p13, %p4111_p12 }
  0x2a   :  { %p4114_p1 = pnand %p4113_p0, %p4107_p11 }
  0x2c   :  { %4117 = shalt.err (!%p4114_p1)
}
  0x2d   :  { %s4172_s9 = smov 128   ;;  %s4173_s30 = smov 8  }
  0x2e   :  { %38 = dma.hbm_to_vmem [thread:$0]  %s4989_s1, 256, %s33_s0, [#allocation3], %s4172_s9, %s4172_s9, %s4173_s30  }
  0x2f   :  { %s4174_s29 = smov [#allocation7]   ;;  %s4118_s2 = scalar_lea.hbm %s4971_s13, 512 }
  0x30   :  { %s78_s20 = sshll.u32 %s4174_s29, 4  ;;  %p4119_p2 = scmp.ne.s32.totalorder %s4971_s13, %s4118_s2  ;;  %s79_s20 = int_to_ptr.vmem [resolvable:$true] %s78_s20 }
  0x31   :  { %p4122_p3 = scmp.lt.u32.totalorder %s4118_s2, %s4971_s13 }
  0x33   :  { %p4124_p4 = pnand %p4122_p3, %p4119_p2 }
  0x35   :  { %4127 = shalt.err (!%p4124_p4)
}
  0x36   :  { %s4128_s3 = scalar_lea.vmem %s79_s20, 512  ;;  %p4133_p6 = scmp.lt.s32.totalorder %s79_s20, %s79_s20 }
  0x37   :  { %p4129_p5 = scmp.ne.s32.totalorder %s79_s20, %s4128_s3  ;;  %p4134_p7 = scmp.lt.s32.totalorder %s4128_s3, %s4128_s3 }
  0x39   :  { %p4135_p8 = por %p4134_p7, %p4133_p6 }
  0x3b   :  { %p4136_p9 = pnand %p4135_p8, %p4129_p5 }
  0x3d   :  { %4139 = shalt.err (!%p4136_p9)
}
  0x3e   :  { %s4990_s0 = smov 64  }
  0x3f   :  { %84 = dma.hbm_to_vmem [thread:$0]  %s4971_s13, 512, %s79_s20, [#allocation6], %s4990_s0, %s4990_s0, %s4170_s26  }
  0x40   :  { %4162 = dma.done.wait [#allocation3], 256  }
  0x41   :  { %4163 = vsyncadd [#allocation3], 4294967040 }
  0x42   :  { %4164 = dma.done.wait [#allocation6], 1024  }
  0x43   :  { %4165 = vsyncadd [#allocation6], 4294966272  ;;  %vm109_vm0 = vcmask 261120   ;;  %v4327_v0 = vld [vmem:[#allocation2] sm:$0xff]  ;;  %v4329_v1 = vld [vmem:[#allocation2 + $0x8] sm:$0xff]  ;;  %s4991_s26 = sld [smem:[#allocation15_spill]] }
  0x44   :  { %v110_v2 = vsel %vm109_vm0, %v4327_v0, 0.0  ;;  %v113_v3 = vsel %vm109_vm0, %v4329_v1, 0.0  ;;  %v3951_v15 = vld [vmem:[%s4965_s7] sm:$0xff]   ;;  %v4175_v16 = vmov 0.0   ;;  %v3953_v18 = vld [vmem:[%s4965_s7 + $0x8] sm:$0xff]   ;;  %vm4176_vm1 = vmmov 0  }
  0x45   :  { %111 = vadd.xlane.f32.xlu0 %v110_v2  ;;  %3608 = vmatprep.subr.bf16.mxu1 %v4175_v16  ;;  %s4992_s24 = sld [smem:[#allocation13_spill]]  ;;  %s4993_s1 = sld [smem:[#allocation14_spill]]  ;;  %v3954_v35 = vld [vmem:[%s4963_s5] sm:$0xff]   ;;  %v3955_v37 = vld [vmem:[%s4963_s5 + $0x8] sm:$0xff]   ;;  %vm355_vm2 = vcmask 64512   ;;  %vm475_vm3 = vcmask 1043456  }
  0x46   :  { %3624 = vmatprep.subr.bf16.mxu0 %v4175_v16  ;;  %3612 = vmatprep.mubr.msk.bf16.mxu1 %vm4176_vm1, %v4175_v16  ;;  %v3374_v46 = vld [vmem:[%s4964_s6] ss:$0 sm:$0xff]  ;;  %s4177_s23 = smov 120   ;;  %s4178_s25 = smov 112   ;;  %vm1644_vm6 = vcmask 523264  }
  0x47   :  { %3625 = vmatpush3.bf16.msra.mxu0 %v3951_v15  ;;  %3628 = vmatprep.mubr.msk.bf16.mxu0 %vm4176_vm1, %v4175_v16  ;;  %v3378_v50 = vld [vmem:[%s4966_s8] ss:$0 sm:$0xff]  ;;  %s4179_s0 = smov 104  }
  0x48   :  { %3626 = vmatprep.subr.bf16.mxu0 %v4175_v16  ;;  %v3370_v55 = vld [vmem:[%s4962_s4] ss:$0 sm:$0xff] }
  0x49   :  { %114 = vadd.xlane.f32.xlu0 %v113_v3  ;;  %v3950_v14 = vld [vmem:[%s4991_s26] sm:$0xff]   ;;  %v3952_v17 = vld [vmem:[%s4991_s26 + $0x8] sm:$0xff]  }
  0x4a   :  { %3609 = vmatpush3.bf16.msra.mxu1 %v3950_v14 }
  0x4b   :  { %3610 = vmatprep.subr.bf16.mxu1 %v4175_v16  ;;  %3627 = vmatpush3.bf16.msra.mxu0 %v3953_v18  ;;  %v3368_v27 = vld [vmem:[%s4992_s24] ss:$0 sm:$0xff] }
  0x4c   :  { %3638 = vmatprep.subr.bf16.mxu0 %v4175_v16  ;;  %v3369_v31 = vld [vmem:[%s4993_s1] ss:$0 sm:$0xff] }
  0x4e   :  { %3611 = vmatpush3.bf16.msra.mxu1 %v3952_v17 }
  0x4f   :  { %3616 = vmatprep.subr.bf16.mxu1 %v4175_v16 }
  0xd2   :  { %v112_v4 = vpop.xlane.xlu0 %111 }
  0xd3   :  { %v117_v5 = vmul.f32 0.03125, %v112_v4 }
  0xd5   :  { %v119_v6 = vsub.f32 %v4327_v0, %v117_v5 }
  0xd6   :  { %v115_v7 = vpop.xlane.xlu0 %114 }
  0xd7   :  { %v118_v8 = vmul.f32 0.03125, %v115_v7  ;;  %v121_v9 = vmul.f32 %v119_v6, %v119_v6 }
  0xd9   :  { %v120_v10 = vsub.f32 %v4329_v1, %v118_v8  ;;  %v123_v11 = vsel %vm109_vm0, %v121_v9, 0.0 }
  0xda   :  { %124 = vadd.xlane.f32.xlu1 %v123_v11 }
  0xdb   :  { %v122_v12 = vmul.f32 %v120_v10, %v120_v10 }
  0xdd   :  { %v126_v13 = vsel %vm109_vm0, %v122_v12, 0.0 }
  0xde   :  { %127 = vadd.xlane.f32.xlu1 %v126_v13 }
 0x167   :  { %v125_v19 = vpop.xlane.xlu1 %124 }
 0x168   :  { %v129_v20 = vmul.f32 0.03125, %v125_v19 }
 0x16a   :  { %v131_v21 = vadd.f32 1e-06, %v129_v20 }
 0x16b   :  { %v128_v22 = vpop.xlane.xlu1 %127 }
 0x16c   :  { %3974 = vrsqrt.f32 %v131_v21  ;;  %v130_v23 = vmul.f32 0.03125, %v128_v22 }
 0x16e   :  { %v132_v24 = vadd.f32 1e-06, %v130_v23 }
 0x170   :  { %3976 = vrsqrt.f32 %v132_v24 }
 0x176   :  { %v3975_v25 = vpop.eup %3974 }
 0x177   :  { %v135_v26 = vmul.f32 %v3975_v25, %v119_v6 }
 0x179   :  { %v143_v30 = vmul.f32 %v3368_v27, %v135_v26 }
 0x17a   :  { %v3977_v28 = vpop.eup %3976 }
 0x17b   :  { %v136_v29 = vmul.f32 %v3977_v28, %v120_v10  ;;  %v151_v33 = vadd.f32 %v3369_v31, %v143_v30 }
 0x17d   :  { %v144_v32 = vmul.f32 %v3368_v27, %v136_v29 }
 0x17f   :  { %v152_v34 = vadd.f32 %v3369_v31, %v144_v32 }
 0x181   :  { %v153_v36 = vpack.c.bf16 %v152_v34, %v151_v33 }
 0x183   :  { %3613 = vmatmul.mubr.msk.bf16.vlgmr.msra.gmra.mrb[0].mxu1 %vm109_vm0, %v153_v36  ;;  %3629 = vmatmul.mubr.msk.bf16.vlgmr.msra.gmra.mrb[0].mxu0 %vm109_vm0, %v153_v36 }
 0x184   :  { %3617 = vmatpush3.bf16.msra.mxu1 %v3954_v35  ;;  %3620 = vmatprep.mubr.msk.bf16.mxu1 %vm4176_vm1, %v4175_v16 }
 0x185   :  { %3618 = vmatprep.subr.bf16.mxu1 %v4175_v16  ;;  %3640 = vmatprep.mubr.msk.bf16.mxu0 %vm4176_vm1, %v4175_v16 }
 0x188   :  { %3619 = vmatpush3.bf16.msra.mxu1 %v3955_v37 }
 0x189   :  { %3632 = vmatprep.subr.bf16.mxu1 %v4175_v16 }
 0x18b   :  { %3621 = vmatmul.mubr.msk.bf16.vlgmr.msra.gmra.mrb[4].mxu1 %vm109_vm0, %v153_v36 }
 0x18c   :  { %3634 = vmatprep.mubr.msk.bf16.mxu1 %vm4176_vm1, %v4175_v16 }
 0x256   :  { %v214_v38 = vpop.f32.mrb[0].mxu1  ;;  %v342_v39 = vpop.f32.mrb[0].mxu0 }
 0x257   :  { %v3614_v40 = vpop.f32.mrb[1].mxu1  ;;  %v3630_v41 = vpop.f32.mrb[1].mxu0  ;;  %v343_v56 = vadd.f32 %v3378_v50, %v342_v39  ;;  %v215_v59 = vadd.f32 %v3370_v55, %v214_v38 }
 0x258   :  { %v217_v42 = vpop.f32.mrb[2].mxu1  ;;  %v345_v43 = vpop.f32.mrb[2].mxu0 }
 0x259   :  { %v3615_v44 = vpop.f32.mrb[3].mxu1  ;;  %v3631_v45 = vpop.f32.mrb[3].mxu0  ;;  %v346_v60 = vadd.f32 %v3378_v50, %v345_v43  ;;  %v4402_v62 = vpack.c.bf16 %v343_v56, %v343_v56  ;;  %v218_v63 = vadd.f32 %v3370_v55, %v217_v42  ;;  %v4405_v2 = vpack.c.bf16 %v215_v59, %v215_v59 }
 0x25b   :  { %v4407_v3 = vpack.c.bf16 %v346_v60, %v346_v60  ;;  %v4409_v4 = vpack.c.bf16 %v218_v63, %v218_v63  ;;  %v477_v5 = vsel %vm475_vm3, %v4402_v62, 0 }
 0x25d   :  { %v523_v6 = vsel %vm475_vm3, %v4407_v3, 0 }
 0x25e   :  { %v278_v47 = vpop.f32.mrb[4].mxu1 }
 0x25f   :  { %v279_v48 = vadd.f32 %v3374_v46, %v278_v47  ;;  %v3622_v49 = vpop.f32.mrb[5].mxu1 }
 0x260   :  { %v281_v51 = vpop.f32.mrb[6].mxu1 }
 0x261   :  { %v4390_v52 = vpack.c.bf16 %v279_v48, %v279_v48  ;;  %v282_v53 = vadd.f32 %v3374_v46, %v281_v51  ;;  %v3623_v54 = vpop.f32.mrb[7].mxu1 }
 0x263   :  { %v4395_v57 = vpack.c.bf16 %v282_v53, %v282_v53  ;;  %v360_v58 = vsel %vm355_vm2, %v4390_v52, 0 }
 0x264   :  { %3633 = vmatpush3.bf16.xpose.msra.mxu1 %v360_v58 }
 0x265   :  { %v406_v61 = vsel %vm355_vm2, %v4395_v57, 0  ;;  %3644 = vmatprep.subr.bf16.mxu1 %v4175_v16 }
 0x266   :  { %3639 = vmatpush3.bf16.xpose.msra.mxu0 %v406_v61 }
 0x267   :  { %3650 = vmatprep.subr.bf16.mxu0 %v4175_v16 }
 0x26b   :  { %3635 = vmatmul.mubr.msk.bf16.vlgmr.msra.gmra.mrb[8].mxu1 %vm355_vm2, %v4405_v2 }
 0x26c   :  { %3645 = vmatpush3.bf16.msra.mxu1 %v477_v5  ;;  %3646 = vmatprep.mubr.msk.bf16.mxu1 %vm4176_vm1, %v4175_v16 }
 0x26d   :  { %3641 = vmatmul.mubr.msk.bf16.vlgmr.msra.gmra.mrb[4].mxu0 %vm355_vm2, %v4409_v4  ;;  %3656 = vmatprep.subr.bf16.mxu1 %v4175_v16 }
 0x26e   :  { %3651 = vmatpush3.bf16.msra.mxu0 %v523_v6  ;;  %3652 = vmatprep.mubr.msk.bf16.mxu0 %vm4176_vm1, %v4175_v16 }
 0x26f   :  { %3662 = vmatprep.subr.bf16.mxu0 %v4175_v16 }
 0x33e   :  { %v396_v7 = vpop.f32.mrb[8].mxu1 }
 0x33f   :  { %v3636_v8 = vpop.f32.mrb[9].mxu1  ;;  %v448_v9 = vsel %vm355_vm2, %v396_v7, -inf }
 0x340   :  { %v442_v10 = vpop.f32.mrb[4].mxu0  ;;  %449 = vmax.xlane.f32.xlu0 %v448_v9  ;;  %v399_v11 = vpop.f32.mrb[10].mxu1 }
 0x341   :  { %v3637_v12 = vpop.f32.mrb[11].mxu1  ;;  %v3642_v13 = vpop.f32.mrb[5].mxu0  ;;  %v451_v14 = vsel %vm355_vm2, %v442_v10, -inf }
 0x342   :  { %452 = vmax.xlane.f32.xlu1 %v451_v14  ;;  %v445_v15 = vpop.f32.mrb[6].mxu0 }
 0x343   :  { %v3643_v17 = vpop.f32.mrb[7].mxu0 }
 0x353   :  { %623 = vrot.lane.b32.xlu1 %v4395_v57, %s4177_s23 }
 0x3cd   :  { %v450_v18 = vpop.xlane.xlu0 %449 }
 0x3ce   :  { %v454_v19 = vsub.f32 %v396_v7, %v450_v18 }
 0x3cf   :  { %v453_v20 = vpop.xlane.xlu1 %452 }
 0x3d0   :  { %v456_v21 = vmul.f32 1.442695, %v454_v19  ;;  %v455_v22 = vsub.f32 %v442_v10, %v453_v20 }
 0x3d2   :  { %3978 = vpow2.f32 %v456_v21  ;;  %v458_v23 = vmul.f32 1.442695, %v455_v22 }
 0x3d3   :  { %v624_v28 = vpop.permute.xlu1 %623 }
 0x3d4   :  { %3980 = vpow2.f32 %v458_v23  ;;  %v629_v39 = vsel %vm355_vm2, %v624_v28, 0  ;;  %v795_v23 = vld [vmem:[#allocation5 + $0x4] sm:$0xf]  ;;  %v566_v28 = vld [vmem:[#allocation5] sm:$0xf] }
 0x3dc   :  { %v3979_v24 = vpop.eup %3978 }
 0x3dd   :  { %v460_v25 = vsel %vm355_vm2, %v3979_v24, 0.0 }
 0x3de   :  { %v3981_v26 = vpop.eup %3980  ;;  %461 = vadd.xlane.f32.xlu0 %v460_v25 }
 0x3df   :  { %v463_v27 = vsel %vm355_vm2, %v3981_v26, 0.0 }
 0x3e0   :  { %464 = vadd.xlane.f32.xlu1 %v463_v27 }
 0x3f1   :  { %568 = vrot.lane.b32.xlu1 %v4405_v2, %s4177_s23 }
 0x3f4   :  { %571 = vrot.lane.b32.xlu0 %v4390_v52, %s4177_s23 }
 0x3f5   :  { %620 = vrot.lane.b32.xlu1 %v4409_v4, %s4177_s23 }
 0x46b   :  { %v462_v29 = vpop.xlane.xlu0 %461 }
 0x46c   :  { %3982 = vrcp.f32 %v462_v29 }
 0x46d   :  { %v465_v30 = vpop.xlane.xlu1 %464 }
 0x46e   :  { %3984 = vrcp.f32 %v465_v30 }
 0x46f   :  { %v572_v34 = vpop.permute.xlu0 %571 }
 0x470   :  { %v577_v37 = vsel %vm355_vm2, %v572_v34, 0 }
 0x471   :  { %v569_v40 = vpop.permute.xlu1 %568 }
 0x475   :  { %v621_v41 = vpop.permute.xlu1 %620 }
 0x476   :  { %v3983_v31 = vpop.eup %3982 }
 0x477   :  { %v468_v32 = vmul.f32 %v3983_v31, %v3979_v24  ;;  %v847_v31 = vsel %vm475_vm3, %v566_v28, 0 }
 0x478   :  { %v3985_v33 = vpop.eup %3984 }
 0x479   :  { %v469_v35 = vmul.f32 %v3985_v33, %v3981_v26  ;;  %v470_v36 = vpack.c.bf16 %v468_v32, %v468_v32  ;;  %v800_v26 = vsel %vm475_vm3, %v795_v23, 0 }
 0x47b   :  { %3647 = vmatmul.mubr.msk.bf16.vlgmr.msra.gmra.mrb[12].mxu1 %vm355_vm2, %v470_v36  ;;  %v471_v38 = vpack.c.bf16 %v469_v35, %v469_v35 }
 0x47c   :  { %3657 = vmatpush3.bf16.xpose.msra.mxu1 %v577_v37  ;;  %3658 = vmatprep.mubr.msk.bf16.mxu1 %vm4176_vm1, %v4175_v16 }
 0x47d   :  { %3653 = vmatmul.mubr.msk.bf16.vlgmr.msra.gmra.mrb[8].mxu0 %vm355_vm2, %v471_v38  ;;  %3668 = vmatprep.subr.bf16.mxu1 %v4175_v16 }
 0x47e   :  { %3663 = vmatpush3.bf16.xpose.msra.mxu0 %v629_v39  ;;  %3664 = vmatprep.mubr.msk.bf16.mxu0 %vm4176_vm1, %v4175_v16 }
 0x47f   :  { %3674 = vmatprep.subr.bf16.mxu0 %v4175_v16 }
 0x483   :  { %3659 = vmatmul.mubr.msk.bf16.vlgmr.msra.gmra.mrb[16].mxu1 %vm355_vm2, %v569_v40 }
 0x484   :  { %3670 = vmatprep.mubr.msk.bf16.mxu1 %vm4176_vm1, %v4175_v16 }
 0x485   :  { %3665 = vmatmul.mubr.msk.bf16.vlgmr.msra.gmra.mrb[12].mxu0 %vm355_vm2, %v621_v41 }
 0x486   :  { %3676 = vmatprep.mubr.msk.bf16.mxu0 %vm4176_vm1, %v4175_v16 }
 0x54e   :  { %v4453_v42 = vpop.f32.mrb[12].mxu1 }
 0x54f   :  { %v3648_v43 = vpop.f32.mrb[13].mxu1 }
 0x550   :  { %v516_v44 = vpop.f32.mrb[14].mxu1  ;;  %v4455_v45 = vpop.f32.mrb[8].mxu0 }
 0x551   :  { %v565_v46 = vpack.c.bf16 %v4455_v45, %v4453_v42  ;;  %v3649_v47 = vpop.f32.mrb[15].mxu1  ;;  %v3654_v48 = vpop.f32.mrb[9].mxu0 }
 0x552   :  { %v562_v49 = vpop.f32.mrb[10].mxu0 }
 0x553   :  { %v3655_v50 = vpop.f32.mrb[11].mxu0 }
 0x556   :  { %v613_v51 = vpop.f32.mrb[16].mxu1 }
 0x557   :  { %v3660_v53 = vpop.f32.mrb[17].mxu1  ;;  %v671_v54 = vsel %vm355_vm2, %v613_v51, -inf }
 0x558   :  { %v665_v55 = vpop.f32.mrb[12].mxu0  ;;  %672 = vmax.xlane.f32.xlu0 %v671_v54  ;;  %v616_v56 = vpop.f32.mrb[18].mxu1 }
 0x559   :  { %v3661_v58 = vpop.f32.mrb[19].mxu1  ;;  %v3666_v59 = vpop.f32.mrb[13].mxu0  ;;  %v674_v60 = vsel %vm355_vm2, %v665_v55, -inf }
 0x55a   :  { %675 = vmax.xlane.f32.xlu1 %v674_v60  ;;  %v668_v61 = vpop.f32.mrb[14].mxu0 }
 0x55b   :  { %v3667_v63 = vpop.f32.mrb[15].mxu0 }
 0x56b   :  { %745 = vrot.lane.b32.xlu1 %v4407_v3, %s4177_s23 }
 0x56f   :  { %892 = vrot.lane.b32.xlu1 %v4390_v52, %s4178_s25 }
 0x573   :  { %942 = vrot.lane.b32.xlu1 %v4395_v57, %s4178_s25 }
 0x577   :  { %940 = vrot.lane.b32.xlu1 %v4409_v4, %s4178_s25 }
 0x5e5   :  { %v673_v5 = vpop.xlane.xlu0 %672 }
 0x5e6   :  { %v677_v6 = vsub.f32 %v613_v51, %v673_v5 }
 0x5e7   :  { %v676_v7 = vpop.xlane.xlu1 %675 }
 0x5e8   :  { %v679_v8 = vmul.f32 1.442695, %v677_v6  ;;  %v678_v9 = vsub.f32 %v665_v55, %v676_v7 }
 0x5ea   :  { %3986 = vpow2.f32 %v679_v8  ;;  %v681_v10 = vmul.f32 1.442695, %v678_v9 }
 0x5eb   :  { %v746_v11 = vpop.permute.xlu1 %745 }
 0x5ec   :  { %3988 = vpow2.f32 %v681_v10  ;;  %v751_v12 = vsel %vm475_vm3, %v746_v11, 0 }
 0x5ed   :  { %3675 = vmatpush3.bf16.msra.mxu0 %v751_v12 }
 0x5ee   :  { %3686 = vmatprep.subr.bf16.mxu0 %v4175_v16 }
 0x5ef   :  { %v893_v32 = vpop.permute.xlu1 %892 }
 0x5f0   :  { %v898_v44 = vsel %vm355_vm2, %v893_v32, 0 }
 0x5f3   :  { %v943_v33 = vpop.permute.xlu1 %942 }
 0x5f4   :  { %v3987_v13 = vpop.eup %3986  ;;  %v948_v34 = vsel %vm355_vm2, %v943_v33, 0 }
 0x5f5   :  { %v683_v14 = vsel %vm355_vm2, %v3987_v13, 0.0 }
 0x5f6   :  { %v3989_v15 = vpop.eup %3988  ;;  %684 = vadd.xlane.f32.xlu0 %v683_v14 }
 0x5f7   :  { %v686_v17 = vsel %vm355_vm2, %v3989_v15, 0.0  ;;  %v941_v35 = vpop.permute.xlu1 %940 }
 0x5fa   :  { %687 = vadd.xlane.f32.xlu0 %v686_v17 }
 0x610   :  { %696 = vrot.lane.b32.xlu0 %v4402_v62, %s4177_s23 }
 0x614   :  { %890 = vrot.lane.b32.xlu0 %v4405_v2, %s4178_s25 }
 0x683   :  { %v685_v18 = vpop.xlane.xlu0 %684 }
 0x684   :  { %3990 = vrcp.f32 %v685_v18 }
 0x687   :  { %v688_v19 = vpop.xlane.xlu0 %687 }
 0x688   :  { %3992 = vrcp.f32 %v688_v19 }
 0x68b   :  { %v697_v20 = vpop.permute.xlu0 %696 }
 0x68c   :  { %v702_v21 = vsel %vm475_vm3, %v697_v20, 0 }
 0x68d   :  { %3669 = vmatpush3.bf16.msra.mxu1 %v702_v21 }
 0x68e   :  { %v3991_v22 = vpop.eup %3990  ;;  %3680 = vmatprep.subr.bf16.mxu1 %v4175_v16 }
 0x68f   :  { %v691_v24 = vmul.f32 %v3991_v22, %v3987_v13  ;;  %v891_v48 = vpop.permute.xlu0 %890 }
 0x691   :  { %v693_v25 = vpack.c.bf16 %v691_v24, %v691_v24 }
 0x692   :  { %v3993_v27 = vpop.eup %3992 }
 0x693   :  { %v692_v29 = vmul.f32 %v3993_v27, %v3989_v15  ;;  %3671 = vmatmul.mubr.msk.bf16.vlgmr.msra.gmra.mrb[20].mxu1 %vm355_vm2, %v693_v25 }
 0x694   :  { %3681 = vmatpush3.bf16.msra.mxu1 %v800_v26  ;;  %3682 = vmatprep.mubr.msk.bf16.mxu1 %vm4176_vm1, %v4175_v16 }
 0x695   :  { %v694_v30 = vpack.c.bf16 %v692_v29, %v692_v29  ;;  %3692 = vmatprep.subr.bf16.mxu1 %v4175_v16 }
 0x697   :  { %3677 = vmatmul.mubr.msk.bf16.vlgmr.msra.gmra.mrb[16].mxu0 %vm355_vm2, %v694_v30 }
 0x698   :  { %3687 = vmatpush3.bf16.msra.mxu0 %v847_v31  ;;  %3688 = vmatprep.mubr.msk.bf16.mxu0 %vm4176_vm1, %v4175_v16 }
 0x699   :  { %3698 = vmatprep.subr.bf16.mxu0 %v4175_v16 }
 0x69f   :  { %3689 = vmatmul.mubr.msk.bf16.vlgmr.msra.gmra.mrb[20].mxu0 %vm355_vm2, %v565_v46 }
 0x6a0   :  { %3700 = vmatprep.mubr.msk.bf16.mxu0 %vm4176_vm1, %v4175_v16 }
 0x6a1   :  { %3699 = vmatpush3.bf16.xpose.msra.mxu0 %v948_v34 }
 0x6a2   :  { %3710 = vmatprep.subr.bf16.mxu0 %v4175_v16 }
 0x6a8   :  { %3701 = vmatmul.mubr.msk.bf16.vlgmr.msra.gmra.mrb[24].mxu0 %vm355_vm2, %v941_v35 }
 0x6a9   :  { %3712 = vmatprep.mubr.msk.bf16.mxu0 %vm4176_vm1, %v4175_v16 }
 0x766   :  { %v738_v36 = vpop.f32.mrb[20].mxu1 }
 0x767   :  { %v3672_v37 = vpop.f32.mrb[21].mxu1 }
 0x768   :  { %v741_v38 = vpop.f32.mrb[22].mxu1  ;;  %v1112_v37 = vld [vmem:[#allocation5 + $0x8] sm:$0xf] }
 0x769   :  { %v3673_v39 = vpop.f32.mrb[23].mxu1  ;;  %v1117_v38 = vsel %vm475_vm3, %v1112_v37, 0 }
 0x76a   :  { %v787_v40 = vpop.f32.mrb[16].mxu0 }
 0x76b   :  { %v793_v41 = vpack.c.bf16 %v787_v40, %v738_v36  ;;  %v3678_v42 = vpop.f32.mrb[17].mxu0 }
 0x76c   :  { %v790_v43 = vpop.f32.mrb[18].mxu0 }
 0x76d   :  { %v3679_v45 = vpop.f32.mrb[19].mxu0  ;;  %3683 = vmatmul.mubr.msk.bf16.vlgmr.msra.gmra.mrb[24].mxu1 %vm355_vm2, %v793_v41 }
 0x76e   :  { %3693 = vmatpush3.bf16.xpose.msra.mxu1 %v898_v44  ;;  %3694 = vmatprep.mubr.msk.bf16.mxu1 %vm4176_vm1, %v4175_v16 }
 0x76f   :  { %3704 = vmatprep.subr.bf16.mxu1 %v4175_v16 }
 0x772   :  { %v883_v46 = vpop.f32.mrb[20].mxu0 }
 0x773   :  { %v3690_v47 = vpop.f32.mrb[21].mxu0 }
 0x774   :  { %v886_v49 = vpop.f32.mrb[22].mxu0 }
 0x775   :  { %v3691_v50 = vpop.f32.mrb[23].mxu0  ;;  %3695 = vmatmul.mubr.msk.bf16.vlgmr.msra.gmra.mrb[28].mxu1 %vm355_vm2, %v891_v48 }
 0x776   :  { %3706 = vmatprep.mubr.msk.bf16.mxu1 %vm4176_vm1, %v4175_v16 }
 0x77b   :  { %v984_v51 = vpop.f32.mrb[24].mxu0 }
 0x77c   :  { %v3702_v53 = vpop.f32.mrb[25].mxu0  ;;  %v993_v54 = vsel %vm355_vm2, %v984_v51, -inf }
 0x77d   :  { %994 = vmax.xlane.f32.xlu1 %v993_v54  ;;  %v987_v55 = vpop.f32.mrb[26].mxu0 }
 0x77e   :  { %v3703_v56 = vpop.f32.mrb[27].mxu0 }
 0x78e   :  { %1062 = vrot.lane.b32.xlu1 %v4407_v3, %s4178_s25 }
 0x792   :  { %1164 = vrot.lane.b32.xlu1 %v4390_v52, %s4179_s0 }
 0x796   :  { %1214 = vrot.lane.b32.xlu1 %v4395_v57, %s4179_s0 }
 0x79a   :  { %1212 = vrot.lane.b32.xlu1 %v4409_v4, %s4179_s0 }
 0x80a   :  { %v995_v58 = vpop.xlane.xlu1 %994 }
 0x80b   :  { %v997_v61 = vsub.f32 %v984_v51, %v995_v58 }
 0x80d   :  { %v1000_v63 = vmul.f32 1.442695, %v997_v61 }
 0x80e   :  { %v1063_v59 = vpop.permute.xlu1 %1062 }
 0x80f   :  { %v1068_v60 = vsel %vm475_vm3, %v1063_v59, 0  ;;  %3994 = vpow2.f32 %v1000_v63 }
 0x810   :  { %3711 = vmatpush3.bf16.msra.mxu0 %v1068_v60 }
 0x811   :  { %3722 = vmatprep.subr.bf16.mxu0 %v4175_v16 }
 0x812   :  { %v1165_v24 = vpop.permute.xlu1 %1164 }
 0x813   :  { %v1170_v26 = vsel %vm355_vm2, %v1165_v24, 0 }
 0x816   :  { %v1215_v44 = vpop.permute.xlu1 %1214 }
 0x819   :  { %v3995_v11 = vpop.eup %3994 }
 0x81a   :  { %v1005_v14 = vsel %vm355_vm2, %v3995_v11, 0.0  ;;  %v1213_v51 = vpop.permute.xlu1 %1212 }
 0x840   :  { %v836_v5 = vpop.f32.mrb[24].mxu1 }
 0x841   :  { %v4519_v6 = vadd.f32 %v883_v46, %v836_v5  ;;  %v3684_v52 = vpop.f32.mrb[25].mxu1 }
 0x842   :  { %v839_v7 = vpop.f32.mrb[26].mxu1 }
 0x843   :  { %v4521_v8 = vadd.f32 %v886_v49, %v839_v7  ;;  %v3685_v57 = vpop.f32.mrb[27].mxu1  ;;  %v1220_v49 = vsel %vm355_vm2, %v1215_v44, 0 }
 0x848   :  { %v934_v9 = vpop.f32.mrb[28].mxu1 }
 0x849   :  { %v3696_v4 = vpop.f32.mrb[29].mxu1  ;;  %v990_v10 = vsel %vm355_vm2, %v934_v9, -inf }
 0x84a   :  { %991 = vmax.xlane.f32.xlu0 %v990_v10  ;;  %v937_v12 = vpop.f32.mrb[30].mxu1 }
 0x84b   :  { %v3697_v13 = vpop.f32.mrb[31].mxu1 }
 0x84e   :  { %1006 = vadd.xlane.f32.xlu0 %v1005_v14 }
 0x8d7   :  { %v992_v15 = vpop.xlane.xlu0 %991 }
 0x8d8   :  { %v996_v17 = vsub.f32 %v934_v9, %v992_v15 }
 0x8da   :  { %v998_v18 = vmul.f32 1.442695, %v996_v17 }
 0x8db   :  { %v1007_v19 = vpop.xlane.xlu0 %1006 }
 0x8dc   :  { %3996 = vpow2.f32 %v998_v18 }
 0x8dd   :  { %3998 = vrcp.f32 %v1007_v19 }
 0x8e6   :  { %v3997_v20 = vpop.eup %3996 }
 0x8e7   :  { %v3999_v21 = vpop.eup %3998  ;;  %v1002_v22 = vsel %vm355_vm2, %v3997_v20, 0.0 }
 0x8e8   :  { %v1011_v23 = vmul.f32 %v3999_v21, %v3995_v11  ;;  %1003 = vadd.xlane.f32.xlu0 %v1002_v22 }
 0x8ea   :  { %v1013_v25 = vpack.c.bf16 %v1011_v23, %v1011_v23 }
 0x8ec   :  { %3713 = vmatmul.mubr.msk.bf16.vlgmr.msra.gmra.mrb[28].mxu0 %vm355_vm2, %v1013_v25  ;;  %v1384_v25 = vld [vmem:[#allocation5 + $0xc] sm:$0xf] }
 0x8ed   :  { %3723 = vmatpush3.bf16.xpose.msra.mxu0 %v1170_v26  ;;  %3724 = vmatprep.mubr.msk.bf16.mxu0 %vm4176_vm1, %v4175_v16  ;;  %v1389_v26 = vsel %vm475_vm3, %v1384_v25, 0 }
 0x8ee   :  { %3734 = vmatprep.subr.bf16.mxu0 %v4175_v16 }
 0x8fe   :  { %1014 = vrot.lane.b32.xlu0 %v4402_v62, %s4178_s25 }
 0x902   :  { %1162 = vrot.lane.b32.xlu0 %v4405_v2, %s4179_s0 }
 0x975   :  { %v1004_v27 = vpop.xlane.xlu0 %1003 }
 0x976   :  { %4000 = vrcp.f32 %v1004_v27 }
 0x979   :  { %v1015_v28 = vpop.permute.xlu0 %1014 }
 0x97a   :  { %v1020_v29 = vsel %vm475_vm3, %v1015_v28, 0 }
 0x97b   :  { %3705 = vmatpush3.bf16.msra.mxu1 %v1020_v29 }
 0x97c   :  { %3716 = vmatprep.subr.bf16.mxu1 %v4175_v16 }
 0x97d   :  { %v1163_v30 = vpop.permute.xlu0 %1162 }
 0x97e   :  { %3725 = vmatmul.mubr.msk.bf16.vlgmr.msra.gmra.mrb[32].mxu0 %vm355_vm2, %v1163_v30 }
 0x97f   :  { %3736 = vmatprep.mubr.msk.bf16.mxu0 %vm4176_vm1, %v4175_v16 }
 0x980   :  { %v4001_v31 = vpop.eup %4000 }
 0x981   :  { %v1010_v32 = vmul.f32 %v4001_v31, %v3997_v20 }
 0x983   :  { %v1012_v33 = vpack.c.bf16 %v1010_v32, %v1010_v32 }
 0x985   :  { %3707 = vmatmul.mubr.msk.bf16.vlgmr.msra.gmra.mrb[32].mxu1 %vm355_vm2, %v1012_v33 }
 0x986   :  { %3718 = vmatprep.mubr.msk.bf16.mxu1 %vm4176_vm1, %v4175_v16  ;;  %3717 = vmatpush3.bf16.msra.mxu1 %v1117_v38  ;;  %v3402_v38 = vld [vmem:[%s4968_s10] ss:$0 sm:$0xff] }
 0x987   :  { %3728 = vmatprep.subr.bf16.mxu1 %v4175_v16 }
 0x9bf   :  { %v1104_v2 = vpop.f32.mrb[28].mxu0 }
 0x9c0   :  { %v3714_v34 = vpop.f32.mrb[29].mxu0 }
 0x9c1   :  { %v1107_v35 = vpop.f32.mrb[30].mxu0 }
 0x9c2   :  { %v3715_v36 = vpop.f32.mrb[31].mxu0 }
 0xa51   :  { %v1206_v39 = vpop.f32.mrb[32].mxu0 }
 0xa52   :  { %v3726_v40 = vpop.f32.mrb[33].mxu0  ;;  %v1262_v41 = vsel %vm355_vm2, %v1206_v39, -inf }
 0xa53   :  { %1263 = vmax.xlane.f32.xlu0 %v1262_v41  ;;  %v1209_v42 = vpop.f32.mrb[34].mxu0 }
 0xa54   :  { %v3727_v43 = vpop.f32.mrb[35].mxu0 }
 0xa58   :  { %v1056_v45 = vpop.f32.mrb[32].mxu1 }
 0xa59   :  { %v1110_v46 = vpack.c.bf16 %v1104_v2, %v1056_v45  ;;  %v3708_v47 = vpop.f32.mrb[33].mxu1 }
 0xa5a   :  { %v1059_v48 = vpop.f32.mrb[34].mxu1 }
 0xa5b   :  { %v3709_v50 = vpop.f32.mrb[35].mxu1  ;;  %3719 = vmatmul.mubr.msk.bf16.vlgmr.msra.gmra.mrb[36].mxu1 %vm355_vm2, %v1110_v46 }
 0xa5c   :  { %3729 = vmatpush3.bf16.xpose.msra.mxu1 %v1220_v49  ;;  %3730 = vmatprep.mubr.msk.bf16.mxu1 %vm4176_vm1, %v4175_v16 }
 0xa5d   :  { %3740 = vmatprep.subr.bf16.mxu1 %v4175_v16 }
 0xa63   :  { %3731 = vmatmul.mubr.msk.bf16.vlgmr.msra.gmra.mrb[40].mxu1 %vm355_vm2, %v1213_v51 }
 0xa64   :  { %3742 = vmatprep.mubr.msk.bf16.mxu1 %vm4176_vm1, %v4175_v16 }
 0xae0   :  { %v1264_v53 = vpop.xlane.xlu0 %1263 }
 0xae1   :  { %v1268_v54 = vsub.f32 %v1206_v39, %v1264_v53 }
 0xae3   :  { %v1270_v55 = vmul.f32 1.442695, %v1268_v54 }
 0xae5   :  { %4002 = vpow2.f32 %v1270_v55 }
 0xaef   :  { %v4003_v56 = vpop.eup %4002 }
 0xaf0   :  { %v1274_v58 = vsel %vm355_vm2, %v4003_v56, 0.0 }
 0xaf1   :  { %1275 = vadd.xlane.f32.xlu0 %v1274_v58  ;;  %v3956_v58 = vld [vmem:[#allocation7] sm:$0xff]  }
 0xb2e   :  { %v1153_v59 = vpop.f32.mrb[36].mxu1 }
 0xb2f   :  { %v1160_v60 = vadd.f32 %v1153_v59, %v4519_v6  ;;  %v3720_v61 = vpop.f32.mrb[37].mxu1  ;;  %v3957_v59 = vld [vmem:[#allocation7 + $0x8] sm:$0xff]  }
 0xb30   :  { %v1156_v63 = vpop.f32.mrb[38].mxu1 }
 0xb31   :  { %v1161_v5 = vadd.f32 %v1156_v63, %v4521_v8  ;;  %v3721_v52 = vpop.f32.mrb[39].mxu1 }
 0xb36   :  { %v1256_v7 = vpop.f32.mrb[40].mxu1 }
 0xb37   :  { %v3732_v57 = vpop.f32.mrb[41].mxu1  ;;  %v1265_v9 = vsel %vm355_vm2, %v1256_v7, -inf }
 0xb38   :  { %1266 = vmax.xlane.f32.xlu1 %v1265_v9  ;;  %v1259_v4 = vpop.f32.mrb[42].mxu1  ;;  %v3403_v9 = vld [vmem:[%s4969_s11] ss:$0 sm:$0xff] }
 0xb39   :  { %v3733_v10 = vpop.f32.mrb[43].mxu1 }
 0xb49   :  { %1334 = vrot.lane.b32.xlu1 %v4407_v3, %s4179_s0 }
 0xb7e   :  { %v1276_v17 = vpop.xlane.xlu0 %1275 }
 0xbc5   :  { %v1267_v11 = vpop.xlane.xlu1 %1266 }
 0xbc6   :  { %v1269_v12 = vsub.f32 %v1256_v7, %v1267_v11 }
 0xbc8   :  { %v1272_v13 = vmul.f32 1.442695, %v1269_v12 }
 0xbc9   :  { %v1335_v14 = vpop.permute.xlu1 %1334 }
 0xbca   :  { %4004 = vpow2.f32 %v1272_v13  ;;  %v1340_v6 = vsel %vm475_vm3, %v1335_v14, 0  ;;  %v3404_v13 = vld [vmem:[%s4970_s12] ss:$0 sm:$0xff] }
 0xbcb   :  { %3741 = vmatpush3.bf16.msra.mxu1 %v1340_v6  ;;  %4006 = vrcp.f32 %v1276_v17  ;;  %v3958_v17 = vld [vmem:[%s4973_s15] sm:$0xff]  }
 0xbcc   :  { %3752 = vmatprep.subr.bf16.mxu1 %v4175_v16 }
 0xbd4   :  { %v4005_v8 = vpop.eup %4004 }
 0xbd5   :  { %v1277_v15 = vsel %vm355_vm2, %v4005_v8, 0.0  ;;  %v4007_v3 = vpop.eup %4006 }
 0xbd6   :  { %1278 = vadd.xlane.f32.xlu0 %v1277_v15  ;;  %v1282_v19 = vmul.f32 %v4007_v3, %v4003_v56  ;;  %v3959_v3 = vld [vmem:[%s4973_s15 + $0x8] sm:$0xff]  }
 0xbd8   :  { %v1284_v22 = vpack.c.bf16 %v1282_v19, %v1282_v19  ;;  %v3961_v19 = vld [vmem:[%s4973_s15 + $0x18] sm:$0xff]  }
 0xbec   :  { %1286 = vrot.lane.b32.xlu0 %v4402_v62, %s4179_s0 }
 0xc63   :  { %v1279_v18 = vpop.xlane.xlu0 %1278 }
 0xc64   :  { %4008 = vrcp.f32 %v1279_v18  ;;  %v3960_v18 = vld [vmem:[%s4973_s15 + $0x10] sm:$0xff]  }
 0xc67   :  { %v1287_v20 = vpop.permute.xlu0 %1286 }
 0xc68   :  { %v1292_v21 = vsel %vm475_vm3, %v1287_v20, 0  ;;  %v3405_v20 = vld [vmem:[%s4972_s14] ss:$0 sm:$0xff] }
 0xc69   :  { %3735 = vmatpush3.bf16.msra.mxu0 %v1292_v21 }
 0xc6a   :  { %3746 = vmatprep.subr.bf16.mxu0 %v4175_v16 }
 0xc6c   :  { %3737 = vmatmul.mubr.msk.bf16.vlgmr.msra.gmra.mrb[36].mxu0 %vm355_vm2, %v1284_v22 }
 0xc6d   :  { %3748 = vmatprep.mubr.msk.bf16.mxu0 %vm4176_vm1, %v4175_v16  ;;  %3747 = vmatpush3.bf16.msra.mxu0 %v1389_v26 }
 0xc6e   :  { %v4009_v23 = vpop.eup %4008  ;;  %3760 = vmatprep.subr.bf16.mxu0 %v4175_v16 }
 0xc6f   :  { %v1283_v62 = vmul.f32 %v4009_v23, %v4005_v8 }
 0xc71   :  { %v1285_v24 = vpack.c.bf16 %v1283_v62, %v1283_v62 }
 0xc73   :  { %3743 = vmatmul.mubr.msk.bf16.vlgmr.msra.gmra.mrb[44].mxu1 %vm355_vm2, %v1285_v24 }
 0xc74   :  { %3756 = vmatprep.mubr.msk.bf16.mxu1 %vm4176_vm1, %v4175_v16  ;;  %3753 = vmatpush3.bf16.msra.mxu1 %v3956_v58 }
 0xc75   :  { %3754 = vmatprep.subr.bf16.mxu1 %v4175_v16 }
 0xc78   :  { %3755 = vmatpush3.bf16.msra.mxu1 %v3957_v59 }
 0xc79   :  { %3772 = vmatprep.subr.bf16.mxu1 %v4175_v16 }
 0xd3f   :  { %v1328_v27 = vpop.f32.mrb[36].mxu0 }
 0xd40   :  { %v3738_v28 = vpop.f32.mrb[37].mxu0 }
 0xd41   :  { %v1331_v29 = vpop.f32.mrb[38].mxu0 }
 0xd42   :  { %v3739_v30 = vpop.f32.mrb[39].mxu0 }
 0xd46   :  { %v1376_v31 = vpop.f32.mrb[44].mxu1 }
 0xd47   :  { %v1382_v32 = vpack.c.bf16 %v1376_v31, %v1328_v27  ;;  %v3744_v33 = vpop.f32.mrb[45].mxu1 }
 0xd48   :  { %v1379_v2 = vpop.f32.mrb[46].mxu1 }
 0xd49   :  { %v3745_v34 = vpop.f32.mrb[47].mxu1  ;;  %3749 = vmatmul.mubr.msk.bf16.vlgmr.msra.gmra.mrb[40].mxu0 %vm355_vm2, %v1382_v32 }
 0xd4a   :  { %3768 = vmatprep.mubr.msk.bf16.mxu0 %vm4176_vm1, %v4175_v16  ;;  %3761 = vmatpush3.bf16.msra.mxu0 %v3958_v17 }
 0xd4b   :  { %3762 = vmatprep.subr.bf16.mxu0 %v4175_v16 }
 0xd4e   :  { %3763 = vmatpush3.bf16.msra.mxu0 %v3959_v3 }
 0xd4f   :  { %3764 = vmatprep.subr.bf16.mxu0 %v4175_v16 }
 0xd52   :  { %3765 = vmatpush3.bf16.msra.mxu0 %v3960_v18 }
 0xd53   :  { %3766 = vmatprep.subr.bf16.mxu0 %v4175_v16 }
 0xd56   :  { %3767 = vmatpush3.bf16.msra.mxu0 %v3961_v19  ;;  %v3414_v19 = vld [vmem:[%s4974_s16] ss:$0 sm:$0xff] }
 0xd57   :  { %3788 = vmatprep.subr.bf16.mxu0 %v4175_v16 }
 0xe1c   :  { %v1425_v35 = vpop.f32.mrb[40].mxu0 }
 0xe1d   :  { %v1432_v36 = vadd.f32 %v1425_v35, %v1160_v60  ;;  %v3750_v37 = vpop.f32.mrb[41].mxu0 }
 0xe1e   :  { %v1428_v39 = vpop.f32.mrb[42].mxu0 }
 0xe1f   :  { %v1434_v40 = vadd.f32 %v1432_v36, %v4327_v0  ;;  %v1433_v41 = vadd.f32 %v1428_v39, %v1161_v5  ;;  %v3751_v42 = vpop.f32.mrb[43].mxu0 }
 0xe21   :  { %v4582_v43 = vadd.f32 %v3402_v38, %v1434_v40  ;;  %v1435_v44 = vadd.f32 %v1433_v41, %v4329_v1 }
 0xe23   :  { %v4585_v45 = vadd.f32 %v3402_v38, %v1435_v44  ;;  %v1447_v46 = vsel %vm109_vm0, %v4582_v43, 0.0 }
 0xe24   :  { %1448 = vadd.xlane.f32.xlu1 %v1447_v46 }
 0xe25   :  { %v1450_v47 = vsel %vm109_vm0, %v4585_v45, 0.0 }
 0xe26   :  { %1451 = vadd.xlane.f32.xlu0 %v1450_v47 }
 0xeb1   :  { %v1449_v48 = vpop.xlane.xlu1 %1448 }
 0xeb2   :  { %v1453_v49 = vmul.f32 0.03125, %v1449_v48 }
 0xeb3   :  { %v1452_v50 = vpop.xlane.xlu0 %1451 }
 0xeb4   :  { %v1455_v0 = vsub.f32 %v4582_v43, %v1453_v49  ;;  %v1454_v51 = vmul.f32 0.03125, %v1452_v50 }
 0xeb6   :  { %v1456_v53 = vsub.f32 %v4585_v45, %v1454_v51  ;;  %v1457_v54 = vmul.f32 %v1455_v0, %v1455_v0 }
 0xeb8   :  { %v1459_v1 = vsel %vm109_vm0, %v1457_v54, 0.0  ;;  %v1458_v55 = vmul.f32 %v1456_v53, %v1456_v53 }
 0xeb9   :  { %1460 = vadd.xlane.f32.xlu0 %v1459_v1 }
 0xeba   :  { %v1462_v56 = vsel %vm109_vm0, %v1458_v55, 0.0 }
 0xebb   :  { %1463 = vadd.xlane.f32.xlu1 %v1462_v56 }
 0xf46   :  { %v1461_v60 = vpop.xlane.xlu0 %1460 }
 0xf47   :  { %v1465_v61 = vmul.f32 0.03125, %v1461_v60 }
 0xf48   :  { %v1464_v63 = vpop.xlane.xlu1 %1463 }
 0xf49   :  { %v1467_v5 = vadd.f32 1e-06, %v1465_v61  ;;  %v1466_v52 = vmul.f32 0.03125, %v1464_v63 }
 0xf4b   :  { %4010 = vrsqrt.f32 %v1467_v5  ;;  %v1468_v7 = vadd.f32 1e-06, %v1466_v52 }
 0xf4d   :  { %4012 = vrsqrt.f32 %v1468_v7  ;;  %v4180_v7 = vmov -1.0  }
 0xf55   :  { %v4011_v57 = vpop.eup %4010 }
 0xf56   :  { %v1471_v4 = vmul.f32 %v4011_v57, %v1455_v0 }
 0xf57   :  { %v4013_v10 = vpop.eup %4012 }
 0xf58   :  { %v1479_v11 = vmul.f32 %v3403_v9, %v1471_v4  ;;  %v1472_v12 = vmul.f32 %v4013_v10, %v1456_v53 }
 0xf5a   :  { %v1480_v14 = vmul.f32 %v3403_v9, %v1472_v12  ;;  %v1487_v6 = vadd.f32 %v3404_v13, %v1479_v11 }
 0xf5c   :  { %v1488_v8 = vadd.f32 %v3404_v13, %v1480_v14 }
 0xf5e   :  { %v1489_v15 = vpack.c.bf16 %v1488_v8, %v1487_v6 }
 0xf60   :  { %3757 = vmatmul.mubr.msk.bf16.vlgmr.msra.gmra.mrb[48].mxu1 %vm109_vm0, %v1489_v15 }
 0xf61   :  { %3776 = vmatprep.mubr.msk.bf16.mxu1 %vm4176_vm1, %v4175_v16 }
0x1033   :  { %v1550_v21 = vpop.f32.mrb[48].mxu1 }
0x1034   :  { %v1551_v22 = vadd.f32 %v3405_v20, %v1550_v21  ;;  %v3758_v23 = vpop.f32.mrb[49].mxu1 }
0x1035   :  { %v1553_v62 = vpop.f32.mrb[50].mxu1 }
0x1036   :  { %v1559_v24 = vmul.f32 0.70710677, %v1551_v22  ;;  %v1554_v25 = vadd.f32 %v3405_v20, %v1553_v62  ;;  %v3759_v26 = vpop.f32.mrb[51].mxu1  ;;  %v1557_v14 = vmul.f32 0.5, %v1551_v22 }
0x1038   :  { %v1565_v27 = vand.u32 2147483647, %v1559_v24  ;;  %v1560_v28 = vmul.f32 0.70710677, %v1554_v25  ;;  %vm1561_vm4 = vcmp.ge.f32.partialorder %v1559_v24, 0.0  ;;  %v1558_v6 = vmul.f32 0.5, %v1554_v25 }
0x1039   :  { %v1563_v57 = vsel %vm1561_vm4, 1.0, %v4180_v7 }
0x103a   :  { %v1567_v29 = vmul.f32 0.3275911, %v1565_v27  ;;  %v1566_v30 = vand.u32 2147483647, %v1560_v28  ;;  %v1593_v2 = vsub.f32 0.0, %v1565_v27  ;;  %vm1562_vm5 = vcmp.ge.f32.partialorder %v1560_v28, 0.0 }
0x103b   :  { %v1564_v11 = vsel %vm1562_vm5, 1.0, %v4180_v7 }
0x103c   :  { %v1569_v31 = vadd.f32 1.0, %v1567_v29  ;;  %v1568_v32 = vmul.f32 0.3275911, %v1566_v30  ;;  %v1594_v34 = vsub.f32 0.0, %v1566_v30  ;;  %v1595_v36 = vmul.f32 %v1593_v2, %v1565_v27 }
0x103e   :  { %4014 = vrcp.f32 %v1569_v31  ;;  %v1570_v33 = vadd.f32 1.0, %v1568_v32  ;;  %v1596_v40 = vmul.f32 %v1594_v34, %v1566_v30  ;;  %v1597_v41 = vmul.f32 1.442695, %v1595_v36  ;;  %v3963_v36 = vld [vmem:[%s4965_s7 + $0x10] sm:$0xff]  }
0x1040   :  { %4016 = vrcp.f32 %v1570_v33  ;;  %v1599_v48 = vmul.f32 1.442695, %v1596_v40 }
0x1041   :  { %4018 = vpow2.f32 %v1597_v41 }
0x1042   :  { %4020 = vpow2.f32 %v1599_v48  ;;  %v3417_v48 = vld [vmem:[%s4992_s24 + $0x1] ss:$0 sm:$0xff] }
0x1048   :  { %v4015_v35 = vpop.eup %4014 }
0x1049   :  { %v1575_v37 = vmul.f32 1.0614054, %v4015_v35 }
0x104a   :  { %v4017_v38 = vpop.eup %4016 }
0x104b   :  { %v1577_v39 = vadd.f32 -1.4531521, %v1575_v37  ;;  %v1576_v42 = vmul.f32 1.0614054, %v4017_v38  ;;  %v4019_v59 = vpop.eup %4018  ;;  %v3964_v37 = vld [vmem:[%s4991_s26 + $0x18] sm:$0xff]  }
0x104c   :  { %v4021_v5 = vpop.eup %4020 }
0x104d   :  { %v1579_v44 = vmul.f32 %v4015_v35, %v1577_v39  ;;  %v1578_v46 = vadd.f32 -1.4531521, %v1576_v42 }
0x104f   :  { %v1581_v47 = vadd.f32 1.4214138, %v1579_v44  ;;  %v1580_v49 = vmul.f32 %v4017_v38, %v1578_v46 }
0x1051   :  { %v1583_v50 = vmul.f32 %v4015_v35, %v1581_v47  ;;  %v1582_v0 = vadd.f32 1.4214138, %v1580_v49 }
0x1053   :  { %v1585_v51 = vadd.f32 -0.28449672, %v1583_v50  ;;  %v1584_v53 = vmul.f32 %v4017_v38, %v1582_v0 }
0x1055   :  { %v1587_v54 = vmul.f32 %v4015_v35, %v1585_v51  ;;  %v1586_v1 = vadd.f32 -0.28449672, %v1584_v53  ;;  %v3418_v53 = vld [vmem:[%s4993_s1 + $0x1] ss:$0 sm:$0xff]  ;;  %s4181_s1 = smov [#allocation8]  }
0x1056   :  { %s3355_s13 = sshll.u32 %s4181_s1, 4  ;;  %s3356_s13 = int_to_ptr.vmem [resolvable:$true] %s3355_s13 }
0x1057   :  { %v1589_v55 = vadd.f32 0.2548296, %v1587_v54  ;;  %v1588_v56 = vmul.f32 %v4017_v38, %v1586_v1  ;;  %s4140_s3 = scalar_lea.vmem %s3356_s13, 256  ;;  %p4145_p11 = scmp.lt.s32.totalorder %s3356_s13, %s3356_s13 }
0x1058   :  { %p4141_p10 = scmp.ne.s32.totalorder %s3356_s13, %s4140_s3  ;;  %p4146_p12 = scmp.lt.s32.totalorder %s4140_s3, %s4140_s3 }
0x1059   :  { %v1591_v58 = vmul.f32 %v4015_v35, %v1589_v55  ;;  %v1590_v60 = vadd.f32 0.2548296, %v1588_v56  ;;  %v3962_v35 = vld [vmem:[%s4991_s26 + $0x10] sm:$0xff]  }
0x105a   :  { %3773 = vmatpush3.bf16.msra.mxu1 %v3962_v35  ;;  %v3966_v56 = vld [vmem:[%s4963_s5 + $0x10] sm:$0xff]   ;;  %p4147_p13 = por %p4146_p12, %p4145_p11 }
0x105b   :  { %v1601_v61 = vmul.f32 %v4019_v59, %v1591_v58  ;;  %v1592_v63 = vmul.f32 %v4017_v38, %v1590_v60  ;;  %v3965_v38 = vld [vmem:[%s4965_s7 + $0x18] sm:$0xff]   ;;  %3774 = vmatprep.subr.bf16.mxu1 %v4175_v16 }
0x105c   :  { %v3967_v59 = vld [vmem:[%s4963_s5 + $0x18] sm:$0xff]   ;;  %p4148_p0 = pnand %p4147_p13, %p4141_p10 }
0x105d   :  { %v1603_v52 = vsub.f32 1.0, %v1601_v61  ;;  %v1602_v9 = vmul.f32 %v4021_v5, %v1592_v63 }
0x105e   :  { %3775 = vmatpush3.bf16.msra.mxu1 %v3964_v37 }
0x105f   :  { %v1605_v4 = vmul.f32 %v1603_v52, %v1563_v57  ;;  %v1604_v10 = vsub.f32 1.0, %v1602_v9  ;;  %3780 = vmatprep.subr.bf16.mxu1 %v4175_v16 }
0x1061   :  { %v1607_v12 = vadd.f32 1.0, %v1605_v4  ;;  %v1606_v13 = vmul.f32 %v1604_v10, %v1564_v11  ;;  %v3433_v10 = vld [vmem:[%s4964_s6 + $0x1] ss:$0 sm:$0xff] }
0x1063   :  { %v1608_v8 = vadd.f32 1.0, %v1606_v13  ;;  %v1609_v15 = vmul.f32 %v1607_v12, %v1557_v14  ;;  %v3442_v14 = vld [vmem:[%s4966_s8 + $0x1] ss:$0 sm:$0xff] }
0x1065   :  { %v1610_v17 = vmul.f32 %v1608_v8, %v1558_v6 }
0x1067   :  { %v1611_v3 = vpack.c.bf16 %v1610_v17, %v1609_v15 }
0x1069   :  { %3769 = vmatmul.mubr.msk.bf16.vlgmr.msra.gmra.mrb[44].mxu0 %vm1644_vm6, %v1611_v3  ;;  %v3424_v3 = vld [vmem:[%s4962_s4 + $0x1] ss:$0 sm:$0xff] }
0x106a   :  { %3792 = vmatprep.mubr.msk.bf16.mxu0 %vm4176_vm1, %v4175_v16  ;;  %3789 = vmatpush3.bf16.msra.mxu0 %v3963_v36 }
0x106b   :  { %3790 = vmatprep.subr.bf16.mxu0 %v4175_v16 }
0x106e   :  { %3791 = vmatpush3.bf16.msra.mxu0 %v3965_v38 }
0x106f   :  { %3802 = vmatprep.subr.bf16.mxu0 %v4175_v16 }
0x113c   :  { %v1682_v18 = vpop.f32.mrb[44].mxu0 }
0x113d   :  { %v1689_v20 = vadd.f32 %v1682_v18, %v4582_v43  ;;  %v3770_v21 = vpop.f32.mrb[45].mxu0 }
0x113e   :  { %v1685_v22 = vpop.f32.mrb[46].mxu0 }
0x113f   :  { %v4634_v23 = vadd.f32 %v3414_v19, %v1689_v20  ;;  %v1690_v62 = vadd.f32 %v1685_v22, %v4585_v45  ;;  %v3771_v24 = vpop.f32.mrb[47].mxu0 }
0x1141   :  { %v4637_v25 = vadd.f32 %v3414_v19, %v1690_v62  ;;  %v1704_v26 = vsel %vm109_vm0, %v4634_v23, 0.0 }
0x1142   :  { %1705 = vadd.xlane.f32.xlu0 %v1704_v26 }
0x1143   :  { %v1707_v27 = vsel %vm109_vm0, %v4637_v25, 0.0 }
0x1144   :  { %1708 = vadd.xlane.f32.xlu1 %v1707_v27 }
0x11cf   :  { %v1706_v28 = vpop.xlane.xlu0 %1705 }
0x11d0   :  { %v1710_v29 = vmul.f32 0.03125, %v1706_v28 }
0x11d1   :  { %v1709_v43 = vpop.xlane.xlu1 %1708 }
0x11d2   :  { %v1712_v30 = vsub.f32 %v4634_v23, %v1710_v29  ;;  %v1711_v31 = vmul.f32 0.03125, %v1709_v43 }
0x11d4   :  { %v1713_v32 = vsub.f32 %v4637_v25, %v1711_v31  ;;  %v1714_v45 = vmul.f32 %v1712_v30, %v1712_v30 }
0x11d6   :  { %v1716_v33 = vsel %vm109_vm0, %v1714_v45, 0.0  ;;  %v1715_v2 = vmul.f32 %v1713_v32, %v1713_v32 }
0x11d7   :  { %1717 = vadd.xlane.f32.xlu0 %v1716_v33 }
0x11d8   :  { %v1719_v34 = vsel %vm109_vm0, %v1715_v2, 0.0 }
0x11d9   :  { %1720 = vadd.xlane.f32.xlu1 %v1719_v34 }
0x1264   :  { %v1718_v39 = vpop.xlane.xlu0 %1717 }
0x1265   :  { %v1722_v40 = vmul.f32 0.03125, %v1718_v39 }
0x1266   :  { %v1721_v41 = vpop.xlane.xlu1 %1720 }
0x1267   :  { %v1724_v42 = vadd.f32 1e-06, %v1722_v40  ;;  %v1723_v44 = vmul.f32 0.03125, %v1721_v41 }
0x1269   :  { %4022 = vrsqrt.f32 %v1724_v42  ;;  %v1725_v46 = vadd.f32 1e-06, %v1723_v44 }
0x126b   :  { %4024 = vrsqrt.f32 %v1725_v46 }
0x1273   :  { %v4023_v47 = vpop.eup %4022 }
0x1274   :  { %v1728_v49 = vmul.f32 %v4023_v47, %v1712_v30 }
0x1275   :  { %v4025_v50 = vpop.eup %4024 }
0x1276   :  { %v1736_v0 = vmul.f32 %v3417_v48, %v1728_v49  ;;  %v1729_v51 = vmul.f32 %v4025_v50, %v1713_v32 }
0x1278   :  { %v1737_v54 = vmul.f32 %v3417_v48, %v1729_v51  ;;  %v1744_v1 = vadd.f32 %v3418_v53, %v1736_v0 }
0x127a   :  { %v1745_v55 = vadd.f32 %v3418_v53, %v1737_v54 }
0x127c   :  { %v1746_v58 = vpack.c.bf16 %v1745_v55, %v1744_v1 }
0x127e   :  { %3777 = vmatmul.mubr.msk.bf16.vlgmr.msra.gmra.mrb[52].mxu1 %vm109_vm0, %v1746_v58  ;;  %3793 = vmatmul.mubr.msk.bf16.vlgmr.msra.gmra.mrb[48].mxu0 %vm109_vm0, %v1746_v58 }
0x127f   :  { %3781 = vmatpush3.bf16.msra.mxu1 %v3966_v56  ;;  %3784 = vmatprep.mubr.msk.bf16.mxu1 %vm4176_vm1, %v4175_v16 }
0x1280   :  { %3782 = vmatprep.subr.bf16.mxu1 %v4175_v16  ;;  %3804 = vmatprep.mubr.msk.bf16.mxu0 %vm4176_vm1, %v4175_v16 }
0x1283   :  { %3783 = vmatpush3.bf16.msra.mxu1 %v3967_v59 }
0x1284   :  { %3796 = vmatprep.subr.bf16.mxu1 %v4175_v16 }
0x1286   :  { %3785 = vmatmul.mubr.msk.bf16.vlgmr.msra.gmra.mrb[56].mxu1 %vm109_vm0, %v1746_v58 }
0x1287   :  { %3798 = vmatprep.mubr.msk.bf16.mxu1 %vm4176_vm1, %v4175_v16 }
0x1351   :  { %v1809_v60 = vpop.f32.mrb[52].mxu1  ;;  %v1941_v61 = vpop.f32.mrb[48].mxu0 }
0x1352   :  { %v3778_v63 = vpop.f32.mrb[53].mxu1  ;;  %v3794_v5 = vpop.f32.mrb[49].mxu0  ;;  %v1942_v18 = vadd.f32 %v3442_v14, %v1941_v61  ;;  %v1810_v21 = vadd.f32 %v3424_v3, %v1809_v60 }
0x1353   :  { %v1812_v52 = vpop.f32.mrb[54].mxu1  ;;  %v1944_v57 = vpop.f32.mrb[50].mxu0 }
0x1354   :  { %v3779_v9 = vpop.f32.mrb[55].mxu1  ;;  %v3795_v4 = vpop.f32.mrb[51].mxu0  ;;  %v1945_v22 = vadd.f32 %v3442_v14, %v1944_v57  ;;  %v4704_v24 = vpack.c.bf16 %v1942_v18, %v1942_v18  ;;  %v1813_v26 = vadd.f32 %v3424_v3, %v1812_v52  ;;  %v4707_v27 = vpack.c.bf16 %v1810_v21, %v1810_v21 }
0x1356   :  { %v4709_v28 = vpack.c.bf16 %v1945_v22, %v1945_v22  ;;  %v4711_v29 = vpack.c.bf16 %v1813_v26, %v1813_v26  ;;  %v2074_v43 = vsel %vm475_vm3, %v4704_v24, 0 }
0x1358   :  { %v2120_v30 = vsel %vm475_vm3, %v4709_v28, 0 }
0x1359   :  { %v1875_v11 = vpop.f32.mrb[56].mxu1 }
0x135a   :  { %v1876_v12 = vadd.f32 %v3433_v10, %v1875_v11  ;;  %v3786_v13 = vpop.f32.mrb[57].mxu1 }
0x135b   :  { %v1878_v6 = vpop.f32.mrb[58].mxu1 }
0x135c   :  { %v4692_v8 = vpack.c.bf16 %v1876_v12, %v1876_v12  ;;  %v1879_v15 = vadd.f32 %v3433_v10, %v1878_v6  ;;  %v3787_v17 = vpop.f32.mrb[59].mxu1 }
0x135e   :  { %v4697_v19 = vpack.c.bf16 %v1879_v15, %v1879_v15  ;;  %v1958_v20 = vsel %vm355_vm2, %v4692_v8, 0 }
0x135f   :  { %3797 = vmatpush3.bf16.xpose.msra.mxu1 %v1958_v20 }
0x1360   :  { %v2004_v62 = vsel %vm355_vm2, %v4697_v19, 0  ;;  %3808 = vmatprep.subr.bf16.mxu1 %v4175_v16 }
0x1361   :  { %3803 = vmatpush3.bf16.xpose.msra.mxu0 %v2004_v62 }
0x1362   :  { %3814 = vmatprep.subr.bf16.mxu0 %v4175_v16 }
0x1366   :  { %3799 = vmatmul.mubr.msk.bf16.vlgmr.msra.gmra.mrb[60].mxu1 %vm355_vm2, %v4707_v27 }
0x1367   :  { %3809 = vmatpush3.bf16.msra.mxu1 %v2074_v43  ;;  %3810 = vmatprep.mubr.msk.bf16.mxu1 %vm4176_vm1, %v4175_v16 }
0x1368   :  { %3805 = vmatmul.mubr.msk.bf16.vlgmr.msra.gmra.mrb[52].mxu0 %vm355_vm2, %v4711_v29  ;;  %3820 = vmatprep.subr.bf16.mxu1 %v4175_v16 }
0x1369   :  { %3815 = vmatpush3.bf16.msra.mxu0 %v2120_v30  ;;  %3816 = vmatprep.mubr.msk.bf16.mxu0 %vm4176_vm1, %v4175_v16 }
0x136a   :  { %3826 = vmatprep.subr.bf16.mxu0 %v4175_v16 }
0x1439   :  { %v1994_v31 = vpop.f32.mrb[60].mxu1 }
0x143a   :  { %v3800_v32 = vpop.f32.mrb[61].mxu1  ;;  %v2046_v45 = vsel %vm355_vm2, %v1994_v31, -inf }
0x143b   :  { %v2040_v33 = vpop.f32.mrb[52].mxu0  ;;  %2047 = vmax.xlane.f32.xlu0 %v2046_v45  ;;  %v1997_v2 = vpop.f32.mrb[62].mxu1 }
0x143c   :  { %v3801_v34 = vpop.f32.mrb[63].mxu1  ;;  %v3806_v35 = vpop.f32.mrb[53].mxu0  ;;  %v2049_v36 = vsel %vm355_vm2, %v2040_v33, -inf }
0x143d   :  { %2050 = vmax.xlane.f32.xlu1 %v2049_v36  ;;  %v2043_v37 = vpop.f32.mrb[54].mxu0 }
0x143e   :  { %v3807_v38 = vpop.f32.mrb[55].mxu0 }
0x144e   :  { %2221 = vrot.lane.b32.xlu1 %v4697_v19, %s4177_s23 }
0x14c8   :  { %v2048_v39 = vpop.xlane.xlu0 %2047 }
0x14c9   :  { %v2052_v40 = vsub.f32 %v1994_v31, %v2048_v39 }
0x14ca   :  { %v2051_v41 = vpop.xlane.xlu1 %2050 }
0x14cb   :  { %v2054_v42 = vmul.f32 1.442695, %v2052_v40  ;;  %v2053_v44 = vsub.f32 %v2040_v33, %v2051_v41 }
0x14cd   :  { %4026 = vpow2.f32 %v2054_v42  ;;  %v2056_v46 = vmul.f32 1.442695, %v2053_v44 }
0x14ce   :  { %v2222_v0 = vpop.permute.xlu1 %2221 }
0x14cf   :  { %4028 = vpow2.f32 %v2056_v46  ;;  %v2227_v63 = vsel %vm355_vm2, %v2222_v0, 0 }
0x14d7   :  { %v4027_v47 = vpop.eup %4026 }
0x14d8   :  { %v2058_v48 = vsel %vm355_vm2, %v4027_v47, 0.0 }
0x14d9   :  { %v4029_v49 = vpop.eup %4028  ;;  %2059 = vadd.xlane.f32.xlu0 %v2058_v48 }
0x14da   :  { %v2061_v50 = vsel %vm355_vm2, %v4029_v49, 0.0 }
0x14db   :  { %2062 = vadd.xlane.f32.xlu1 %v2061_v50 }
0x14ec   :  { %2166 = vrot.lane.b32.xlu1 %v4707_v27, %s4177_s23 }
0x14ef   :  { %2169 = vrot.lane.b32.xlu0 %v4692_v8, %s4177_s23 }
0x14f0   :  { %2218 = vrot.lane.b32.xlu1 %v4711_v29, %s4177_s23 }
0x1566   :  { %v2060_v51 = vpop.xlane.xlu0 %2059 }
0x1567   :  { %4030 = vrcp.f32 %v2060_v51  ;;  %v2164_v51 = vld [vmem:[#allocation5 + $0x10] sm:$0xf] }
0x1568   :  { %v2063_v53 = vpop.xlane.xlu1 %2062 }
0x1569   :  { %4032 = vrcp.f32 %v2063_v53 }
0x156a   :  { %v2170_v56 = vpop.permute.xlu0 %2169 }
0x156b   :  { %v2175_v60 = vsel %vm355_vm2, %v2170_v56, 0 }
0x156c   :  { %v2167_v5 = vpop.permute.xlu1 %2166 }
0x1570   :  { %v2219_v52 = vpop.permute.xlu1 %2218 }
0x1571   :  { %v4031_v54 = vpop.eup %4030 }
0x1572   :  { %v2066_v1 = vmul.f32 %v4031_v54, %v4027_v47  ;;  %v2393_v47 = vld [vmem:[#allocation5 + $0x14] sm:$0xf] }
0x1573   :  { %v4033_v55 = vpop.eup %4032  ;;  %v2398_v50 = vsel %vm475_vm3, %v2393_v47, 0 }
0x1574   :  { %v2067_v58 = vmul.f32 %v4033_v55, %v4029_v49  ;;  %v2068_v59 = vpack.c.bf16 %v2066_v1, %v2066_v1  ;;  %v2445_v1 = vsel %vm475_vm3, %v2164_v51, 0 }
0x1576   :  { %3811 = vmatmul.mubr.msk.bf16.vlgmr.msra.gmra.mrb[64].mxu1 %vm355_vm2, %v2068_v59  ;;  %v2069_v61 = vpack.c.bf16 %v2067_v58, %v2067_v58 }
0x1577   :  { %3821 = vmatpush3.bf16.xpose.msra.mxu1 %v2175_v60  ;;  %3822 = vmatprep.mubr.msk.bf16.mxu1 %vm4176_vm1, %v4175_v16 }
0x1578   :  { %3817 = vmatmul.mubr.msk.bf16.vlgmr.msra.gmra.mrb[56].mxu0 %vm355_vm2, %v2069_v61  ;;  %3832 = vmatprep.subr.bf16.mxu1 %v4175_v16 }
0x1579   :  { %3827 = vmatpush3.bf16.xpose.msra.mxu0 %v2227_v63  ;;  %3828 = vmatprep.mubr.msk.bf16.mxu0 %vm4176_vm1, %v4175_v16 }
0x157a   :  { %3838 = vmatprep.subr.bf16.mxu0 %v4175_v16 }
0x157e   :  { %3823 = vmatmul.mubr.msk.bf16.vlgmr.msra.gmra.mrb[68].mxu1 %vm355_vm2, %v2167_v5 }
0x157f   :  { %3834 = vmatprep.mubr.msk.bf16.mxu1 %vm4176_vm1, %v4175_v16 }
0x1580   :  { %3829 = vmatmul.mubr.msk.bf16.vlgmr.msra.gmra.mrb[60].mxu0 %vm355_vm2, %v2219_v52 }
0x1581   :  { %3840 = vmatprep.mubr.msk.bf16.mxu0 %vm4176_vm1, %v4175_v16 }
0x1649   :  { %v4755_v57 = vpop.f32.mrb[64].mxu1 }
0x164a   :  { %v3812_v9 = vpop.f32.mrb[65].mxu1 }
0x164b   :  { %v2113_v4 = vpop.f32.mrb[66].mxu1  ;;  %v4757_v10 = vpop.f32.mrb[56].mxu0 }
0x164c   :  { %v2162_v11 = vpack.c.bf16 %v4757_v10, %v4755_v57  ;;  %v3813_v12 = vpop.f32.mrb[67].mxu1  ;;  %v3818_v13 = vpop.f32.mrb[57].mxu0 }
0x164d   :  { %v2159_v14 = vpop.f32.mrb[58].mxu0 }
0x164e   :  { %v3819_v6 = vpop.f32.mrb[59].mxu0 }
0x1651   :  { %v2211_v15 = vpop.f32.mrb[68].mxu1 }
0x1652   :  { %v3824_v17 = vpop.f32.mrb[69].mxu1  ;;  %v2269_v3 = vsel %vm355_vm2, %v2211_v15, -inf }
0x1653   :  { %v2263_v18 = vpop.f32.mrb[60].mxu0  ;;  %2270 = vmax.xlane.f32.xlu0 %v2269_v3  ;;  %v2214_v20 = vpop.f32.mrb[70].mxu1 }
0x1654   :  { %v3825_v21 = vpop.f32.mrb[71].mxu1  ;;  %v3830_v22 = vpop.f32.mrb[61].mxu0  ;;  %v2272_v62 = vsel %vm355_vm2, %v2263_v18, -inf }
0x1655   :  { %2273 = vmax.xlane.f32.xlu1 %v2272_v62  ;;  %v2266_v26 = vpop.f32.mrb[62].mxu0 }
0x1656   :  { %v3831_v43 = vpop.f32.mrb[63].mxu0 }
0x1666   :  { %2343 = vrot.lane.b32.xlu1 %v4709_v28, %s4177_s23 }
0x166a   :  { %2490 = vrot.lane.b32.xlu1 %v4692_v8, %s4178_s25 }
0x166e   :  { %2540 = vrot.lane.b32.xlu1 %v4697_v19, %s4178_s25 }
0x1672   :  { %2538 = vrot.lane.b32.xlu1 %v4711_v29, %s4178_s25 }
0x16e0   :  { %v2271_v30 = vpop.xlane.xlu0 %2270 }
0x16e1   :  { %v2275_v31 = vsub.f32 %v2211_v15, %v2271_v30 }
0x16e2   :  { %v2274_v32 = vpop.xlane.xlu1 %2273 }
0x16e3   :  { %v2277_v45 = vmul.f32 1.442695, %v2275_v31  ;;  %v2276_v33 = vsub.f32 %v2263_v18, %v2274_v32 }
0x16e5   :  { %4034 = vpow2.f32 %v2277_v45  ;;  %v2279_v2 = vmul.f32 1.442695, %v2276_v33 }
0x16e6   :  { %v2344_v34 = vpop.permute.xlu1 %2343 }
0x16e7   :  { %4036 = vpow2.f32 %v2279_v2  ;;  %v2349_v35 = vsel %vm475_vm3, %v2344_v34, 0 }
0x16e8   :  { %3839 = vmatpush3.bf16.msra.mxu0 %v2349_v35 }
0x16e9   :  { %3850 = vmatprep.subr.bf16.mxu0 %v4175_v16 }
0x16ea   :  { %v2491_v55 = vpop.permute.xlu1 %2490 }
0x16eb   :  { %v2496_v10 = vsel %vm355_vm2, %v2491_v55, 0 }
0x16ee   :  { %v2541_v56 = vpop.permute.xlu1 %2540 }
0x16ef   :  { %v4035_v36 = vpop.eup %4034  ;;  %v2546_v58 = vsel %vm355_vm2, %v2541_v56, 0 }
0x16f0   :  { %v2281_v37 = vsel %vm355_vm2, %v4035_v36, 0.0 }
0x16f1   :  { %v4037_v38 = vpop.eup %4036  ;;  %2282 = vadd.xlane.f32.xlu0 %v2281_v37 }
0x16f2   :  { %v2284_v39 = vsel %vm355_vm2, %v4037_v38, 0.0  ;;  %v2539_v59 = vpop.permute.xlu1 %2538 }
0x16f5   :  { %2285 = vadd.xlane.f32.xlu0 %v2284_v39 }
0x170b   :  { %2294 = vrot.lane.b32.xlu0 %v4704_v24, %s4177_s23 }
0x170f   :  { %2488 = vrot.lane.b32.xlu0 %v4707_v27, %s4178_s25 }
0x177e   :  { %v2283_v40 = vpop.xlane.xlu0 %2282 }
0x177f   :  { %4038 = vrcp.f32 %v2283_v40 }
0x1782   :  { %v2286_v41 = vpop.xlane.xlu0 %2285 }
0x1783   :  { %4040 = vrcp.f32 %v2286_v41 }
0x1786   :  { %v2295_v42 = vpop.permute.xlu0 %2294 }
0x1787   :  { %v2300_v44 = vsel %vm475_vm3, %v2295_v42, 0 }
0x1788   :  { %3833 = vmatpush3.bf16.msra.mxu1 %v2300_v44 }
0x1789   :  { %v4039_v46 = vpop.eup %4038  ;;  %3844 = vmatprep.subr.bf16.mxu1 %v4175_v16 }
0x178a   :  { %v2289_v48 = vmul.f32 %v4039_v46, %v4035_v36  ;;  %v2489_v14 = vpop.permute.xlu0 %2488 }
0x178c   :  { %v2291_v49 = vpack.c.bf16 %v2289_v48, %v2289_v48 }
0x178d   :  { %v4041_v0 = vpop.eup %4040 }
0x178e   :  { %v2290_v53 = vmul.f32 %v4041_v0, %v4037_v38  ;;  %3835 = vmatmul.mubr.msk.bf16.vlgmr.msra.gmra.mrb[72].mxu1 %vm355_vm2, %v2291_v49 }
0x178f   :  { %3845 = vmatpush3.bf16.msra.mxu1 %v2398_v50  ;;  %3846 = vmatprep.mubr.msk.bf16.mxu1 %vm4176_vm1, %v4175_v16 }
0x1790   :  { %v2292_v54 = vpack.c.bf16 %v2290_v53, %v2290_v53  ;;  %3856 = vmatprep.subr.bf16.mxu1 %v4175_v16 }
0x1792   :  { %3841 = vmatmul.mubr.msk.bf16.vlgmr.msra.gmra.mrb[64].mxu0 %vm355_vm2, %v2292_v54 }
0x1793   :  { %3851 = vmatpush3.bf16.msra.mxu0 %v2445_v1  ;;  %3852 = vmatprep.mubr.msk.bf16.mxu0 %vm4176_vm1, %v4175_v16 }
0x1794   :  { %3862 = vmatprep.subr.bf16.mxu0 %v4175_v16 }
0x179a   :  { %3853 = vmatmul.mubr.msk.bf16.vlgmr.msra.gmra.mrb[68].mxu0 %vm355_vm2, %v2162_v11 }
0x179b   :  { %3864 = vmatprep.mubr.msk.bf16.mxu0 %vm4176_vm1, %v4175_v16 }
0x179c   :  { %3863 = vmatpush3.bf16.xpose.msra.mxu0 %v2546_v58 }
0x179d   :  { %3874 = vmatprep.subr.bf16.mxu0 %v4175_v16 }
0x17a3   :  { %3865 = vmatmul.mubr.msk.bf16.vlgmr.msra.gmra.mrb[72].mxu0 %vm355_vm2, %v2539_v59 }
0x17a4   :  { %3876 = vmatprep.mubr.msk.bf16.mxu0 %vm4176_vm1, %v4175_v16 }
0x1861   :  { %v2336_v60 = vpop.f32.mrb[72].mxu1 }
0x1862   :  { %v3836_v61 = vpop.f32.mrb[73].mxu1 }
0x1863   :  { %v2339_v63 = vpop.f32.mrb[74].mxu1 }
0x1864   :  { %v3837_v5 = vpop.f32.mrb[75].mxu1  ;;  %v2710_v63 = vld [vmem:[#allocation5 + $0x18] sm:$0xf] }
0x1865   :  { %v2385_v52 = vpop.f32.mrb[64].mxu0  ;;  %v2715_v5 = vsel %vm475_vm3, %v2710_v63, 0 }
0x1866   :  { %v2391_v57 = vpack.c.bf16 %v2385_v52, %v2336_v60  ;;  %v3842_v9 = vpop.f32.mrb[65].mxu0 }
0x1867   :  { %v2388_v4 = vpop.f32.mrb[66].mxu0 }
0x1868   :  { %v3843_v11 = vpop.f32.mrb[67].mxu0  ;;  %3847 = vmatmul.mubr.msk.bf16.vlgmr.msra.gmra.mrb[76].mxu1 %vm355_vm2, %v2391_v57 }
0x1869   :  { %3857 = vmatpush3.bf16.xpose.msra.mxu1 %v2496_v10  ;;  %3858 = vmatprep.mubr.msk.bf16.mxu1 %vm4176_vm1, %v4175_v16 }
0x186a   :  { %3868 = vmatprep.subr.bf16.mxu1 %v4175_v16 }
0x186d   :  { %v2481_v12 = vpop.f32.mrb[68].mxu0 }
0x186e   :  { %v3854_v13 = vpop.f32.mrb[69].mxu0 }
0x186f   :  { %v2484_v6 = vpop.f32.mrb[70].mxu0 }
0x1870   :  { %v3855_v15 = vpop.f32.mrb[71].mxu0  ;;  %3859 = vmatmul.mubr.msk.bf16.vlgmr.msra.gmra.mrb[80].mxu1 %vm355_vm2, %v2489_v14 }
0x1871   :  { %3870 = vmatprep.mubr.msk.bf16.mxu1 %vm4176_vm1, %v4175_v16 }
0x1876   :  { %v2582_v17 = vpop.f32.mrb[72].mxu0 }
0x1877   :  { %v3866_v3 = vpop.f32.mrb[73].mxu0  ;;  %v2591_v18 = vsel %vm355_vm2, %v2582_v17, -inf }
0x1878   :  { %2592 = vmax.xlane.f32.xlu1 %v2591_v18  ;;  %v2585_v20 = vpop.f32.mrb[74].mxu0 }
0x1879   :  { %v3867_v21 = vpop.f32.mrb[75].mxu0 }
0x1889   :  { %2660 = vrot.lane.b32.xlu1 %v4709_v28, %s4178_s25 }
0x188d   :  { %2762 = vrot.lane.b32.xlu1 %v4692_v8, %s4179_s0 }
0x1891   :  { %2812 = vrot.lane.b32.xlu1 %v4697_v19, %s4179_s0 }
0x1895   :  { %2810 = vrot.lane.b32.xlu1 %v4711_v29, %s4179_s0 }
0x1905   :  { %v2593_v22 = vpop.xlane.xlu1 %2592 }
0x1906   :  { %v2595_v43 = vsub.f32 %v2582_v17, %v2593_v22 }
0x1908   :  { %v2598_v30 = vmul.f32 1.442695, %v2595_v43 }
0x1909   :  { %v2661_v62 = vpop.permute.xlu1 %2660 }
0x190a   :  { %v2666_v26 = vsel %vm475_vm3, %v2661_v62, 0  ;;  %4042 = vpow2.f32 %v2598_v30 }
0x190b   :  { %3875 = vmatpush3.bf16.msra.mxu0 %v2666_v26 }
0x190c   :  { %3886 = vmatprep.subr.bf16.mxu0 %v4175_v16 }
0x190d   :  { %v2763_v49 = vpop.permute.xlu1 %2762 }
0x190e   :  { %v2768_v0 = vsel %vm355_vm2, %v2763_v49, 0 }
0x1911   :  { %v2813_v11 = vpop.permute.xlu1 %2812 }
0x1912   :  { %v2818_v15 = vsel %vm355_vm2, %v2813_v11, 0 }
0x1914   :  { %v4043_v35 = vpop.eup %4042 }
0x1915   :  { %v2603_v38 = vsel %vm355_vm2, %v4043_v35, 0.0  ;;  %v2811_v3 = vpop.permute.xlu1 %2810 }
0x193b   :  { %v2434_v31 = vpop.f32.mrb[76].mxu1 }
0x193c   :  { %v4821_v32 = vadd.f32 %v2481_v12, %v2434_v31  ;;  %v3848_v8 = vpop.f32.mrb[77].mxu1 }
0x193d   :  { %v2437_v45 = vpop.f32.mrb[78].mxu1 }
0x193e   :  { %v4823_v33 = vadd.f32 %v2484_v6, %v2437_v45  ;;  %v3849_v19 = vpop.f32.mrb[79].mxu1 }
0x1943   :  { %v2532_v2 = vpop.f32.mrb[80].mxu1 }
0x1944   :  { %v3860_v29 = vpop.f32.mrb[81].mxu1  ;;  %v2588_v34 = vsel %vm355_vm2, %v2532_v2, -inf }
0x1945   :  { %2589 = vmax.xlane.f32.xlu0 %v2588_v34  ;;  %v2535_v36 = vpop.f32.mrb[82].mxu1 }
0x1946   :  { %v3861_v37 = vpop.f32.mrb[83].mxu1 }
0x1949   :  { %2604 = vadd.xlane.f32.xlu0 %v2603_v38 }
0x19d2   :  { %v2590_v39 = vpop.xlane.xlu0 %2589 }
0x19d3   :  { %v2594_v40 = vsub.f32 %v2532_v2, %v2590_v39 }
0x19d5   :  { %v2596_v41 = vmul.f32 1.442695, %v2594_v40 }
0x19d6   :  { %v2605_v42 = vpop.xlane.xlu0 %2604 }
0x19d7   :  { %4044 = vpow2.f32 %v2596_v41 }
0x19d8   :  { %4046 = vrcp.f32 %v2605_v42 }
0x19e1   :  { %v4045_v44 = vpop.eup %4044 }
0x19e2   :  { %v4047_v46 = vpop.eup %4046  ;;  %v2600_v47 = vsel %vm355_vm2, %v4045_v44, 0.0 }
0x19e3   :  { %v2609_v48 = vmul.f32 %v4047_v46, %v4043_v35  ;;  %2601 = vadd.xlane.f32.xlu0 %v2600_v47 }
0x19e5   :  { %v2611_v50 = vpack.c.bf16 %v2609_v48, %v2609_v48 }
0x19e7   :  { %3877 = vmatmul.mubr.msk.bf16.vlgmr.msra.gmra.mrb[76].mxu0 %vm355_vm2, %v2611_v50 }
0x19e8   :  { %3887 = vmatpush3.bf16.xpose.msra.mxu0 %v2768_v0  ;;  %3888 = vmatprep.mubr.msk.bf16.mxu0 %vm4176_vm1, %v4175_v16  ;;  %v2982_v0 = vld [vmem:[#allocation5 + $0x1c] sm:$0xf] }
0x19e9   :  { %3898 = vmatprep.subr.bf16.mxu0 %v4175_v16 }
0x19f9   :  { %2612 = vrot.lane.b32.xlu0 %v4704_v24, %s4178_s25 }
0x19fd   :  { %2760 = vrot.lane.b32.xlu0 %v4707_v27, %s4179_s0 }
0x1a70   :  { %v2602_v51 = vpop.xlane.xlu0 %2601 }
0x1a71   :  { %4048 = vrcp.f32 %v2602_v51  ;;  %v2987_v51 = vsel %vm475_vm3, %v2982_v0, 0 }
0x1a74   :  { %v2613_v53 = vpop.permute.xlu0 %2612 }
0x1a75   :  { %v2618_v54 = vsel %vm475_vm3, %v2613_v53, 0 }
0x1a76   :  { %3869 = vmatpush3.bf16.msra.mxu1 %v2618_v54 }
0x1a77   :  { %3880 = vmatprep.subr.bf16.mxu1 %v4175_v16 }
0x1a78   :  { %v2761_v1 = vpop.permute.xlu0 %2760 }
0x1a79   :  { %3889 = vmatmul.mubr.msk.bf16.vlgmr.msra.gmra.mrb[80].mxu0 %vm355_vm2, %v2761_v1 }
0x1a7a   :  { %3900 = vmatprep.mubr.msk.bf16.mxu0 %vm4176_vm1, %v4175_v16 }
0x1a7b   :  { %v4049_v55 = vpop.eup %4048 }
0x1a7c   :  { %v2608_v56 = vmul.f32 %v4049_v55, %v4045_v44 }
0x1a7e   :  { %v2610_v58 = vpack.c.bf16 %v2608_v56, %v2608_v56 }
0x1a80   :  { %3871 = vmatmul.mubr.msk.bf16.vlgmr.msra.gmra.mrb[84].mxu1 %vm355_vm2, %v2610_v58 }
0x1a81   :  { %3882 = vmatprep.mubr.msk.bf16.mxu1 %vm4176_vm1, %v4175_v16  ;;  %3881 = vmatpush3.bf16.msra.mxu1 %v2715_v5 }
0x1a82   :  { %3892 = vmatprep.subr.bf16.mxu1 %v4175_v16 }
0x1aba   :  { %v2702_v27 = vpop.f32.mrb[76].mxu0 }
0x1abb   :  { %v3878_v59 = vpop.f32.mrb[77].mxu0 }
0x1abc   :  { %v2705_v60 = vpop.f32.mrb[78].mxu0 }
0x1abd   :  { %v3879_v61 = vpop.f32.mrb[79].mxu0 }
0x1b4c   :  { %v2804_v52 = vpop.f32.mrb[80].mxu0 }
0x1b4d   :  { %v3890_v57 = vpop.f32.mrb[81].mxu0  ;;  %v2860_v9 = vsel %vm355_vm2, %v2804_v52, -inf }
0x1b4e   :  { %2861 = vmax.xlane.f32.xlu0 %v2860_v9  ;;  %v2807_v4 = vpop.f32.mrb[82].mxu0 }
0x1b4f   :  { %v3891_v10 = vpop.f32.mrb[83].mxu0 }
0x1b53   :  { %v2654_v12 = vpop.f32.mrb[84].mxu1 }
0x1b54   :  { %v2708_v13 = vpack.c.bf16 %v2702_v27, %v2654_v12  ;;  %v3872_v14 = vpop.f32.mrb[85].mxu1 }
0x1b55   :  { %v2657_v6 = vpop.f32.mrb[86].mxu1 }
0x1b56   :  { %v3873_v17 = vpop.f32.mrb[87].mxu1  ;;  %3883 = vmatmul.mubr.msk.bf16.vlgmr.msra.gmra.mrb[88].mxu1 %vm355_vm2, %v2708_v13 }
0x1b57   :  { %3893 = vmatpush3.bf16.xpose.msra.mxu1 %v2818_v15  ;;  %3894 = vmatprep.mubr.msk.bf16.mxu1 %vm4176_vm1, %v4175_v16 }
0x1b58   :  { %3904 = vmatprep.subr.bf16.mxu1 %v4175_v16 }
0x1b5e   :  { %3895 = vmatmul.mubr.msk.bf16.vlgmr.msra.gmra.mrb[92].mxu1 %vm355_vm2, %v2811_v3 }
0x1b5f   :  { %3906 = vmatprep.mubr.msk.bf16.mxu1 %vm4176_vm1, %v4175_v16 }
0x1bdb   :  { %v2862_v18 = vpop.xlane.xlu0 %2861 }
0x1bdc   :  { %v2866_v20 = vsub.f32 %v2804_v52, %v2862_v18  ;;  %v3467_v52 = vld [vmem:[%s4968_s10 + $0x1] ss:$0 sm:$0xff] }
0x1bde   :  { %v2868_v21 = vmul.f32 1.442695, %v2866_v20 }
0x1be0   :  { %4050 = vpow2.f32 %v2868_v21 }
0x1bea   :  { %v4051_v22 = vpop.eup %4050 }
0x1beb   :  { %v2872_v62 = vsel %vm355_vm2, %v4051_v22, 0.0 }
0x1bec   :  { %2873 = vadd.xlane.f32.xlu0 %v2872_v62 }
0x1c29   :  { %v2751_v26 = vpop.f32.mrb[88].mxu1 }
0x1c2a   :  { %v2758_v43 = vadd.f32 %v2751_v26, %v4821_v32  ;;  %v3884_v30 = vpop.f32.mrb[89].mxu1  ;;  %v3968_v26 = vld [vmem:[#allocation7 + $0x10] sm:$0xff]  }
0x1c2b   :  { %v2754_v31 = vpop.f32.mrb[90].mxu1 }
0x1c2c   :  { %v2759_v8 = vadd.f32 %v2754_v31, %v4823_v33  ;;  %v3885_v45 = vpop.f32.mrb[91].mxu1 }
0x1c31   :  { %v2854_v19 = vpop.f32.mrb[92].mxu1 }
0x1c32   :  { %v3896_v2 = vpop.f32.mrb[93].mxu1  ;;  %v2863_v29 = vsel %vm355_vm2, %v2854_v19, -inf }
0x1c33   :  { %2864 = vmax.xlane.f32.xlu1 %v2863_v29  ;;  %v2857_v34 = vpop.f32.mrb[94].mxu1 }
0x1c34   :  { %v3897_v35 = vpop.f32.mrb[95].mxu1  ;;  %v3470_v34 = vld [vmem:[%s4969_s11 + $0x1] ss:$0 sm:$0xff] }
0x1c44   :  { %2932 = vrot.lane.b32.xlu1 %v4709_v28, %s4179_s0 }
0x1c79   :  { %v2874_v41 = vpop.xlane.xlu0 %2873 }
0x1cc0   :  { %v2865_v36 = vpop.xlane.xlu1 %2864 }
0x1cc1   :  { %v2867_v37 = vsub.f32 %v2854_v19, %v2865_v36 }
0x1cc3   :  { %v2870_v38 = vmul.f32 1.442695, %v2867_v37 }
0x1cc4   :  { %v2933_v39 = vpop.permute.xlu1 %2932 }
0x1cc5   :  { %4052 = vpow2.f32 %v2870_v38  ;;  %v2938_v32 = vsel %vm475_vm3, %v2933_v39, 0  ;;  %v3471_v39 = vld [vmem:[%s4970_s12 + $0x1] ss:$0 sm:$0xff] }
0x1cc6   :  { %3905 = vmatpush3.bf16.msra.mxu1 %v2938_v32  ;;  %4054 = vrcp.f32 %v2874_v41 }
0x1cc7   :  { %3916 = vmatprep.subr.bf16.mxu1 %v4175_v16 }
0x1ccf   :  { %v4053_v33 = vpop.eup %4052 }
0x1cd0   :  { %v2875_v40 = vsel %vm355_vm2, %v4053_v33, 0.0  ;;  %v4055_v28 = vpop.eup %4054 }
0x1cd1   :  { %2876 = vadd.xlane.f32.xlu0 %v2875_v40  ;;  %v2880_v44 = vmul.f32 %v4055_v28, %v4051_v22  ;;  %v3970_v28 = vld [vmem:[%s4973_s15 + $0x20] sm:$0xff]  }
0x1cd3   :  { %v2882_v48 = vpack.c.bf16 %v2880_v44, %v2880_v44  ;;  %v3972_v44 = vld [vmem:[%s4973_s15 + $0x30] sm:$0xff]  }
0x1ce7   :  { %2884 = vrot.lane.b32.xlu0 %v4704_v24, %s4179_s0 }
0x1d5e   :  { %v2877_v42 = vpop.xlane.xlu0 %2876 }
0x1d5f   :  { %4056 = vrcp.f32 %v2877_v42  ;;  %v3971_v42 = vld [vmem:[%s4973_s15 + $0x28] sm:$0xff]  }
0x1d62   :  { %v2885_v46 = vpop.permute.xlu0 %2884 }
0x1d63   :  { %v2890_v47 = vsel %vm475_vm3, %v2885_v46, 0  ;;  %v3973_v46 = vld [vmem:[%s4973_s15 + $0x38] sm:$0xff]  }
0x1d64   :  { %3899 = vmatpush3.bf16.msra.mxu0 %v2890_v47  ;;  %v3473_v47 = vld [vmem:[%s4972_s14 + $0x1] ss:$0 sm:$0xff] }
0x1d65   :  { %3910 = vmatprep.subr.bf16.mxu0 %v4175_v16 }
0x1d67   :  { %3901 = vmatmul.mubr.msk.bf16.vlgmr.msra.gmra.mrb[84].mxu0 %vm355_vm2, %v2882_v48 }
0x1d68   :  { %3912 = vmatprep.mubr.msk.bf16.mxu0 %vm4176_vm1, %v4175_v16  ;;  %3911 = vmatpush3.bf16.msra.mxu0 %v2987_v51 }
0x1d69   :  { %v4057_v49 = vpop.eup %4056  ;;  %3924 = vmatprep.subr.bf16.mxu0 %v4175_v16 }
0x1d6a   :  { %v2881_v24 = vmul.f32 %v4057_v49, %v4053_v33 }
0x1d6c   :  { %v2883_v50 = vpack.c.bf16 %v2881_v24, %v2881_v24 }
0x1d6e   :  { %3907 = vmatmul.mubr.msk.bf16.vlgmr.msra.gmra.mrb[96].mxu1 %vm355_vm2, %v2883_v50 }
0x1d6f   :  { %3920 = vmatprep.mubr.msk.bf16.mxu1 %vm4176_vm1, %v4175_v16  ;;  %3917 = vmatpush3.bf16.msra.mxu1 %v3968_v26 }
0x1d70   :  { %3918 = vmatprep.subr.bf16.mxu1 %v4175_v16 }
0x1e3a   :  { %v2926_v53 = vpop.f32.mrb[84].mxu0 }
0x1e3b   :  { %v3902_v54 = vpop.f32.mrb[85].mxu0 }
0x1e3c   :  { %v2929_v1 = vpop.f32.mrb[86].mxu0 }
0x1e3d   :  { %v3903_v55 = vpop.f32.mrb[87].mxu0 }
0x1e41   :  { %v2974_v56 = vpop.f32.mrb[96].mxu1 }
0x1e42   :  { %v2980_v58 = vpack.c.bf16 %v2974_v56, %v2926_v53  ;;  %v3908_v27 = vpop.f32.mrb[97].mxu1 }
0x1e43   :  { %v2977_v59 = vpop.f32.mrb[98].mxu1 }
0x1e44   :  { %v3909_v60 = vpop.f32.mrb[99].mxu1  ;;  %3913 = vmatmul.mubr.msk.bf16.vlgmr.msra.gmra.mrb[88].mxu0 %vm355_vm2, %v2980_v58 }
0x1e45   :  { %3932 = vmatprep.mubr.msk.bf16.mxu0 %vm4176_vm1, %v4175_v16  ;;  %3925 = vmatpush3.bf16.msra.mxu0 %v3970_v28 }
0x1e46   :  { %3926 = vmatprep.subr.bf16.mxu0 %v4175_v16 }
0x1e49   :  { %3927 = vmatpush3.bf16.msra.mxu0 %v3971_v42 }
0x1e4a   :  { %3928 = vmatprep.subr.bf16.mxu0 %v4175_v16 }
0x1e4d   :  { %3929 = vmatpush3.bf16.msra.mxu0 %v3972_v44  ;;  %v3491_v44 = vld [vmem:[%s4974_s16 + $0x1] ss:$0 sm:$0xff] }
0x1e4e   :  { %3930 = vmatprep.subr.bf16.mxu0 %v4175_v16 }
0x1e51   :  { %3931 = vmatpush3.bf16.msra.mxu0 %v3973_v46 }
0x1f17   :  { %v3023_v61 = vpop.f32.mrb[88].mxu0 }
0x1f18   :  { %v3030_v63 = vadd.f32 %v3023_v61, %v2758_v43  ;;  %v3914_v5 = vpop.f32.mrb[89].mxu0  ;;  %v3969_v43 = vld [vmem:[#allocation7 + $0x18] sm:$0xff]  }
0x1f19   :  { %v3026_v57 = vpop.f32.mrb[90].mxu0  ;;  %3919 = vmatpush3.bf16.msra.mxu1 %v3969_v43 }
0x1f1a   :  { %v3032_v9 = vadd.f32 %v3030_v63, %v4634_v23  ;;  %v3031_v4 = vadd.f32 %v3026_v57, %v2759_v8  ;;  %v3915_v10 = vpop.f32.mrb[91].mxu0 }
0x1f1c   :  { %v4884_v11 = vadd.f32 %v3467_v52, %v3032_v9  ;;  %v3033_v12 = vadd.f32 %v3031_v4, %v4637_v25 }
0x1f1e   :  { %v4887_v13 = vadd.f32 %v3467_v52, %v3033_v12  ;;  %v3048_v14 = vsel %vm109_vm0, %v4884_v11, 0.0 }
0x1f1f   :  { %3049 = vadd.xlane.f32.xlu1 %v3048_v14 }
0x1f20   :  { %v3051_v6 = vsel %vm109_vm0, %v4887_v13, 0.0 }
0x1f21   :  { %3052 = vadd.xlane.f32.xlu0 %v3051_v6 }
0x1fac   :  { %v3050_v15 = vpop.xlane.xlu1 %3049 }
0x1fad   :  { %v3054_v17 = vmul.f32 0.03125, %v3050_v15 }
0x1fae   :  { %v3053_v3 = vpop.xlane.xlu0 %3052 }
0x1faf   :  { %v3056_v23 = vsub.f32 %v4884_v11, %v3054_v17  ;;  %v3055_v18 = vmul.f32 0.03125, %v3053_v3 }
0x1fb1   :  { %v3057_v20 = vsub.f32 %v4887_v13, %v3055_v18  ;;  %v3058_v21 = vmul.f32 %v3056_v23, %v3056_v23 }
0x1fb3   :  { %v3060_v25 = vsel %vm109_vm0, %v3058_v21, 0.0  ;;  %v3059_v22 = vmul.f32 %v3057_v20, %v3057_v20 }
0x1fb4   :  { %3061 = vadd.xlane.f32.xlu0 %v3060_v25 }
0x1fb5   :  { %v3063_v62 = vsel %vm109_vm0, %v3059_v22, 0.0 }
0x1fb6   :  { %3064 = vadd.xlane.f32.xlu1 %v3063_v62 }
0x2041   :  { %v3062_v30 = vpop.xlane.xlu0 %3061 }
0x2042   :  { %v3066_v31 = vmul.f32 0.03125, %v3062_v30 }
0x2043   :  { %v3065_v8 = vpop.xlane.xlu1 %3064 }
0x2044   :  { %v3068_v45 = vadd.f32 1e-06, %v3066_v31  ;;  %v3067_v19 = vmul.f32 0.03125, %v3065_v8 }
0x2046   :  { %4058 = vrsqrt.f32 %v3068_v45  ;;  %v3069_v2 = vadd.f32 1e-06, %v3067_v19 }
0x2048   :  { %4060 = vrsqrt.f32 %v3069_v2 }
0x2050   :  { %v4059_v29 = vpop.eup %4058 }
0x2051   :  { %v3072_v35 = vmul.f32 %v4059_v29, %v3056_v23 }
0x2052   :  { %v4061_v36 = vpop.eup %4060 }
0x2053   :  { %v3080_v37 = vmul.f32 %v3470_v34, %v3072_v35  ;;  %v3073_v38 = vmul.f32 %v4061_v36, %v3057_v20 }
0x2055   :  { %v3081_v32 = vmul.f32 %v3470_v34, %v3073_v38  ;;  %v3088_v33 = vadd.f32 %v3471_v39, %v3080_v37 }
0x2057   :  { %v3089_v40 = vadd.f32 %v3471_v39, %v3081_v32 }
0x2059   :  { %v3090_v41 = vpack.c.bf16 %v3089_v40, %v3088_v33 }
0x205b   :  { %3921 = vmatmul.mubr.msk.bf16.vlgmr.msra.gmra.mrb[100].mxu1 %vm109_vm0, %v3090_v41 }
0x212e   :  { %v3153_v48 = vpop.f32.mrb[100].mxu1 }
0x212f   :  { %v3154_v49 = vadd.f32 %v3473_v47, %v3153_v48  ;;  %v3922_v24 = vpop.f32.mrb[101].mxu1 }
0x2130   :  { %v3156_v50 = vpop.f32.mrb[102].mxu1 }
0x2131   :  { %v3162_v0 = vmul.f32 0.70710677, %v3154_v49  ;;  %v3157_v51 = vadd.f32 %v3473_v47, %v3156_v50  ;;  %v3923_v53 = vpop.f32.mrb[103].mxu1  ;;  %v3160_v39 = vmul.f32 0.5, %v3154_v49 }
0x2133   :  { %v3168_v54 = vand.u32 2147483647, %v3162_v0  ;;  %v3163_v1 = vmul.f32 0.70710677, %v3157_v51  ;;  %vm3164_vm7 = vcmp.ge.f32.partialorder %v3162_v0, 0.0  ;;  %v3161_v32 = vmul.f32 0.5, %v3157_v51 }
0x2134   :  { %v3166_v2 = vsel %vm3164_vm7, 1.0, %v4180_v7 }
0x2135   :  { %v3170_v55 = vmul.f32 0.3275911, %v3168_v54  ;;  %v3169_v16 = vand.u32 2147483647, %v3163_v1  ;;  %v3196_v59 = vsub.f32 0.0, %v3168_v54  ;;  %vm3165_vm8 = vcmp.ge.f32.partialorder %v3163_v1, 0.0 }
0x2136   :  { %v3167_v36 = vsel %vm3165_vm8, 1.0, %v4180_v7 }
0x2137   :  { %v3172_v56 = vadd.f32 1.0, %v3170_v55  ;;  %v3171_v58 = vmul.f32 0.3275911, %v3169_v16  ;;  %v3197_v60 = vsub.f32 0.0, %v3169_v16  ;;  %v3198_v63 = vmul.f32 %v3196_v59, %v3168_v54 }
0x2139   :  { %4062 = vrcp.f32 %v3172_v56  ;;  %v3173_v27 = vadd.f32 1.0, %v3171_v58  ;;  %v3199_v9 = vmul.f32 %v3197_v60, %v3169_v16  ;;  %v3200_v4 = vmul.f32 1.442695, %v3198_v63 }
0x213b   :  { %4064 = vrcp.f32 %v3173_v27  ;;  %v3202_v15 = vmul.f32 1.442695, %v3199_v9  ;;  %v3492_v9 = vld [vmem:[%s4975_s17] ss:$0 sm:$0xff] }
0x213c   :  { %4066 = vpow2.f32 %v3200_v4 }
0x213d   :  { %4068 = vpow2.f32 %v3202_v15 }
0x2143   :  { %v4063_v61 = vpop.eup %4062 }
0x2144   :  { %v3178_v5 = vmul.f32 1.0614054, %v4063_v61 }
0x2145   :  { %v4065_v52 = vpop.eup %4064 }
0x2146   :  { %v3180_v57 = vadd.f32 -1.4531521, %v3178_v5  ;;  %v3179_v10 = vmul.f32 1.0614054, %v4065_v52  ;;  %v4067_v43 = vpop.eup %4066 }
0x2147   :  { %v4069_v45 = vpop.eup %4068 }
0x2148   :  { %v3182_v12 = vmul.f32 %v4063_v61, %v3180_v57  ;;  %v3181_v14 = vadd.f32 -1.4531521, %v3179_v10 }
0x214a   :  { %v3184_v6 = vadd.f32 1.4214138, %v3182_v12  ;;  %v3183_v17 = vmul.f32 %v4065_v52, %v3181_v14  ;;  %v3493_v12 = vld [vmem:[%s4976_s18] ss:$0 sm:$0xff] }
0x214c   :  { %v3186_v3 = vmul.f32 %v4063_v61, %v3184_v6  ;;  %v3185_v23 = vadd.f32 1.4214138, %v3183_v17 }
0x214e   :  { %v3188_v18 = vadd.f32 -0.28449672, %v3186_v3  ;;  %v3187_v20 = vmul.f32 %v4065_v52, %v3185_v23 }
0x2150   :  { %v3190_v21 = vmul.f32 %v4063_v61, %v3188_v18  ;;  %v3189_v25 = vadd.f32 -0.28449672, %v3187_v20 }
0x2152   :  { %v3192_v22 = vadd.f32 0.2548296, %v3190_v21  ;;  %v3191_v62 = vmul.f32 %v4065_v52, %v3189_v25 }
0x2154   :  { %v3194_v26 = vmul.f32 %v4063_v61, %v3192_v22  ;;  %v3193_v30 = vadd.f32 0.2548296, %v3191_v62 }
0x2156   :  { %v3204_v31 = vmul.f32 %v4067_v43, %v3194_v26  ;;  %v3195_v8 = vmul.f32 %v4065_v52, %v3193_v30 }
0x2158   :  { %v3206_v19 = vsub.f32 1.0, %v3204_v31  ;;  %v3205_v29 = vmul.f32 %v4069_v45, %v3195_v8 }
0x215a   :  { %v3208_v34 = vmul.f32 %v3206_v19, %v3166_v2  ;;  %v3207_v35 = vsub.f32 1.0, %v3205_v29 }
0x215c   :  { %v3210_v37 = vadd.f32 1.0, %v3208_v34  ;;  %v3209_v38 = vmul.f32 %v3207_v35, %v3167_v36 }
0x215e   :  { %v3211_v33 = vadd.f32 1.0, %v3209_v38  ;;  %v3212_v40 = vmul.f32 %v3210_v37, %v3160_v39 }
0x2160   :  { %v3213_v41 = vmul.f32 %v3211_v33, %v3161_v32 }
0x2162   :  { %v3214_v28 = vpack.c.bf16 %v3213_v41, %v3212_v40 }
0x2164   :  { %3933 = vmatmul.mubr.msk.bf16.vlgmr.msra.gmra.mrb[92].mxu0 %vm1644_vm6, %v3214_v28 }
0x2237   :  { %v3285_v42 = vpop.f32.mrb[92].mxu0 }
0x2238   :  { %v3292_v46 = vadd.f32 %v3285_v42, %v4884_v11  ;;  %v3934_v47 = vpop.f32.mrb[93].mxu0 }
0x2239   :  { %v3288_v48 = vpop.f32.mrb[94].mxu0 }
0x223a   :  { %v3293_v7 = vadd.f32 %v3288_v48, %v4887_v13  ;;  %v3935_v24 = vpop.f32.mrb[95].mxu0  ;;  %v3302_v49 = vadd.f32 %v3491_v44, %v3292_v46 }
0x223c   :  { %v3306_v50 = vsel %vm109_vm0, %v3302_v49, 0.0  ;;  %v3303_v0 = vadd.f32 %v3491_v44, %v3293_v7 }
0x223d   :  { %3307 = vadd.xlane.f32.xlu0 %v3306_v50 }
0x223e   :  { %v3309_v51 = vsel %vm109_vm0, %v3303_v0, 0.0 }
0x223f   :  { %3310 = vadd.xlane.f32.xlu1 %v3309_v51 }
0x22ca   :  { %v3308_v53 = vpop.xlane.xlu0 %3307 }
0x22cb   :  { %v3312_v54 = vmul.f32 0.03125, %v3308_v53 }
0x22cc   :  { %v3311_v1 = vpop.xlane.xlu1 %3310 }
0x22cd   :  { %v3314_v55 = vsub.f32 %v3302_v49, %v3312_v54  ;;  %v3313_v16 = vmul.f32 0.03125, %v3311_v1 }
0x22cf   :  { %v3315_v56 = vsub.f32 %v3303_v0, %v3313_v16  ;;  %v3316_v11 = vmul.f32 %v3314_v55, %v3314_v55 }
0x22d1   :  { %v3318_v58 = vsel %vm109_vm0, %v3316_v11, 0.0  ;;  %v3317_v27 = vmul.f32 %v3315_v56, %v3315_v56 }
0x22d2   :  { %3319 = vadd.xlane.f32.xlu0 %v3318_v58 }
0x22d3   :  { %v3321_v13 = vsel %vm109_vm0, %v3317_v27, 0.0 }
0x22d4   :  { %3322 = vadd.xlane.f32.xlu1 %v3321_v13 }
0x235f   :  { %v3320_v59 = vpop.xlane.xlu0 %3319 }
0x2360   :  { %v3324_v60 = vmul.f32 0.03125, %v3320_v59 }
0x2361   :  { %v3323_v61 = vpop.xlane.xlu1 %3322 }
0x2362   :  { %v3326_v63 = vadd.f32 1e-06, %v3324_v60  ;;  %v3325_v5 = vmul.f32 0.03125, %v3323_v61 }
0x2364   :  { %4070 = vrsqrt.f32 %v3326_v63  ;;  %v3327_v52 = vadd.f32 1e-06, %v3325_v5 }
0x2366   :  { %4072 = vrsqrt.f32 %v3327_v52 }
0x236e   :  { %v4071_v57 = vpop.eup %4070 }
0x236f   :  { %v3330_v4 = vmul.f32 %v4071_v57, %v3314_v55 }
0x2370   :  { %v4073_v10 = vpop.eup %4072 }
0x2371   :  { %v3331_v14 = vmul.f32 %v4073_v10, %v3315_v56  ;;  %v3338_v6 = vmul.f32 %v3492_v9, %v3330_v4 }
0x2373   :  { %v3339_v15 = vmul.f32 %v3492_v9, %v3331_v14  ;;  %v3346_v17 = vadd.f32 %v3493_v12, %v3338_v6 }
0x2375   :  { %v3347_v3 = vadd.f32 %v3493_v12, %v3339_v15  ;;  %3348 = vst.msk [vmem:[#allocation8] sm:$0xff] %vm109_vm0, %v3346_v17 }
0x2377   :  { %3349 = vst.msk [vmem:[#allocation8 + $0x8] sm:$0xff] %vm109_vm0, %v3347_v3 }
0x2378   :  { %4151 = shalt.err (!%p4148_p0)
}
0x2379   :  { %s4994_s28 = sld [smem:[#allocation16_spill]] }
0x237f   :  { %s4152_s29 = scalar_lea.hbm %s4994_s28, 256 }
0x2380   :  { %p4153_p1 = scmp.ne.s32.totalorder %s4994_s28, %s4152_s29  ;;  %p4156_p2 = scmp.lt.u32.totalorder %s4152_s29, %s4994_s28 }
0x2382   :  { %p4158_p3 = pnand %p4156_p2, %p4153_p1 }
0x2384   :  { %4161 = shalt.err (!%p4158_p3)
}
0x2385   :  { %3361 = dma.vmem_to_hbm [thread:$0]  %s3356_s13, 256, %s4994_s28, [#allocation4], %s4172_s9, %s4172_s9, %s4173_s30  }
0x2386   :  { %4166 = dma.done.wait [#allocation4], 256  }
0x2387   :  { %4167 = vsyncadd [#allocation4], 4294967040 }
0x2388   :  { %3365 = vsyncpa [#allocation3], 1 }
0x2389   :  { %3366 = vsyncpa [#allocation6], 1 }
0x238a   :  { %3367 = vsyncpa [#allocation4], 1 }

</bundles_post_ra>
